<compile_context>
chip_gen: v7x
topology: tpu7x:2x2x1
jax: 0.10.0
libtpu: 0.0.40
codegen_flags: <defaults>
</compile_context>

<pallas_src>
import functools

import numpy as np
import jax
import jax.numpy as jnp
from jax import lax
from jax.experimental import pallas as pl
from jax.experimental.pallas import tpu as pltpu


# ---------------------------------------------------------------------------
# Static geometry of the Nature-DQN conv stack (obs = 4 x 84 x 84).
# ---------------------------------------------------------------------------
C_IN, H_IN, W_IN = 4, 84, 84
C1, K1, S1 = 16, 8, 4                    # conv1: 16 ch, 8x8, stride 4
C2, K2, S2 = 32, 4, 2                    # conv2: 32 ch, 4x4, stride 2
H1 = (H_IN - K1) // S1 + 1               # 20
W1 = (W_IN - K1) // S1 + 1               # 20
H2 = (H1 - K2) // S2 + 1                 # 9
W2 = (W1 - K2) // S2 + 1                 # 9
LANES0 = W_IN * C_IN                     # 336  (input  row lanes: w*C_IN + ci)
LANES1 = W1 * C1                         # 320  (conv1  row lanes: q*C1  + co)
LANES2 = W2 * C2                         # 288  (conv2  row lanes: wo*C2 + co)


# ---------------------------------------------------------------------------
# Fused conv1 + conv2 + linear kernel (one batch element per grid step).
# ---------------------------------------------------------------------------
def _dqn_conv_kernel(xw_ref, r1_ref, a1_ref, b1_ref, r2_ref, a2_ref, b2_ref,
                     w3_ref, b3_ref, out_ref):
    xw = xw_ref[...]                                           # (84, 336) bf16

    # conv1: h1[p, q*16+co] = relu(b1[co] + sum_dy (R1_dy @ xw @ A1_dy)[p, q*16+co])
    acc1 = jnp.zeros((H1, LANES1), jnp.float32)
    for dy in range(K1):
        rows = jnp.dot(r1_ref[dy], xw,                         # (20,84)@(84,336)
                       preferred_element_type=jnp.float32)
        acc1 = acc1 + jnp.dot(rows.astype(jnp.bfloat16),       # (20,336)@(336,320)
                              a1_ref[dy],
                              preferred_element_type=jnp.float32)
    h1 = jnp.maximum(acc1 + b1_ref[...], 0.0).astype(jnp.bfloat16)   # (20, 320)

    # conv2: h2[ho, wo*32+co] = relu(b2[co] + sum_dy (R2_dy @ h1 @ A2_dy)[...])
    acc2 = jnp.zeros((H2, LANES2), jnp.float32)
    for dy in range(K2):
        rows = jnp.dot(r2_ref[dy], h1,                         # (9,20)@(20,320)
                       preferred_element_type=jnp.float32)
        acc2 = acc2 + jnp.dot(rows.astype(jnp.bfloat16),       # (9,320)@(320,288)
                              a2_ref[dy],
                              preferred_element_type=jnp.float32)
    h2 = jnp.maximum(acc2 + b2_ref[...], 0.0).astype(jnp.bfloat16)   # (9, 288)

    # final linear, folded into the same kernel: q = b3 + sum_ho h2[ho] @ W3[ho]
    acc3 = b3_ref[...]                                          # (1, A) f32
    for ho in range(H2):
        acc3 = acc3 + jnp.dot(h2[ho:ho + 1, :], w3_ref[ho],     # (1,288)@(288,A)
                              preferred_element_type=jnp.float32)
    out_ref[...] = acc3.astype(out_ref.dtype)


def dqn_conv_forward(packed, obs):
    """Fused Nature-DQN conv forward. obs: (N, 4, 84, 84) -> (N, num_actions)."""
    n, c, h, w = obs.shape
    assert (c, h, w) == (C_IN, H_IN, W_IN), "conv path requires (4, 84, 84) observations"
    num_actions = packed["b3"].shape[-1]

    # Single cheap layout op (no gather, no expansion): NCHW -> rows x (width*channels).
    xw = jnp.transpose(obs, (0, 2, 3, 1)).reshape(n, H_IN, LANES0).astype(jnp.bfloat16)

    flops = 2 * n * (K1 * (H1 * H_IN * LANES0 + H1 * LANES0 * LANES1)
                     + K2 * (H2 * H1 * LANES1 + H2 * LANES1 * LANES2)
                     + H2 * LANES2 * num_actions)
    bytes_accessed = (
        xw.size * 2
        + 2 * (packed["R1"].size + packed["A1"].size + packed["R2"].size
               + packed["A2"].size + packed["W3"].size)
        + 4 * (packed["b1w"].size + packed["b2w"].size + packed["b3"].size)
        + n * num_actions * 4)

    out = pl.pallas_call(
        _dqn_conv_kernel,
        out_shape=jax.ShapeDtypeStruct((n, 1, num_actions), jnp.float32),
        grid=(n,),
        in_specs=[
            pl.BlockSpec((None, H_IN, LANES0), lambda i: (i, 0, 0)),     # per-image input
            pl.BlockSpec((K1, H1, H_IN), lambda i: (0, 0, 0)),           # R1 (resident)
            pl.BlockSpec((K1, LANES0, LANES1), lambda i: (0, 0, 0)),     # A1 (resident)
            pl.BlockSpec((1, LANES1), lambda i: (0, 0)),                 # b1 (wide)
            pl.BlockSpec((K2, H2, H1), lambda i: (0, 0, 0)),             # R2
            pl.BlockSpec((K2, LANES1, LANES2), lambda i: (0, 0, 0)),     # A2
            pl.BlockSpec((1, LANES2), lambda i: (0, 0)),                 # b2 (wide)
            pl.BlockSpec((H2, LANES2, num_actions), lambda i: (0, 0, 0)),  # W3
            pl.BlockSpec((1, num_actions), lambda i: (0, 0)),            # b3
        ],
        out_specs=pl.BlockSpec((None, 1, num_actions), lambda i: (i, 0, 0)),
        compiler_params=pltpu.CompilerParams(
            dimension_semantics=("parallel",)),   # batch axis -> both TCs on v7x
        cost_estimate=pl.CostEstimate(flops=flops, transcendentals=0,
                                      bytes_accessed=bytes_accessed),
    )(xw, packed["R1"], packed["A1"], packed["b1w"],
      packed["R2"], packed["A2"], packed["b2w"],
      packed["W3"], packed["b3"])
    return out.reshape(n, num_actions)


# ---------------------------------------------------------------------------
# Fused 3-layer MLP kernel (symbolic path).
# ---------------------------------------------------------------------------
def _mlp_kernel(x_ref, w1_ref, b1_ref, w2_ref, b2_ref, w3_ref, b3_ref, o_ref):
    h = jnp.dot(x_ref[...], w1_ref[...], preferred_element_type=jnp.float32) + b1_ref[...]
    h = jnp.maximum(h, 0.0).astype(jnp.bfloat16)
    h = jnp.dot(h, w2_ref[...], preferred_element_type=jnp.float32) + b2_ref[...]
    h = jnp.maximum(h, 0.0).astype(jnp.bfloat16)
    o = jnp.dot(h, w3_ref[...], preferred_element_type=jnp.float32) + b3_ref[...]
    o_ref[...] = o.astype(o_ref.dtype)


def dqn_mlp_forward(packed, obs):
    n, d = obs.shape
    num_actions = packed["fc3_b"].shape[-1]
    hidden = packed["fc1_w"].shape[-1]     # 256
    x = obs.astype(jnp.bfloat16)
    # TODO(synk): tile the batch dim with an M-grid for very large symbolic batches;
    # at DQN-typical sizes one full block fits VMEM easily on all generations.
    flops = 2 * n * (d * hidden + hidden * hidden + hidden * num_actions)
    bytes_accessed = 2 * (n * d + d * hidden + hidden * hidden + hidden * num_actions) \
        + 4 * (2 * hidden + num_actions + n * num_actions)
    return pl.pallas_call(
        _mlp_kernel,
        out_shape=jax.ShapeDtypeStruct((n, num_actions), jnp.float32),
        grid=(1,),
        in_specs=[
            pl.BlockSpec((n, d), lambda i: (0, 0)),
            pl.BlockSpec((d, hidden), lambda i: (0, 0)),
            pl.BlockSpec((1, hidden), lambda i: (0, 0)),
            pl.BlockSpec((hidden, hidden), lambda i: (0, 0)),
            pl.BlockSpec((1, hidden), lambda i: (0, 0)),
            pl.BlockSpec((hidden, num_actions), lambda i: (0, 0)),
            pl.BlockSpec((1, num_actions), lambda i: (0, 0)),
        ],
        out_specs=pl.BlockSpec((n, num_actions), lambda i: (0, 0)),
        compiler_params=pltpu.CompilerParams(dimension_semantics=("arbitrary",)),
        cost_estimate=pl.CostEstimate(flops=flops, transcendentals=0,
                                      bytes_accessed=bytes_accessed),
    )(x, packed["fc1_w"], packed["fc1_b"], packed["fc2_w"], packed["fc2_b"],
      packed["fc3_w"], packed["fc3_b"])


# ---------------------------------------------------------------------------
# Parameter init (PyTorch layout) and one-time packing into kernel layouts.
# ---------------------------------------------------------------------------
def init_params(key, obs_space=(4, 84, 84), num_actions=4):
    ks = jax.random.split(key, 12)
    c_in = obs_space[0]

    def u(k, shape, fan_in):
        bound = 1.0 / jnp.sqrt(float(fan_in))
        return jax.random.uniform(k, shape, jnp.float32, -bound, bound)

    return {
        "conv1_w": u(ks[0], (C1, c_in, K1, K1), c_in * K1 * K1),
        "conv1_b": u(ks[1], (C1,), c_in * K1 * K1),
        "conv2_w": u(ks[2], (C2, C1, K2, K2), C1 * K2 * K2),
        "conv2_b": u(ks[3], (C2,), C1 * K2 * K2),
        "lin_w":   u(ks[4], (num_actions, C2 * H2 * W2), C2 * H2 * W2),
        "lin_b":   u(ks[5], (num_actions,), C2 * H2 * W2),
        "fc1_w": u(ks[6], (256, c_in), c_in),
        "fc1_b": u(ks[7], (256,), c_in),
        "fc2_w": u(ks[8], (256, 256), 256),
        "fc2_b": u(ks[9], (256,), 256),
        "fc3_w": u(ks[10], (num_actions, 256), 256),
        "fc3_b": u(ks[11], (num_actions,), 256),
    }


def pack_params(params, num_actions=4):
    """One-time repack of PyTorch-layout weights into the fused-kernel layouts."""
    w1 = np.asarray(params["conv1_w"], np.float32)   # (16, 4, 8, 8)
    b1 = np.asarray(params["conv1_b"], np.float32)
    w2 = np.asarray(params["conv2_w"], np.float32)   # (32, 16, 4, 4)
    b2 = np.asarray(params["conv2_b"], np.float32)
    lw = np.asarray(params["lin_w"], np.float32)     # (A, 32*9*9)
    lb = np.asarray(params["lin_b"], np.float32)

    # Row-selection matrices: R[dy, p, r] = 1 iff r == stride*p + dy.
    R1 = np.zeros((K1, H1, H_IN), np.float32)
    for dy in range(K1):
        R1[dy, np.arange(H1), S1 * np.arange(H1) + dy] = 1.0
    R2 = np.zeros((K2, H2, H1), np.float32)
    for dy in range(K2):
        R2[dy, np.arange(H2), S2 * np.arange(H2) + dy] = 1.0

    # Width-Toeplitz weights.
    # A1[dy, w*C_IN+ci, q*C1+co] = w1[co, ci, dy, w - S1*q]   (0 <= w-S1*q < K1)
    A1 = np.zeros((K1, LANES0, LANES1), np.float32)
    for dy in range(K1):
        for q in range(W1):
            for dx in range(K1):
                w = S1 * q + dx
                A1[dy, w * C_IN:(w + 1) * C_IN, q * C1:(q + 1) * C1] = w1[:, :, dy, dx].T
    # A2[dy, q*C1+ci, wo*C2+co] = w2[co, ci, dy, q - S2*wo]   (0 <= q-S2*wo < K2)
    A2 = np.zeros((K2, LANES1, LANES2), np.float32)
    for dy in range(K2):
        for wo in range(W2):
            for dx in range(K2):
                q = S2 * wo + dx
                A2[dy, q * C1:(q + 1) * C1, wo * C2:(wo + 1) * C2] = w2[:, :, dy, dx].T

    # Final linear, pre-permuted to the kernel's (ho, wo*C2+co) activation order.
    W3 = lw.reshape(num_actions, C2, H2, W2).transpose(2, 3, 1, 0) \
           .reshape(H2, LANES2, num_actions)

    bf = jnp.bfloat16
    return {
        "R1": jnp.asarray(R1, bf), "A1": jnp.asarray(A1, bf),
        "b1w": jnp.asarray(np.tile(b1, W1)[None, :], jnp.float32),
        "R2": jnp.asarray(R2, bf), "A2": jnp.asarray(A2, bf),
        "b2w": jnp.asarray(np.tile(b2, W2)[None, :], jnp.float32),
        "W3": jnp.asarray(W3, bf),
        "b3": jnp.asarray(lb[None, :], jnp.float32),
        # symbolic path: pre-transposed weights, (1, N) biases.
        "fc1_w": jnp.asarray(np.asarray(params["fc1_w"], np.float32).T, bf),
        "fc1_b": jnp.asarray(np.asarray(params["fc1_b"], np.float32)[None, :], jnp.float32),
        "fc2_w": jnp.asarray(np.asarray(params["fc2_w"], np.float32).T, bf),
        "fc2_b": jnp.asarray(np.asarray(params["fc2_b"], np.float32)[None, :], jnp.float32),
        "fc3_w": jnp.asarray(np.asarray(params["fc3_w"], np.float32).T, bf),
        "fc3_b": jnp.asarray(np.asarray(params["fc3_b"], np.float32)[None, :], jnp.float32),
    }


# ---------------------------------------------------------------------------
# QNetwork forward (matches the PyTorch module's forward()).
# ---------------------------------------------------------------------------
@functools.partial(jax.jit, static_argnames=("symbolic",))
def qnetwork_forward(packed, obs, symbolic=False):
    if symbolic:
        return dqn_mlp_forward(packed, obs)
    return dqn_conv_forward(packed, obs)


# Pure-JAX reference (correctness checking only).
def qnetwork_forward_ref(params, obs, symbolic=False):
    if symbolic:
        x = obs.astype(jnp.float32)
        x = jax.nn.relu(x @ params["fc1_w"].T + params["fc1_b"])
        x = jax.nn.relu(x @ params["fc2_w"].T + params["fc2_b"])
        return x @ params["fc3_w"].T + params["fc3_b"]
    dn = ("NCHW", "OIHW", "NCHW")
    x = lax.conv_general_dilated(obs, params["conv1_w"], (4, 4), "VALID",
                                 dimension_numbers=dn) + params["conv1_b"][None, :, None, None]
    x = jax.nn.relu(x)
    x = lax.conv_general_dilated(x, params["conv2_w"], (2, 2), "VALID",
                                 dimension_numbers=dn) + params["conv2_b"][None, :, None, None]
    x = jax.nn.relu(x)
    x = x.reshape(x.shape[0], -1)
    return x @ params["lin_w"].T + params["lin_b"]


if __name__ == "__main__":
    key = jax.random.PRNGKey(0)
    pkey, okey, skey = jax.random.split(key, 3)

    params = init_params(pkey, obs_space=(4, 84, 84), num_actions=4)
    packed = pack_params(params, num_actions=4)

    # Conv path: spatial must be 84x84 so the flatten matches the 32*9*9 Linear.
    obs = jax.random.normal(okey, (2, 4, 84, 84), jnp.float32)
    q_vals = jax.block_until_ready(qnetwork_forward(packed, obs, symbolic=False))
    q_ref = qnetwork_forward_ref(params, obs, symbolic=False)
    assert q_vals.shape == (2, 4)
    assert jnp.allclose(q_vals, q_ref, atol=2e-2, rtol=2e-2), \
        ("conv path mismatch", float(jnp.max(jnp.abs(q_vals - q_ref))))

    # Symbolic path: small MLP on (batch, 4) observations.
    obs_sym = jax.random.normal(skey, (2, 4), jnp.float32)
    q_sym = jax.block_until_ready(qnetwork_forward(packed, obs_sym, symbolic=True))
    q_sym_ref = qnetwork_forward_ref(params, obs_sym, symbolic=True)
    assert q_sym.shape == (2, 4)
    assert jnp.allclose(q_sym, q_sym_ref, atol=2e-2, rtol=2e-2), \
        ("symbolic path mismatch", float(jnp.max(jnp.abs(q_sym - q_sym_ref))))

    print("KERNEL_OK")
</pallas_src>

<mosaic_0001>
module attributes {stable_mosaic.version = 11 : i64} {
  func.func @_dqn_conv_kernel(%arg0: i32, %arg1: memref<1x84x336xbf16, #tpu.memory_space<vmem>>, %arg2: memref<8x20x84xbf16, #tpu.memory_space<vmem>>, %arg3: memref<8x336x320xbf16, #tpu.memory_space<vmem>>, %arg4: memref<1x320xf32, #tpu.memory_space<vmem>>, %arg5: memref<4x9x20xbf16, #tpu.memory_space<vmem>>, %arg6: memref<4x320x288xbf16, #tpu.memory_space<vmem>>, %arg7: memref<1x288xf32, #tpu.memory_space<vmem>>, %arg8: memref<9x288x4xbf16, #tpu.memory_space<vmem>>, %arg9: memref<1x4xf32, #tpu.memory_space<vmem>>, %arg10: memref<1x1x4xf32, #tpu.memory_space<vmem>>) attributes {dimension_semantics = [#tpu.dimension_semantics<parallel>], iteration_bounds = array<i64: 2>, scalar_prefetch = 0 : i64, scratch_operands = 0 : i64, tpu.core_type = #tpu.core_type<tc>, window_params = [{transform_indices = @transform_0, window_bounds = array<i64: 1, 84, 336>}, {pipeline_mode = #tpu.pipeline_mode<synchronous>, transform_indices = @transform_1, window_bounds = array<i64: 8, 20, 84>}, {pipeline_mode = #tpu.pipeline_mode<synchronous>, transform_indices = @transform_2, window_bounds = array<i64: 8, 336, 320>}, {pipeline_mode = #tpu.pipeline_mode<synchronous>, transform_indices = @transform_3, window_bounds = array<i64: 1, 320>}, {pipeline_mode = #tpu.pipeline_mode<synchronous>, transform_indices = @transform_4, window_bounds = array<i64: 4, 9, 20>}, {pipeline_mode = #tpu.pipeline_mode<synchronous>, transform_indices = @transform_5, window_bounds = array<i64: 4, 320, 288>}, {pipeline_mode = #tpu.pipeline_mode<synchronous>, transform_indices = @transform_6, window_bounds = array<i64: 1, 288>}, {pipeline_mode = #tpu.pipeline_mode<synchronous>, transform_indices = @transform_7, window_bounds = array<i64: 9, 288, 4>}, {pipeline_mode = #tpu.pipeline_mode<synchronous>, transform_indices = @transform_8, window_bounds = array<i64: 1, 4>}, {transform_indices = @transform_9, window_bounds = array<i64: 1, 1, 4>}]} {
    %c0 = arith.constant 0 : index
    %c0_0 = arith.constant 0 : index
    %c0_1 = arith.constant 0 : index
    %0 = vector.load %arg1[%c0, %c0_0, %c0_1] : memref<1x84x336xbf16, #tpu.memory_space<vmem>>, vector<1x84x336xbf16>
    %1 = vector.shape_cast %0 : vector<1x84x336xbf16> to vector<84x336xbf16>
    %cst = arith.constant 0.000000e+00 : f32
    %2 = vector.broadcast %cst : f32 to vector<20x320xf32>
    %c0_2 = arith.constant 0 : index
    %c0_3 = arith.constant 0 : index
    %c0_4 = arith.constant 0 : index
    %3 = vector.load %arg2[%c0_2, %c0_3, %c0_4] : memref<8x20x84xbf16, #tpu.memory_space<vmem>>, vector<1x20x84xbf16>
    %4 = vector.shape_cast %3 : vector<1x20x84xbf16> to vector<20x84xbf16>
    %cst_5 = arith.constant dense<0.000000e+00> : vector<20x336xf32>
    %5 = tpu.matmul %4, %1, %cst_5 {dimension_numbers = #tpu.dot_dimension_numbers<[1], [0], [0], [1], [0, 0, 1, 1], [], []>} : vector<20x84xbf16>, vector<84x336xbf16>, vector<20x336xf32> -> vector<20x336xf32>
    %6 = arith.truncf %5 : vector<20x336xf32> to vector<20x336xbf16>
    %c0_6 = arith.constant 0 : index
    %c0_7 = arith.constant 0 : index
    %c0_8 = arith.constant 0 : index
    %7 = vector.load %arg3[%c0_6, %c0_7, %c0_8] : memref<8x336x320xbf16, #tpu.memory_space<vmem>>, vector<1x336x320xbf16>
    %8 = vector.shape_cast %7 : vector<1x336x320xbf16> to vector<336x320xbf16>
    %cst_9 = arith.constant dense<0.000000e+00> : vector<20x320xf32>
    %9 = tpu.matmul %6, %8, %cst_9 {dimension_numbers = #tpu.dot_dimension_numbers<[1], [0], [0], [1], [0, 0, 1, 1], [], []>} : vector<20x336xbf16>, vector<336x320xbf16>, vector<20x320xf32> -> vector<20x320xf32>
    %10 = arith.addf %2, %9 : vector<20x320xf32>
    %c1 = arith.constant 1 : index
    %c0_10 = arith.constant 0 : index
    %c0_11 = arith.constant 0 : index
    %11 = vector.load %arg2[%c1, %c0_10, %c0_11] : memref<8x20x84xbf16, #tpu.memory_space<vmem>>, vector<1x20x84xbf16>
    %12 = vector.shape_cast %11 : vector<1x20x84xbf16> to vector<20x84xbf16>
    %cst_12 = arith.constant dense<0.000000e+00> : vector<20x336xf32>
    %13 = tpu.matmul %12, %1, %cst_12 {dimension_numbers = #tpu.dot_dimension_numbers<[1], [0], [0], [1], [0, 0, 1, 1], [], []>} : vector<20x84xbf16>, vector<84x336xbf16>, vector<20x336xf32> -> vector<20x336xf32>
    %14 = arith.truncf %13 : vector<20x336xf32> to vector<20x336xbf16>
    %c1_13 = arith.constant 1 : index
    %c0_14 = arith.constant 0 : index
    %c0_15 = arith.constant 0 : index
    %15 = vector.load %arg3[%c1_13, %c0_14, %c0_15] : memref<8x336x320xbf16, #tpu.memory_space<vmem>>, vector<1x336x320xbf16>
    %16 = vector.shape_cast %15 : vector<1x336x320xbf16> to vector<336x320xbf16>
    %cst_16 = arith.constant dense<0.000000e+00> : vector<20x320xf32>
    %17 = tpu.matmul %14, %16, %cst_16 {dimension_numbers = #tpu.dot_dimension_numbers<[1], [0], [0], [1], [0, 0, 1, 1], [], []>} : vector<20x336xbf16>, vector<336x320xbf16>, vector<20x320xf32> -> vector<20x320xf32>
    %18 = arith.addf %10, %17 : vector<20x320xf32>
    %c2 = arith.constant 2 : index
    %c0_17 = arith.constant 0 : index
    %c0_18 = arith.constant 0 : index
    %19 = vector.load %arg2[%c2, %c0_17, %c0_18] : memref<8x20x84xbf16, #tpu.memory_space<vmem>>, vector<1x20x84xbf16>
    %20 = vector.shape_cast %19 : vector<1x20x84xbf16> to vector<20x84xbf16>
    %cst_19 = arith.constant dense<0.000000e+00> : vector<20x336xf32>
    %21 = tpu.matmul %20, %1, %cst_19 {dimension_numbers = #tpu.dot_dimension_numbers<[1], [0], [0], [1], [0, 0, 1, 1], [], []>} : vector<20x84xbf16>, vector<84x336xbf16>, vector<20x336xf32> -> vector<20x336xf32>
    %22 = arith.truncf %21 : vector<20x336xf32> to vector<20x336xbf16>
    %c2_20 = arith.constant 2 : index
    %c0_21 = arith.constant 0 : index
    %c0_22 = arith.constant 0 : index
    %23 = vector.load %arg3[%c2_20, %c0_21, %c0_22] : memref<8x336x320xbf16, #tpu.memory_space<vmem>>, vector<1x336x320xbf16>
    %24 = vector.shape_cast %23 : vector<1x336x320xbf16> to vector<336x320xbf16>
    %cst_23 = arith.constant dense<0.000000e+00> : vector<20x320xf32>
    %25 = tpu.matmul %22, %24, %cst_23 {dimension_numbers = #tpu.dot_dimension_numbers<[1], [0], [0], [1], [0, 0, 1, 1], [], []>} : vector<20x336xbf16>, vector<336x320xbf16>, vector<20x320xf32> -> vector<20x320xf32>
    %26 = arith.addf %18, %25 : vector<20x320xf32>
    %c3 = arith.constant 3 : index
    %c0_24 = arith.constant 0 : index
    %c0_25 = arith.constant 0 : index
    %27 = vector.load %arg2[%c3, %c0_24, %c0_25] : memref<8x20x84xbf16, #tpu.memory_space<vmem>>, vector<1x20x84xbf16>
    %28 = vector.shape_cast %27 : vector<1x20x84xbf16> to vector<20x84xbf16>
    %cst_26 = arith.constant dense<0.000000e+00> : vector<20x336xf32>
    %29 = tpu.matmul %28, %1, %cst_26 {dimension_numbers = #tpu.dot_dimension_numbers<[1], [0], [0], [1], [0, 0, 1, 1], [], []>} : vector<20x84xbf16>, vector<84x336xbf16>, vector<20x336xf32> -> vector<20x336xf32>
    %30 = arith.truncf %29 : vector<20x336xf32> to vector<20x336xbf16>
    %c3_27 = arith.constant 3 : index
    %c0_28 = arith.constant 0 : index
    %c0_29 = arith.constant 0 : index
    %31 = vector.load %arg3[%c3_27, %c0_28, %c0_29] : memref<8x336x320xbf16, #tpu.memory_space<vmem>>, vector<1x336x320xbf16>
    %32 = vector.shape_cast %31 : vector<1x336x320xbf16> to vector<336x320xbf16>
    %cst_30 = arith.constant dense<0.000000e+00> : vector<20x320xf32>
    %33 = tpu.matmul %30, %32, %cst_30 {dimension_numbers = #tpu.dot_dimension_numbers<[1], [0], [0], [1], [0, 0, 1, 1], [], []>} : vector<20x336xbf16>, vector<336x320xbf16>, vector<20x320xf32> -> vector<20x320xf32>
    %34 = arith.addf %26, %33 : vector<20x320xf32>
    %c4 = arith.constant 4 : index
    %c0_31 = arith.constant 0 : index
    %c0_32 = arith.constant 0 : index
    %35 = vector.load %arg2[%c4, %c0_31, %c0_32] : memref<8x20x84xbf16, #tpu.memory_space<vmem>>, vector<1x20x84xbf16>
    %36 = vector.shape_cast %35 : vector<1x20x84xbf16> to vector<20x84xbf16>
    %cst_33 = arith.constant dense<0.000000e+00> : vector<20x336xf32>
    %37 = tpu.matmul %36, %1, %cst_33 {dimension_numbers = #tpu.dot_dimension_numbers<[1], [0], [0], [1], [0, 0, 1, 1], [], []>} : vector<20x84xbf16>, vector<84x336xbf16>, vector<20x336xf32> -> vector<20x336xf32>
    %38 = arith.truncf %37 : vector<20x336xf32> to vector<20x336xbf16>
    %c4_34 = arith.constant 4 : index
    %c0_35 = arith.constant 0 : index
    %c0_36 = arith.constant 0 : index
    %39 = vector.load %arg3[%c4_34, %c0_35, %c0_36] : memref<8x336x320xbf16, #tpu.memory_space<vmem>>, vector<1x336x320xbf16>
    %40 = vector.shape_cast %39 : vector<1x336x320xbf16> to vector<336x320xbf16>
    %cst_37 = arith.constant dense<0.000000e+00> : vector<20x320xf32>
    %41 = tpu.matmul %38, %40, %cst_37 {dimension_numbers = #tpu.dot_dimension_numbers<[1], [0], [0], [1], [0, 0, 1, 1], [], []>} : vector<20x336xbf16>, vector<336x320xbf16>, vector<20x320xf32> -> vector<20x320xf32>
    %42 = arith.addf %34, %41 : vector<20x320xf32>
    %c5 = arith.constant 5 : index
    %c0_38 = arith.constant 0 : index
    %c0_39 = arith.constant 0 : index
    %43 = vector.load %arg2[%c5, %c0_38, %c0_39] : memref<8x20x84xbf16, #tpu.memory_space<vmem>>, vector<1x20x84xbf16>
    %44 = vector.shape_cast %43 : vector<1x20x84xbf16> to vector<20x84xbf16>
    %cst_40 = arith.constant dense<0.000000e+00> : vector<20x336xf32>
    %45 = tpu.matmul %44, %1, %cst_40 {dimension_numbers = #tpu.dot_dimension_numbers<[1], [0], [0], [1], [0, 0, 1, 1], [], []>} : vector<20x84xbf16>, vector<84x336xbf16>, vector<20x336xf32> -> vector<20x336xf32>
    %46 = arith.truncf %45 : vector<20x336xf32> to vector<20x336xbf16>
    %c5_41 = arith.constant 5 : index
    %c0_42 = arith.constant 0 : index
    %c0_43 = arith.constant 0 : index
    %47 = vector.load %arg3[%c5_41, %c0_42, %c0_43] : memref<8x336x320xbf16, #tpu.memory_space<vmem>>, vector<1x336x320xbf16>
    %48 = vector.shape_cast %47 : vector<1x336x320xbf16> to vector<336x320xbf16>
    %cst_44 = arith.constant dense<0.000000e+00> : vector<20x320xf32>
    %49 = tpu.matmul %46, %48, %cst_44 {dimension_numbers = #tpu.dot_dimension_numbers<[1], [0], [0], [1], [0, 0, 1, 1], [], []>} : vector<20x336xbf16>, vector<336x320xbf16>, vector<20x320xf32> -> vector<20x320xf32>
    %50 = arith.addf %42, %49 : vector<20x320xf32>
    %c6 = arith.constant 6 : index
    %c0_45 = arith.constant 0 : index
    %c0_46 = arith.constant 0 : index
    %51 = vector.load %arg2[%c6, %c0_45, %c0_46] : memref<8x20x84xbf16, #tpu.memory_space<vmem>>, vector<1x20x84xbf16>
    %52 = vector.shape_cast %51 : vector<1x20x84xbf16> to vector<20x84xbf16>
    %cst_47 = arith.constant dense<0.000000e+00> : vector<20x336xf32>
    %53 = tpu.matmul %52, %1, %cst_47 {dimension_numbers = #tpu.dot_dimension_numbers<[1], [0], [0], [1], [0, 0, 1, 1], [], []>} : vector<20x84xbf16>, vector<84x336xbf16>, vector<20x336xf32> -> vector<20x336xf32>
    %54 = arith.truncf %53 : vector<20x336xf32> to vector<20x336xbf16>
    %c6_48 = arith.constant 6 : index
    %c0_49 = arith.constant 0 : index
    %c0_50 = arith.constant 0 : index
    %55 = vector.load %arg3[%c6_48, %c0_49, %c0_50] : memref<8x336x320xbf16, #tpu.memory_space<vmem>>, vector<1x336x320xbf16>
    %56 = vector.shape_cast %55 : vector<1x336x320xbf16> to vector<336x320xbf16>
    %cst_51 = arith.constant dense<0.000000e+00> : vector<20x320xf32>
    %57 = tpu.matmul %54, %56, %cst_51 {dimension_numbers = #tpu.dot_dimension_numbers<[1], [0], [0], [1], [0, 0, 1, 1], [], []>} : vector<20x336xbf16>, vector<336x320xbf16>, vector<20x320xf32> -> vector<20x320xf32>
    %58 = arith.addf %50, %57 : vector<20x320xf32>
    %c7 = arith.constant 7 : index
    %c0_52 = arith.constant 0 : index
    %c0_53 = arith.constant 0 : index
    %59 = vector.load %arg2[%c7, %c0_52, %c0_53] : memref<8x20x84xbf16, #tpu.memory_space<vmem>>, vector<1x20x84xbf16>
    %60 = vector.shape_cast %59 : vector<1x20x84xbf16> to vector<20x84xbf16>
    %cst_54 = arith.constant dense<0.000000e+00> : vector<20x336xf32>
    %61 = tpu.matmul %60, %1, %cst_54 {dimension_numbers = #tpu.dot_dimension_numbers<[1], [0], [0], [1], [0, 0, 1, 1], [], []>} : vector<20x84xbf16>, vector<84x336xbf16>, vector<20x336xf32> -> vector<20x336xf32>
    %62 = arith.truncf %61 : vector<20x336xf32> to vector<20x336xbf16>
    %c7_55 = arith.constant 7 : index
    %c0_56 = arith.constant 0 : index
    %c0_57 = arith.constant 0 : index
    %63 = vector.load %arg3[%c7_55, %c0_56, %c0_57] : memref<8x336x320xbf16, #tpu.memory_space<vmem>>, vector<1x336x320xbf16>
    %64 = vector.shape_cast %63 : vector<1x336x320xbf16> to vector<336x320xbf16>
    %cst_58 = arith.constant dense<0.000000e+00> : vector<20x320xf32>
    %65 = tpu.matmul %62, %64, %cst_58 {dimension_numbers = #tpu.dot_dimension_numbers<[1], [0], [0], [1], [0, 0, 1, 1], [], []>} : vector<20x336xbf16>, vector<336x320xbf16>, vector<20x320xf32> -> vector<20x320xf32>
    %66 = arith.addf %58, %65 : vector<20x320xf32>
    %c0_59 = arith.constant 0 : index
    %c0_60 = arith.constant 0 : index
    %67 = vector.load %arg4[%c0_59, %c0_60] : memref<1x320xf32, #tpu.memory_space<vmem>>, vector<1x320xf32>
    %68 = vector.broadcast %67 : vector<1x320xf32> to vector<20x320xf32>
    %69 = arith.addf %66, %68 : vector<20x320xf32>
    %cst_61 = arith.constant 0.000000e+00 : f32
    %70 = vector.broadcast %cst_61 : f32 to vector<20x320xf32>
    %71 = arith.maximumf %69, %70 : vector<20x320xf32>
    %72 = arith.truncf %71 : vector<20x320xf32> to vector<20x320xbf16>
    %cst_62 = arith.constant 0.000000e+00 : f32
    %73 = vector.broadcast %cst_62 : f32 to vector<9x288xf32>
    %c0_63 = arith.constant 0 : index
    %c0_64 = arith.constant 0 : index
    %c0_65 = arith.constant 0 : index
    %74 = vector.load %arg5[%c0_63, %c0_64, %c0_65] : memref<4x9x20xbf16, #tpu.memory_space<vmem>>, vector<1x9x20xbf16>
    %75 = vector.shape_cast %74 : vector<1x9x20xbf16> to vector<9x20xbf16>
    %cst_66 = arith.constant dense<0.000000e+00> : vector<9x320xf32>
    %76 = tpu.matmul %75, %72, %cst_66 {dimension_numbers = #tpu.dot_dimension_numbers<[1], [0], [0], [1], [0, 0, 1, 1], [], []>} : vector<9x20xbf16>, vector<20x320xbf16>, vector<9x320xf32> -> vector<9x320xf32>
    %77 = arith.truncf %76 : vector<9x320xf32> to vector<9x320xbf16>
    %c0_67 = arith.constant 0 : index
    %c0_68 = arith.constant 0 : index
    %c0_69 = arith.constant 0 : index
    %78 = vector.load %arg6[%c0_67, %c0_68, %c0_69] : memref<4x320x288xbf16, #tpu.memory_space<vmem>>, vector<1x320x288xbf16>
    %79 = vector.shape_cast %78 : vector<1x320x288xbf16> to vector<320x288xbf16>
    %cst_70 = arith.constant dense<0.000000e+00> : vector<9x288xf32>
    %80 = tpu.matmul %77, %79, %cst_70 {dimension_numbers = #tpu.dot_dimension_numbers<[1], [0], [0], [1], [0, 0, 1, 1], [], []>} : vector<9x320xbf16>, vector<320x288xbf16>, vector<9x288xf32> -> vector<9x288xf32>
    %81 = arith.addf %73, %80 : vector<9x288xf32>
    %c1_71 = arith.constant 1 : index
    %c0_72 = arith.constant 0 : index
    %c0_73 = arith.constant 0 : index
    %82 = vector.load %arg5[%c1_71, %c0_72, %c0_73] : memref<4x9x20xbf16, #tpu.memory_space<vmem>>, vector<1x9x20xbf16>
    %83 = vector.shape_cast %82 : vector<1x9x20xbf16> to vector<9x20xbf16>
    %cst_74 = arith.constant dense<0.000000e+00> : vector<9x320xf32>
    %84 = tpu.matmul %83, %72, %cst_74 {dimension_numbers = #tpu.dot_dimension_numbers<[1], [0], [0], [1], [0, 0, 1, 1], [], []>} : vector<9x20xbf16>, vector<20x320xbf16>, vector<9x320xf32> -> vector<9x320xf32>
    %85 = arith.truncf %84 : vector<9x320xf32> to vector<9x320xbf16>
    %c1_75 = arith.constant 1 : index
    %c0_76 = arith.constant 0 : index
    %c0_77 = arith.constant 0 : index
    %86 = vector.load %arg6[%c1_75, %c0_76, %c0_77] : memref<4x320x288xbf16, #tpu.memory_space<vmem>>, vector<1x320x288xbf16>
    %87 = vector.shape_cast %86 : vector<1x320x288xbf16> to vector<320x288xbf16>
    %cst_78 = arith.constant dense<0.000000e+00> : vector<9x288xf32>
    %88 = tpu.matmul %85, %87, %cst_78 {dimension_numbers = #tpu.dot_dimension_numbers<[1], [0], [0], [1], [0, 0, 1, 1], [], []>} : vector<9x320xbf16>, vector<320x288xbf16>, vector<9x288xf32> -> vector<9x288xf32>
    %89 = arith.addf %81, %88 : vector<9x288xf32>
    %c2_79 = arith.constant 2 : index
    %c0_80 = arith.constant 0 : index
    %c0_81 = arith.constant 0 : index
    %90 = vector.load %arg5[%c2_79, %c0_80, %c0_81] : memref<4x9x20xbf16, #tpu.memory_space<vmem>>, vector<1x9x20xbf16>
    %91 = vector.shape_cast %90 : vector<1x9x20xbf16> to vector<9x20xbf16>
    %cst_82 = arith.constant dense<0.000000e+00> : vector<9x320xf32>
    %92 = tpu.matmul %91, %72, %cst_82 {dimension_numbers = #tpu.dot_dimension_numbers<[1], [0], [0], [1], [0, 0, 1, 1], [], []>} : vector<9x20xbf16>, vector<20x320xbf16>, vector<9x320xf32> -> vector<9x320xf32>
    %93 = arith.truncf %92 : vector<9x320xf32> to vector<9x320xbf16>
    %c2_83 = arith.constant 2 : index
    %c0_84 = arith.constant 0 : index
    %c0_85 = arith.constant 0 : index
    %94 = vector.load %arg6[%c2_83, %c0_84, %c0_85] : memref<4x320x288xbf16, #tpu.memory_space<vmem>>, vector<1x320x288xbf16>
    %95 = vector.shape_cast %94 : vector<1x320x288xbf16> to vector<320x288xbf16>
    %cst_86 = arith.constant dense<0.000000e+00> : vector<9x288xf32>
    %96 = tpu.matmul %93, %95, %cst_86 {dimension_numbers = #tpu.dot_dimension_numbers<[1], [0], [0], [1], [0, 0, 1, 1], [], []>} : vector<9x320xbf16>, vector<320x288xbf16>, vector<9x288xf32> -> vector<9x288xf32>
    %97 = arith.addf %89, %96 : vector<9x288xf32>
    %c3_87 = arith.constant 3 : index
    %c0_88 = arith.constant 0 : index
    %c0_89 = arith.constant 0 : index
    %98 = vector.load %arg5[%c3_87, %c0_88, %c0_89] : memref<4x9x20xbf16, #tpu.memory_space<vmem>>, vector<1x9x20xbf16>
    %99 = vector.shape_cast %98 : vector<1x9x20xbf16> to vector<9x20xbf16>
    %cst_90 = arith.constant dense<0.000000e+00> : vector<9x320xf32>
    %100 = tpu.matmul %99, %72, %cst_90 {dimension_numbers = #tpu.dot_dimension_numbers<[1], [0], [0], [1], [0, 0, 1, 1], [], []>} : vector<9x20xbf16>, vector<20x320xbf16>, vector<9x320xf32> -> vector<9x320xf32>
    %101 = arith.truncf %100 : vector<9x320xf32> to vector<9x320xbf16>
    %c3_91 = arith.constant 3 : index
    %c0_92 = arith.constant 0 : index
    %c0_93 = arith.constant 0 : index
    %102 = vector.load %arg6[%c3_91, %c0_92, %c0_93] : memref<4x320x288xbf16, #tpu.memory_space<vmem>>, vector<1x320x288xbf16>
    %103 = vector.shape_cast %102 : vector<1x320x288xbf16> to vector<320x288xbf16>
    %cst_94 = arith.constant dense<0.000000e+00> : vector<9x288xf32>
    %104 = tpu.matmul %101, %103, %cst_94 {dimension_numbers = #tpu.dot_dimension_numbers<[1], [0], [0], [1], [0, 0, 1, 1], [], []>} : vector<9x320xbf16>, vector<320x288xbf16>, vector<9x288xf32> -> vector<9x288xf32>
    %105 = arith.addf %97, %104 : vector<9x288xf32>
    %c0_95 = arith.constant 0 : index
    %c0_96 = arith.constant 0 : index
    %106 = vector.load %arg7[%c0_95, %c0_96] : memref<1x288xf32, #tpu.memory_space<vmem>>, vector<1x288xf32>
    %107 = vector.broadcast %106 : vector<1x288xf32> to vector<9x288xf32>
    %108 = arith.addf %105, %107 : vector<9x288xf32>
    %cst_97 = arith.constant 0.000000e+00 : f32
    %109 = vector.broadcast %cst_97 : f32 to vector<9x288xf32>
    %110 = arith.maximumf %108, %109 : vector<9x288xf32>
    %111 = arith.truncf %110 : vector<9x288xf32> to vector<9x288xbf16>
    %c0_98 = arith.constant 0 : index
    %c0_99 = arith.constant 0 : index
    %112 = vector.load %arg9[%c0_98, %c0_99] : memref<1x4xf32, #tpu.memory_space<vmem>>, vector<1x4xf32>
    %113 = vector.extract_strided_slice %111 {offsets = [0, 0], sizes = [1, 288], strides = [1, 1]} : vector<9x288xbf16> to vector<1x288xbf16>
    %c0_100 = arith.constant 0 : index
    %c0_101 = arith.constant 0 : index
    %c0_102 = arith.constant 0 : index
    %114 = vector.load %arg8[%c0_100, %c0_101, %c0_102] : memref<9x288x4xbf16, #tpu.memory_space<vmem>>, vector<1x288x4xbf16>
    %115 = vector.shape_cast %114 : vector<1x288x4xbf16> to vector<288x4xbf16>
    %cst_103 = arith.constant dense<0.000000e+00> : vector<1x4xf32>
    %116 = tpu.matmul %113, %115, %cst_103 {dimension_numbers = #tpu.dot_dimension_numbers<[1], [0], [0], [1], [0, 0, 1, 1], [], []>} : vector<1x288xbf16>, vector<288x4xbf16>, vector<1x4xf32> -> vector<1x4xf32>
    %117 = arith.addf %112, %116 : vector<1x4xf32>
    %118 = vector.extract_strided_slice %111 {offsets = [1, 0], sizes = [1, 288], strides = [1, 1]} : vector<9x288xbf16> to vector<1x288xbf16>
    %c1_104 = arith.constant 1 : index
    %c0_105 = arith.constant 0 : index
    %c0_106 = arith.constant 0 : index
    %119 = vector.load %arg8[%c1_104, %c0_105, %c0_106] : memref<9x288x4xbf16, #tpu.memory_space<vmem>>, vector<1x288x4xbf16>
    %120 = vector.shape_cast %119 : vector<1x288x4xbf16> to vector<288x4xbf16>
    %cst_107 = arith.constant dense<0.000000e+00> : vector<1x4xf32>
    %121 = tpu.matmul %118, %120, %cst_107 {dimension_numbers = #tpu.dot_dimension_numbers<[1], [0], [0], [1], [0, 0, 1, 1], [], []>} : vector<1x288xbf16>, vector<288x4xbf16>, vector<1x4xf32> -> vector<1x4xf32>
    %122 = arith.addf %117, %121 : vector<1x4xf32>
    %123 = vector.extract_strided_slice %111 {offsets = [2, 0], sizes = [1, 288], strides = [1, 1]} : vector<9x288xbf16> to vector<1x288xbf16>
    %c2_108 = arith.constant 2 : index
    %c0_109 = arith.constant 0 : index
    %c0_110 = arith.constant 0 : index
    %124 = vector.load %arg8[%c2_108, %c0_109, %c0_110] : memref<9x288x4xbf16, #tpu.memory_space<vmem>>, vector<1x288x4xbf16>
    %125 = vector.shape_cast %124 : vector<1x288x4xbf16> to vector<288x4xbf16>
    %cst_111 = arith.constant dense<0.000000e+00> : vector<1x4xf32>
    %126 = tpu.matmul %123, %125, %cst_111 {dimension_numbers = #tpu.dot_dimension_numbers<[1], [0], [0], [1], [0, 0, 1, 1], [], []>} : vector<1x288xbf16>, vector<288x4xbf16>, vector<1x4xf32> -> vector<1x4xf32>
    %127 = arith.addf %122, %126 : vector<1x4xf32>
    %128 = vector.extract_strided_slice %111 {offsets = [3, 0], sizes = [1, 288], strides = [1, 1]} : vector<9x288xbf16> to vector<1x288xbf16>
    %c3_112 = arith.constant 3 : index
    %c0_113 = arith.constant 0 : index
    %c0_114 = arith.constant 0 : index
    %129 = vector.load %arg8[%c3_112, %c0_113, %c0_114] : memref<9x288x4xbf16, #tpu.memory_space<vmem>>, vector<1x288x4xbf16>
    %130 = vector.shape_cast %129 : vector<1x288x4xbf16> to vector<288x4xbf16>
    %cst_115 = arith.constant dense<0.000000e+00> : vector<1x4xf32>
    %131 = tpu.matmul %128, %130, %cst_115 {dimension_numbers = #tpu.dot_dimension_numbers<[1], [0], [0], [1], [0, 0, 1, 1], [], []>} : vector<1x288xbf16>, vector<288x4xbf16>, vector<1x4xf32> -> vector<1x4xf32>
    %132 = arith.addf %127, %131 : vector<1x4xf32>
    %133 = vector.extract_strided_slice %111 {offsets = [4, 0], sizes = [1, 288], strides = [1, 1]} : vector<9x288xbf16> to vector<1x288xbf16>
    %c4_116 = arith.constant 4 : index
    %c0_117 = arith.constant 0 : index
    %c0_118 = arith.constant 0 : index
    %134 = vector.load %arg8[%c4_116, %c0_117, %c0_118] : memref<9x288x4xbf16, #tpu.memory_space<vmem>>, vector<1x288x4xbf16>
    %135 = vector.shape_cast %134 : vector<1x288x4xbf16> to vector<288x4xbf16>
    %cst_119 = arith.constant dense<0.000000e+00> : vector<1x4xf32>
    %136 = tpu.matmul %133, %135, %cst_119 {dimension_numbers = #tpu.dot_dimension_numbers<[1], [0], [0], [1], [0, 0, 1, 1], [], []>} : vector<1x288xbf16>, vector<288x4xbf16>, vector<1x4xf32> -> vector<1x4xf32>
    %137 = arith.addf %132, %136 : vector<1x4xf32>
    %138 = vector.extract_strided_slice %111 {offsets = [5, 0], sizes = [1, 288], strides = [1, 1]} : vector<9x288xbf16> to vector<1x288xbf16>
    %c5_120 = arith.constant 5 : index
    %c0_121 = arith.constant 0 : index
    %c0_122 = arith.constant 0 : index
    %139 = vector.load %arg8[%c5_120, %c0_121, %c0_122] : memref<9x288x4xbf16, #tpu.memory_space<vmem>>, vector<1x288x4xbf16>
    %140 = vector.shape_cast %139 : vector<1x288x4xbf16> to vector<288x4xbf16>
    %cst_123 = arith.constant dense<0.000000e+00> : vector<1x4xf32>
    %141 = tpu.matmul %138, %140, %cst_123 {dimension_numbers = #tpu.dot_dimension_numbers<[1], [0], [0], [1], [0, 0, 1, 1], [], []>} : vector<1x288xbf16>, vector<288x4xbf16>, vector<1x4xf32> -> vector<1x4xf32>
    %142 = arith.addf %137, %141 : vector<1x4xf32>
    %143 = vector.extract_strided_slice %111 {offsets = [6, 0], sizes = [1, 288], strides = [1, 1]} : vector<9x288xbf16> to vector<1x288xbf16>
    %c6_124 = arith.constant 6 : index
    %c0_125 = arith.constant 0 : index
    %c0_126 = arith.constant 0 : index
    %144 = vector.load %arg8[%c6_124, %c0_125, %c0_126] : memref<9x288x4xbf16, #tpu.memory_space<vmem>>, vector<1x288x4xbf16>
    %145 = vector.shape_cast %144 : vector<1x288x4xbf16> to vector<288x4xbf16>
    %cst_127 = arith.constant dense<0.000000e+00> : vector<1x4xf32>
    %146 = tpu.matmul %143, %145, %cst_127 {dimension_numbers = #tpu.dot_dimension_numbers<[1], [0], [0], [1], [0, 0, 1, 1], [], []>} : vector<1x288xbf16>, vector<288x4xbf16>, vector<1x4xf32> -> vector<1x4xf32>
    %147 = arith.addf %142, %146 : vector<1x4xf32>
    %148 = vector.extract_strided_slice %111 {offsets = [7, 0], sizes = [1, 288], strides = [1, 1]} : vector<9x288xbf16> to vector<1x288xbf16>
    %c7_128 = arith.constant 7 : index
    %c0_129 = arith.constant 0 : index
    %c0_130 = arith.constant 0 : index
    %149 = vector.load %arg8[%c7_128, %c0_129, %c0_130] : memref<9x288x4xbf16, #tpu.memory_space<vmem>>, vector<1x288x4xbf16>
    %150 = vector.shape_cast %149 : vector<1x288x4xbf16> to vector<288x4xbf16>
    %cst_131 = arith.constant dense<0.000000e+00> : vector<1x4xf32>
    %151 = tpu.matmul %148, %150, %cst_131 {dimension_numbers = #tpu.dot_dimension_numbers<[1], [0], [0], [1], [0, 0, 1, 1], [], []>} : vector<1x288xbf16>, vector<288x4xbf16>, vector<1x4xf32> -> vector<1x4xf32>
    %152 = arith.addf %147, %151 : vector<1x4xf32>
    %153 = vector.extract_strided_slice %111 {offsets = [8, 0], sizes = [1, 288], strides = [1, 1]} : vector<9x288xbf16> to vector<1x288xbf16>
    %c8 = arith.constant 8 : index
    %c0_132 = arith.constant 0 : index
    %c0_133 = arith.constant 0 : index
    %154 = vector.load %arg8[%c8, %c0_132, %c0_133] : memref<9x288x4xbf16, #tpu.memory_space<vmem>>, vector<1x288x4xbf16>
    %155 = vector.shape_cast %154 : vector<1x288x4xbf16> to vector<288x4xbf16>
    %cst_134 = arith.constant dense<0.000000e+00> : vector<1x4xf32>
    %156 = tpu.matmul %153, %155, %cst_134 {dimension_numbers = #tpu.dot_dimension_numbers<[1], [0], [0], [1], [0, 0, 1, 1], [], []>} : vector<1x288xbf16>, vector<288x4xbf16>, vector<1x4xf32> -> vector<1x4xf32>
    %157 = arith.addf %152, %156 : vector<1x4xf32>
    %c0_135 = arith.constant 0 : index
    %c0_136 = arith.constant 0 : index
    %c0_137 = arith.constant 0 : index
    %158 = vector.load %arg10[%c0_135, %c0_136, %c0_137] : memref<1x1x4xf32, #tpu.memory_space<vmem>>, vector<1x1x4xf32>
    %159 = vector.shape_cast %158 : vector<1x1x4xf32> to vector<1x4xf32>
    %160 = vector.shape_cast %157 : vector<1x4xf32> to vector<1x1x4xf32>
    tpu.vector_store %arg10[%c0_135, %c0_136, %c0_137], %160 {strides = array<i32>} : memref<1x1x4xf32, #tpu.memory_space<vmem>>, vector<1x1x4xf32>,
    return
  }
  func.func @transform_0(%arg0: i32) -> (i32, i32, i32) {
    %c0_i32 = arith.constant 0 : i32
    %c0_i32_0 = arith.constant 0 : i32
    %c0_i32_1 = arith.constant 0 : i32
    return %arg0, %c0_i32, %c0_i32_0 : i32, i32, i32
  }
  func.func @transform_1(%arg0: i32) -> (i32, i32, i32) {
    %c0_i32 = arith.constant 0 : i32
    %c0_i32_0 = arith.constant 0 : i32
    %c0_i32_1 = arith.constant 0 : i32
    %c0_i32_2 = arith.constant 0 : i32
    return %c0_i32, %c0_i32_0, %c0_i32_1 : i32, i32, i32
  }
  func.func @transform_2(%arg0: i32) -> (i32, i32, i32) {
    %c0_i32 = arith.constant 0 : i32
    %c0_i32_0 = arith.constant 0 : i32
    %c0_i32_1 = arith.constant 0 : i32
    %c0_i32_2 = arith.constant 0 : i32
    return %c0_i32, %c0_i32_0, %c0_i32_1 : i32, i32, i32
  }
  func.func @transform_3(%arg0: i32) -> (i32, i32) {
    %c0_i32 = arith.constant 0 : i32
    %c0_i32_0 = arith.constant 0 : i32
    %c0_i32_1 = arith.constant 0 : i32
    return %c0_i32, %c0_i32_0 : i32, i32
  }
  func.func @transform_4(%arg0: i32) -> (i32, i32, i32) {
    %c0_i32 = arith.constant 0 : i32
    %c0_i32_0 = arith.constant 0 : i32
    %c0_i32_1 = arith.constant 0 : i32
    %c0_i32_2 = arith.constant 0 : i32
    return %c0_i32, %c0_i32_0, %c0_i32_1 : i32, i32, i32
  }
  func.func @transform_5(%arg0: i32) -> (i32, i32, i32) {
    %c0_i32 = arith.constant 0 : i32
    %c0_i32_0 = arith.constant 0 : i32
    %c0_i32_1 = arith.constant 0 : i32
    %c0_i32_2 = arith.constant 0 : i32
    return %c0_i32, %c0_i32_0, %c0_i32_1 : i32, i32, i32
  }
  func.func @transform_6(%arg0: i32) -> (i32, i32) {
    %c0_i32 = arith.constant 0 : i32
    %c0_i32_0 = arith.constant 0 : i32
    %c0_i32_1 = arith.constant 0 : i32
    return %c0_i32, %c0_i32_0 : i32, i32
  }
  func.func @transform_7(%arg0: i32) -> (i32, i32, i32) {
    %c0_i32 = arith.constant 0 : i32
    %c0_i32_0 = arith.constant 0 : i32
    %c0_i32_1 = arith.constant 0 : i32
    %c0_i32_2 = arith.constant 0 : i32
    return %c0_i32, %c0_i32_0, %c0_i32_1 : i32, i32, i32
  }
  func.func @transform_8(%arg0: i32) -> (i32, i32) {
    %c0_i32 = arith.constant 0 : i32
    %c0_i32_0 = arith.constant 0 : i32
    %c0_i32_1 = arith.constant 0 : i32
    return %c0_i32, %c0_i32_0 : i32, i32
  }
  func.func @transform_9(%arg0: i32) -> (i32, i32, i32) {
    %c0_i32 = arith.constant 0 : i32
    %c0_i32_0 = arith.constant 0 : i32
    %c0_i32_1 = arith.constant 0 : i32
    return %arg0, %c0_i32, %c0_i32_0 : i32, i32, i32
  }
}

</mosaic_0001>

<bundles_post_ra>
// kernel: qnetwork_forward.1
= control target key start
LH: loop header
LB: loop body
LE: loop exit
PB: predicated region body
PF: predicated region fallthrough
CT: control target
= control target key end

     0   :  { %s19891_s0 = inlined_call_operand.vmem [shape: bf16[2,84,336], index: 0, kind: input, shape index: {}]   ;;  %s19892_s1 = inlined_call_operand.vmem [shape: bf16[8,20,84], index: 1, kind: input, shape index: {}]   ;;  %s19893_s2 = inlined_call_operand.vmem [shape: bf16[8,336,320], index: 2, kind: input, shape index: {}]   ;;  %s19894_s3 = inlined_call_operand.vmem [shape: f32[1,320], index: 3, kind: input, shape index: {}]   ;;  %s19895_s4 = inlined_call_operand.vmem [shape: bf16[4,9,20], index: 4, kind: input, shape index: {}]   ;;  %s19896_s5 = inlined_call_operand.vmem [shape: bf16[4,320,288], index: 5, kind: input, shape index: {}]   ;;  %s19897_s6 = inlined_call_operand.vmem [shape: f32[1,288], index: 6, kind: input, shape index: {}]   ;;  %s19898_s7 = inlined_call_operand.vmem [shape: bf16[9,288,4], index: 7, kind: input, shape index: {}]   ;;  %s19899_s8 = inlined_call_operand.vmem [shape: f32[1,4], index: 8, kind: input, shape index: {}]   ;;  %s19900_s9 = inlined_call_operand.hbm [shape: f32[2,1,4], index: 9, kind: output, shape index: {}]  }
   0x1   :  { %19901 = sst [smem:[#allocation5_spill]] %s19891_s0 }
   0x2   :  { %14 = vsyncpa [#allocation3], 0 }
   0x3   :  { %16 = vsyncpa [#allocation3 + $0x1], 0  ;;  %s16264_s30 = smov 0   ;;  %s16266_s10 = smov 0  }
   0x4   :  { %s16268_s11 = smov 0   ;;  %s16270_s12 = smov 0  }
   0x5 LB: > { %s16285_s13 = sadd.s32 4294967295, %s16208_s12   ;;  %s11443_s14 = sadd.s32 4294967294, %s16208_s12   ;;  %s16208_s12 = sphi %s16270_s12, %s19908_s12   ;;  %s16204_s11 = sphi %s16268_s11, %s19907_s11   ;;  %s16200_s10 = sphi %s16266_s10, %s19906_s10   ;;  %s16196_s30 = sphi %s16264_s30, %s19905_s30  }
   0x6   : > { %s16289_s15 = sadd.s32 1, %s16208_s12   ;;  %s223_s16 = sadd.s32 1, %s16204_s11 }
   0x7   : > { %s220_s17 = ssub.s32 %s16208_s12, %s16289_s15  ;;  %p233_p0 = scmp.ne.s32.totalorder %s16204_s11, %s16200_s10 }
   0x8   : > { %p221_p1 = scmp.eq.s32.totalorder %s220_s17, 0  ;;  %p234_p2 = scmp.eq.s32.totalorder %s16285_s13, 1 }
   0x9   : > { %p239_p3 = scmp.ne.s32.totalorder %s16200_s10, %s16196_s30  ;;  %p240_p4 = scmp.eq.s32.totalorder %s11443_s14, 1 }
   0xa   : > { %s16300_s18 = scalar_select %p221_p1, %s16204_s11, %s223_s16  }
   0xb   : > { %p16302_p5 = por %p234_p2, %p233_p0  ;;  %p16306_p6 = por %p240_p4, %p239_p3 }
   0xc   : > { %p11446_p7 = scmp.ge.s32.totalorder %s16208_s12, 1  ;;  %p290_p8 = scmp.lt.s32.totalorder %s16208_s12, 3 }
   0xe   : > { %p291_p9 = pnand %p11446_p7, %p290_p8 }
   0xf   : > { %p325_p10 = scmp.lt.s32.totalorder (!%p291_p9), %s16285_s13, 1  ;;  %v14920_v0 = vld [vmem:[%s19892_s1] sm:$0xff] (!%p291_p9)   ;;  %v16210_v1 = vmov (!%p291_p9), 0   ;;  %vm452_vm0 = vcmask (!%p291_p9), 687104   ;;  %s19904_s0 = sld [smem:[#allocation5_spill]] (!%p291_p9)  ;;  %vm459_vm1 = vcmask (!%p291_p9), 1041408  }
  0x10   : > { %294 = sbr.rel (%p291_p9) target bundleno = 3643 (0xe3b), region = 56  ;;  %501 = vmatprep.mubr.bf16.mxu0 (!%p291_p9), %v16210_v1  ;;  %14340 = vmatprep.mubr.msk.bf16.mxu1 (!%p291_p9), %vm452_vm0, %v14920_v0  ;;  %v14924_v23 = vld [vmem:[%s19892_s1 + $0x8] ss:$0 sps:$4 sm:$0x33] (!%p291_p9)   ;;  %v14926_v24 = vld [vmem:[%s19892_s1 + $0xc] sm:$0xff] (!%p291_p9)   ;;  %vm1202_vm2 = vcmask (!%p291_p9), 654336  }
  0x11   : > { %v14930_v25 = vld [vmem:[%s19893_s2 + $0x1fc] ss:$12 sps:$4 sm:$0xff] (!%p291_p9)   ;;  %v14928_v26 = vld [vmem:[%s19893_s2 + $0x1f8] ss:$12 sps:$4 sm:$0xff] (!%p291_p9)   ;;  %v14933_v27 = vld [vmem:[%s19893_s2 + $0x214] ss:$12 sps:$4 sm:$0xff] (!%p291_p9)  }
  0x12   : > { %v14955_v28 = vld [vmem:[%s19893_s2 + $0x2c0] ss:$12 sps:$4 sm:$0xff] (!%p291_p9)   ;;  %v14931_v29 = vld [vmem:[%s19893_s2 + $0x210] ss:$12 sps:$4 sm:$0xff] (!%p291_p9)   ;;  %v14934_v33 = vld [vmem:[%s19893_s2 + $0x228] ss:$12 sps:$4 sm:$0xff] (!%p291_p9)  }
  0x13   : > { %v14936_v30 = vld [vmem:[%s19893_s2 + $0x22c] ss:$12 sps:$4 sm:$0xff] (!%p291_p9)   ;;  %v14927_v31 = vld [vmem:[%s19892_s1 + $0x14] ss:$0 sps:$4 sm:$0x33] (!%p291_p9)   ;;  %vm6537_vm3 = vcmask (!%p291_p9), 162816  }
  0x14   : > { %v14956_v32 = vld [vmem:[%s19893_s2 + $0x200] ss:$12 sps:$4 sm:$0xff] (!%p291_p9)   ;;  %v14939_v34 = vld [vmem:[%s19893_s2 + $0x244] ss:$12 sps:$4 sm:$0xff] (!%p291_p9)   ;;  %v14942_v36 = vld [vmem:[%s19893_s2 + $0x25c] ss:$12 sps:$4 sm:$0xff] (!%p291_p9)  }
  0x15   : > { %v14937_v35 = vld [vmem:[%s19893_s2 + $0x240] ss:$12 sps:$4 sm:$0xff] (!%p291_p9)   ;;  %v14940_v37 = vld [vmem:[%s19893_s2 + $0x258] ss:$12 sps:$4 sm:$0xff] (!%p291_p9)   ;;  %v14943_v39 = vld [vmem:[%s19893_s2 + $0x270] ss:$12 sps:$4 sm:$0xff] (!%p291_p9)  }
  0x16   : > { %v14945_v38 = vld [vmem:[%s19893_s2 + $0x274] ss:$12 sps:$4 sm:$0xff] (!%p291_p9)   ;;  %v14948_v40 = vld [vmem:[%s19893_s2 + $0x28c] ss:$12 sps:$4 sm:$0xff] (!%p291_p9)   ;;  %v14951_v42 = vld [vmem:[%s19893_s2 + $0x2a4] ss:$12 sps:$4 sm:$0xff] (!%p291_p9)  }
  0x17   : > { %s326_s23 = scalar_select %p325_p10, %s16285_s13, 1  ;;  %v14946_v41 = vld [vmem:[%s19893_s2 + $0x288] ss:$12 sps:$4 sm:$0xff]   ;;  %v14949_v43 = vld [vmem:[%s19893_s2 + $0x2a0] ss:$12 sps:$4 sm:$0xff]   ;;  %vm16212_vm4 = vmmov 0  }
  0x18   : > { %v14954_v44 = vld [vmem:[%s19893_s2 + $0x2bc] ss:$12 sps:$4 sm:$0xff]   ;;  %v14952_v45 = vld [vmem:[%s19893_s2 + $0x2b8] ss:$12 sps:$4 sm:$0xff]   ;;  %v14959_v46 = vld [vmem:[%s19893_s2 + $0x2d4] ss:$12 sps:$4 sm:$0xff]  }
  0x19   : > { %s14858_s24 = smul.u32 132, %s326_s23  ;;  %v14960_v47 = vld [vmem:[%s19893_s2 + $0x2d8] ss:$12 sps:$4 sm:$0xff]   ;;  %v14957_v48 = vld [vmem:[%s19893_s2 + $0x2d0] ss:$12 sps:$4 sm:$0xff]   ;;  %vm7216_vm5 = vcmask 523264  }
  0x1a   : > { %v14961_v49 = vld [vmem:[%s19893_s2 + $0x218] ss:$12 sps:$4 sm:$0xff]   ;;  %v14962_v50 = vld [vmem:[%s19893_s2 + $0x2e8] ss:$12 sps:$4 sm:$0xff]   ;;  %v14965_v52 = vld [vmem:[%s19893_s2 + $0x2f0] ss:$12 sps:$4 sm:$0xff]  }
  0x1b   : > { %s16322_s27 = scalar_lea.vmem %s19904_s0, %s14858_s24  ;;  %v14964_v51 = vld [vmem:[%s19893_s2 + $0x2ec] ss:$12 sps:$4 sm:$0xff]   ;;  %v14966_v53 = vld [vmem:[%s19893_s2 + $0x230] ss:$12 sps:$4 sm:$0xff]   ;;  %v14970_v56 = vld [vmem:[%s19893_s2 + $0x308] ss:$12 sps:$4 sm:$0xff]  }
  0x1c   : > { %v14901_v2 = vld [vmem:[%s16322_s27 + $0x4] ss:$12 sps:$4 sm:$0xff]   ;;  %v14903_v3 = vld [vmem:[%s16322_s27] ss:$12 sps:$4 sm:$0xff]   ;;  %v14904_v4 = vld [vmem:[%s16322_s27 + $0x1c] ss:$12 sps:$4 sm:$0xff]  }
  0x1d   : > { %469 = vmatprep.subr.bf16.mxu0 %v14901_v2  ;;  %v14906_v5 = vld [vmem:[%s16322_s27 + $0x18] ss:$12 sps:$4 sm:$0xff]   ;;  %v14907_v6 = vld [vmem:[%s16322_s27 + $0x34] ss:$12 sps:$4 sm:$0xff]   ;;  %v14909_v7 = vld [vmem:[%s16322_s27 + $0x30] ss:$12 sps:$4 sm:$0xff]  }
  0x1e   : > { %470 = vmatpush1.bf16.msra.mxu0 %v14903_v3  ;;  %v14910_v8 = vld [vmem:[%s16322_s27 + $0x4c] ss:$12 sps:$4 sm:$0xff]   ;;  %v14916_v9 = vld [vmem:[%s16322_s27 + $0x8] ss:$12 sps:$4 sm:$0xff]   ;;  %v14913_v13 = vld [vmem:[%s16322_s27 + $0x64] ss:$12 sps:$4 sm:$0xff]  }
  0x1f   : > { %471 = vmatprep.subr.bf16.mxu0 %v14904_v4  ;;  %v14919_v10 = vld [vmem:[%s16322_s27 + $0x20] ss:$12 sps:$4 sm:$0xff]   ;;  %v14912_v11 = vld [vmem:[%s16322_s27 + $0x48] ss:$12 sps:$4 sm:$0xff]   ;;  %14328 = vmatprep.subr.bf16.mxu1 %v14916_v9  ;;  %v14921_v12 = vld [vmem:[%s16322_s27 + $0x38] ss:$12 sps:$4 sm:$0xff]  }
  0x20   : > { %14329 = vmatpush3.bf16.msra.mxu1 %v14916_v9  ;;  %v351_v14 = vld [vmem:[%s16322_s27 + $0x78] sm:$0x33]  ;;  %v14915_v15 = vld [vmem:[%s16322_s27 + $0x60] ss:$12 sps:$4 sm:$0xff]   ;;  %v14923_v19 = vld [vmem:[%s16322_s27 + $0x68] ss:$12 sps:$4 sm:$0xff]  }
  0x21   : > { %14330 = vmatprep.subr.bf16.mxu1 %v14919_v10  ;;  %v14922_v16 = vld [vmem:[%s16322_s27 + $0x50] ss:$12 sps:$4 sm:$0xff]   ;;  %v16339_v17 = vcombine.high %v351_v14, %v351_v14  ;;  %v11465_v18 = vcombine.low %v351_v14, %v351_v14  ;;  %v14925_v21 = vld [vmem:[%s16322_s27 + $0x80] ss:$0 sps:$4 sm:$0x33]   ;;  %vm9408_vm6 = vcmask 261120  }
  0x22   : > { %472 = vmatpush1.bf16.msra.mxu0 %v14906_v5  ;;  %v16352_v22 = vsel %vm459_vm1, %v14925_v21, 0  ;;  %v14967_v54 = vld [vmem:[%s19893_s2 + $0x300] ss:$12 sps:$4 sm:$0xff]   ;;  %v14969_v55 = vld [vmem:[%s19893_s2 + $0x304] ss:$12 sps:$4 sm:$0xff]   ;;  %s13636_s17 = sshll.u32 %s16285_s13, 4 }
  0x23   : > { %473 = vmatprep.subr.bf16.mxu0 %v14907_v6  ;;  %v16345_v20 = vsel %vm459_vm1, %v11465_v18, 0  ;;  %v14971_v57 = vld [vmem:[%s19893_s2 + $0x248] ss:$12 sps:$4 sm:$0xff]   ;;  %v14975_v59 = vld [vmem:[%s19893_s2 + $0x320] ss:$12 sps:$4 sm:$0xff]   ;;  %vm11373_vm7 = vcmask 24576   ;;  %s19849_s24 = scalar_lea.hbm %s19900_s9, %s13636_s17 }
  0x24   : > { %14331 = vmatpush3.bf16.msra.mxu1 %v14919_v10  ;;  %v14974_v58 = vld [vmem:[%s19893_s2 + $0x31c] ss:$12 sps:$4 sm:$0xff]   ;;  %v14972_v60 = vld [vmem:[%s19893_s2 + $0x318] ss:$12 sps:$4 sm:$0xff]   ;;  %v14976_v61 = vld [vmem:[%s19893_s2 + $0x260] ss:$12 sps:$4 sm:$0xff]  }
  0x25   : > { %14332 = vmatprep.subr.bf16.mxu1 %v14921_v12  ;;  %v14979_v62 = vld [vmem:[%s19893_s2 + $0x334] ss:$12 sps:$4 sm:$0xff]   ;;  %v14980_v63 = vld [vmem:[%s19893_s2 + $0x338] ss:$12 sps:$4 sm:$0xff]   ;;  %s16213_s26 = smov [#allocation2]  }
  0x26   : > { %474 = vmatpush1.bf16.msra.mxu0 %v14909_v7  ;;  %s16150_s28 = sshll.u32 %s16213_s26, 4  ;;  %s16151_s28 = int_to_ptr.vmem [resolvable:$false] %s16150_s28 }
  0x27   : > { %475 = vmatprep.subr.bf16.mxu0 %v14910_v8  ;;  %s16152_s29 = scalar_lea.vmem %s16151_s28, 32 }
  0x28   : > { %14333 = vmatpush3.bf16.msra.mxu1 %v14921_v12 }
  0x29   : > { %14334 = vmatprep.subr.bf16.mxu1 %v14922_v16 }
  0x2a   : > { %476 = vmatpush1.bf16.msra.mxu0 %v14912_v11 }
  0x2b   : > { %477 = vmatprep.subr.bf16.mxu0 %v14913_v13 }
  0x2c   : > { %14335 = vmatpush3.bf16.msra.mxu1 %v14922_v16 }
  0x2d   : > { %14336 = vmatprep.subr.bf16.mxu1 %v14923_v19 }
  0x2e   : > { %478 = vmatpush1.bf16.msra.mxu0 %v14915_v15 }
  0x2f   : > { %11468 = vmatprep.subr.msk.bf16.mxu0 %vm459_vm1, %v16339_v17 }
  0x30   : > { %14337 = vmatpush3.bf16.msra.mxu1 %v14923_v19 }
  0x31   : > { %14850 = vmatprep.subr.msk.bf16.mxu1 %vm459_vm1, %v14925_v21 }
  0x32   : > { %480 = vmatpush1.bf16.msra.mxu0 %v16345_v20 }
  0x33   : > { %676 = vmatprep.subr.bf16.mxu0 %v14901_v2  ;;  %v14981_v2 = vld [vmem:[%s19893_s2 + $0x278] ss:$12 sps:$4 sm:$0xff]  }
  0x34   : > { %14339 = vmatpush3.bf16.msra.mxu1 %v16352_v22 }
  0x35   : > { %11469 = vmatmul.mubr.msk.bf16.vlgmr.msra.gmra.mrb[0].mxu0 %vm452_vm0, %v14920_v0  ;;  %14344 = vmatprep.subr.bf16.mxu1 %v14916_v9  ;;  %v14977_v0 = vld [vmem:[%s19893_s2 + $0x330] ss:$12 sps:$4 sm:$0xff]  }
  0x36   : > { %677 = vmatpush1.bf16.msra.mxu0 %v14903_v3  ;;  %511 = vmatprep.mubr.bf16.mxu0 %v16210_v1  ;;  %v14984_v3 = vld [vmem:[%s19893_s2 + $0x34c] ss:$12 sps:$4 sm:$0xff]  }
  0x37   : > { %678 = vmatprep.subr.bf16.mxu0 %v14904_v4  ;;  %14341 = vmatmul.mubr.msk.bf16.vlgmr.msra.gmra.mrb[0].mxu1 %vm452_vm0, %v14924_v23  ;;  %v14985_v4 = vld [vmem:[%s19893_s2 + $0x350] ss:$12 sps:$4 sm:$0xff]  }
  0x38   : > { %14345 = vmatpush3.bf16.msra.mxu1 %v14916_v9  ;;  %14356 = vmatprep.mubr.msk.bf16.mxu1 %vm452_vm0, %v14926_v24  ;;  %v14987_v9 = vld [vmem:[%s19893_s2 + $0x360] ss:$12 sps:$4 sm:$0xff]  }
  0x39   : > { %14346 = vmatprep.subr.bf16.mxu1 %v14919_v10 }
  0x3a   : > { %679 = vmatpush1.bf16.msra.mxu0 %v14906_v5  ;;  %v14982_v5 = vld [vmem:[%s19893_s2 + $0x348] ss:$12 sps:$4 sm:$0xff]  }
  0x3b   : > { %680 = vmatprep.subr.bf16.mxu0 %v14907_v6  ;;  %v14986_v6 = vld [vmem:[%s19893_s2 + $0x290] ss:$12 sps:$4 sm:$0xff]  }
  0x3c   : > { %14347 = vmatpush3.bf16.msra.mxu1 %v14919_v10  ;;  %v14991_v10 = vld [vmem:[%s19893_s2 + $0x2a8] ss:$12 sps:$4 sm:$0xff]  }
  0x3d   : > { %11470 = vmatmul.mubr.msk.bf16.gmra.mrb[4].mxu0 %vm452_vm0, %v14924_v23  ;;  %14348 = vmatprep.subr.bf16.mxu1 %v14921_v12 }
  0x3e   : > { %681 = vmatpush1.bf16.msra.mxu0 %v14909_v7  ;;  %708 = vmatprep.mubr.bf16.mxu0 %v16210_v1  ;;  %v14989_v7 = vld [vmem:[%s19893_s2 + $0x364] ss:$12 sps:$4 sm:$0xff]  }
  0x3f   : > { %682 = vmatprep.subr.bf16.mxu0 %v14910_v8  ;;  %v14990_v8 = vld [vmem:[%s19893_s2 + $0x368] ss:$12 sps:$4 sm:$0xff]  }
  0x40   : > { %14349 = vmatpush3.bf16.msra.mxu1 %v14921_v12  ;;  %v14995_v12 = vld [vmem:[%s19893_s2 + $0x380] ss:$12 sps:$4 sm:$0xff]  }
  0x41   : > { %14350 = vmatprep.subr.bf16.mxu1 %v14922_v16 }
  0x42   : > { %683 = vmatpush1.bf16.msra.mxu0 %v14912_v11  ;;  %v14994_v11 = vld [vmem:[%s19893_s2 + $0x37c] ss:$12 sps:$4 sm:$0xff]  }
  0x43   : > { %684 = vmatprep.subr.bf16.mxu0 %v14913_v13 }
  0x44   : > { %14351 = vmatpush3.bf16.msra.mxu1 %v14922_v16 }
  0x45   : > { %14352 = vmatprep.subr.bf16.mxu1 %v14923_v19 }
  0x46   : > { %685 = vmatpush1.bf16.msra.mxu0 %v14915_v15 }
  0x47   : > { %11478 = vmatprep.subr.msk.bf16.mxu0 %vm459_vm1, %v16339_v17 }
  0x48   : > { %14353 = vmatpush3.bf16.msra.mxu1 %v14923_v19 }
  0x49   : > { %14851 = vmatprep.subr.msk.bf16.mxu1 %vm459_vm1, %v14925_v21 }
  0x4a   : > { %687 = vmatpush1.bf16.msra.mxu0 %v16345_v20 }
  0x4b   : > { %1209 = vmatprep.subr.bf16.mxu0 %v14930_v25 }
  0x4c   : > { %14355 = vmatpush3.bf16.msra.mxu1 %v16352_v22 }
  0x4d   : > { %11479 = vmatmul.mubr.msk.bf16.vlgmr.msra.gmra.mrb[8].mxu0 %vm452_vm0, %v14926_v24  ;;  %13655 = vmatprep.subr.bf16.mxu1 %v14955_v28 }
  0x4e   : > { %718 = vmatprep.mubr.bf16.mxu0 %v16210_v1  ;;  %1210 = vmatpush1.bf16.msra.mxu0 %v14928_v26 }
  0x4f   : > { %1211 = vmatprep.subr.bf16.mxu0 %v14933_v27  ;;  %14357 = vmatmul.mubr.msk.bf16.vlgmr.msra.gmra.mrb[4].mxu1 %vm452_vm0, %v14927_v31 }
  0x50   : > { %13656 = vmatpush3.bf16.msra.mxu1 %v14956_v32 }
  0x51   : > { %13657 = vmatprep.subr.bf16.mxu1 %v14960_v47 }
  0x52   : > { %1212 = vmatpush1.bf16.msra.mxu0 %v14931_v29 }
  0x53   : > { %1213 = vmatprep.subr.bf16.mxu0 %v14936_v30 }
  0x54   : > { %13658 = vmatpush3.bf16.msra.mxu1 %v14961_v49 }
  0x55   : > { %11480 = vmatmul.mubr.msk.bf16.gmra.mrb[12].mxu0 %vm452_vm0, %v14927_v31  ;;  %13659 = vmatprep.subr.bf16.mxu1 %v14965_v52 }
  0x56   : > { %1214 = vmatpush1.bf16.msra.mxu0 %v14934_v33 }
  0x57   : > { %1215 = vmatprep.subr.bf16.mxu0 %v14939_v34  ;;  %v14992_v34 = vld [vmem:[%s19893_s2 + $0x378] ss:$12 sps:$4 sm:$0xff]  }
  0x58   : > { %13660 = vmatpush3.bf16.msra.mxu1 %v14966_v53 }
  0x59   : > { %13661 = vmatprep.subr.bf16.mxu1 %v14970_v56 }
  0x5a   : > { %1216 = vmatpush1.bf16.msra.mxu0 %v14937_v35 }
  0x5b   : > { %1217 = vmatprep.subr.bf16.mxu0 %v14942_v36 }
  0x5c   : > { %13662 = vmatpush3.bf16.msra.mxu1 %v14971_v57  ;;  %v15004_v57 = vld [vmem:[%s19893_s2 + $0x3c0] ss:$12 sps:$4 sm:$0xff]  }
  0x5d   : > { %13663 = vmatprep.subr.bf16.mxu1 %v14975_v59  ;;  %v15011_v59 = vld [vmem:[%s19893_s2 + $0x3e0] ss:$12 sps:$4 sm:$0xff]  }
  0x5e   : > { %1218 = vmatpush1.bf16.msra.mxu0 %v14940_v37  ;;  %v14998_v37 = vld [vmem:[%s19893_s2 + $0x394] ss:$12 sps:$4 sm:$0xff]  }
  0x5f   : > { %1219 = vmatprep.subr.bf16.mxu0 %v14945_v38  ;;  %v14999_v38 = vld [vmem:[%s19893_s2 + $0x398] ss:$12 sps:$4 sm:$0xff]  }
  0x60   : > { %13664 = vmatpush3.bf16.msra.mxu1 %v14976_v61  ;;  %v15014_v61 = vld [vmem:[%s19893_s2 + $0x4] ss:$12 sps:$4 sm:$0xff]  }
  0x61   : > { %13665 = vmatprep.subr.bf16.mxu1 %v14980_v63  ;;  %v15012_v63 = vld [vmem:[%s19893_s2] ss:$12 sps:$4 sm:$0xff]  }
  0x62   : > { %1220 = vmatpush1.bf16.msra.mxu0 %v14943_v39 }
  0x63   : > { %1221 = vmatprep.subr.bf16.mxu0 %v14948_v40  ;;  %v14996_v40 = vld [vmem:[%s19893_s2 + $0x390] ss:$12 sps:$4 sm:$0xff]  }
  0x64   : > { %13666 = vmatpush3.bf16.msra.mxu1 %v14981_v2  ;;  %v15019_v2 = vld [vmem:[%s19893_s2 + $0x1c] ss:$12 sps:$4 sm:$0xff]  }
  0x65   : > { %13667 = vmatprep.subr.bf16.mxu1 %v14985_v4 }
  0x66   : > { %1222 = vmatpush1.bf16.msra.mxu0 %v14946_v41  ;;  %v15002_v41 = vld [vmem:[%s19893_s2 + $0x3ac] ss:$12 sps:$4 sm:$0xff]  }
  0x67   : > { %1223 = vmatprep.subr.bf16.mxu0 %v14951_v42 }
  0x68   : > { %13668 = vmatpush3.bf16.msra.mxu1 %v14986_v6  ;;  %v15021_v6 = vld [vmem:[%s19893_s2 + $0x20] ss:$12 sps:$4 sm:$0xff]  }
  0x69   : > { %13669 = vmatprep.subr.bf16.mxu1 %v14990_v8  ;;  %v15025_v8 = vld [vmem:[%s19893_s2 + $0xf8] ss:$12 sps:$4 sm:$0xff]  }
  0x6a   : > { %1224 = vmatpush1.bf16.msra.mxu0 %v14949_v43 }
  0x6b   : > { %1225 = vmatprep.subr.bf16.mxu0 %v14954_v44  ;;  %v15003_v44 = vld [vmem:[%s19893_s2 + $0x3b0] ss:$12 sps:$4 sm:$0xff]  }
  0x6c   : > { %13670 = vmatpush3.bf16.msra.mxu1 %v14991_v10  ;;  %v15026_v10 = vld [vmem:[%s19893_s2 + $0x38] ss:$12 sps:$4 sm:$0xff]  }
  0x6d   : > { %14360 = vmatprep.subr.bf16.mxu1 %v14995_v12 }
  0x6e   : > { %1226 = vmatpush1.bf16.msra.mxu0 %v14952_v45 }
  0x6f   : > { %1227 = vmatprep.subr.bf16.mxu0 %v14959_v46 }
  0x72   : > { %1228 = vmatpush1.bf16.msra.mxu0 %v14957_v48 }
  0x73   : > { %1229 = vmatprep.subr.bf16.mxu0 %v14964_v51 }
  0x76   : > { %1230 = vmatpush1.bf16.msra.mxu0 %v14962_v50  ;;  %v15000_v50 = vld [vmem:[%s19893_s2 + $0x3a8] ss:$12 sps:$4 sm:$0xff]  }
  0x77   : > { %1231 = vmatprep.subr.bf16.mxu0 %v14969_v55  ;;  %v15007_v55 = vld [vmem:[%s19893_s2 + $0x3c8] ss:$12 sps:$4 sm:$0xff]  }
  0x7a   : > { %1232 = vmatpush1.bf16.msra.mxu0 %v14967_v54  ;;  %v15006_v54 = vld [vmem:[%s19893_s2 + $0x3c4] ss:$12 sps:$4 sm:$0xff]  }
  0x7b   : > { %1233 = vmatprep.subr.bf16.mxu0 %v14974_v58  ;;  %v15010_v58 = vld [vmem:[%s19893_s2 + $0x3dc] ss:$12 sps:$4 sm:$0xff]  }
  0x7e   : > { %1234 = vmatpush1.bf16.msra.mxu0 %v14972_v60  ;;  %v15008_v60 = vld [vmem:[%s19893_s2 + $0x3d8] ss:$12 sps:$4 sm:$0xff]  }
  0x7f   : > { %1235 = vmatprep.subr.bf16.mxu0 %v14979_v62  ;;  %v15015_v62 = vld [vmem:[%s19893_s2 + $0xc8] ss:$12 sps:$4 sm:$0xff]  }
  0x82   : > { %1236 = vmatpush1.bf16.msra.mxu0 %v14977_v0  ;;  %v15016_v0 = vld [vmem:[%s19893_s2 + $0x8] ss:$12 sps:$4 sm:$0xff]  }
  0x83   : > { %1237 = vmatprep.subr.bf16.mxu0 %v14984_v3  ;;  %v15020_v3 = vld [vmem:[%s19893_s2 + $0xe0] ss:$12 sps:$4 sm:$0xff]  }
  0x86   : > { %1238 = vmatpush1.bf16.msra.mxu0 %v14982_v5  ;;  %v15017_v5 = vld [vmem:[%s19893_s2 + $0x18] ss:$12 sps:$4 sm:$0xff]  }
  0x87   : > { %1239 = vmatprep.subr.bf16.mxu0 %v14989_v7  ;;  %v15024_v7 = vld [vmem:[%s19893_s2 + $0x34] ss:$12 sps:$4 sm:$0xff]  }
  0x8a   : > { %1240 = vmatpush1.bf16.msra.mxu0 %v14987_v9  ;;  %v15022_v9 = vld [vmem:[%s19893_s2 + $0x30] ss:$12 sps:$4 sm:$0xff]  }
  0x8b   : > { %1260 = vmatprep.subr.bf16.mxu0 %v14994_v11  ;;  %v15029_v11 = vld [vmem:[%s19893_s2 + $0x4c] ss:$12 sps:$4 sm:$0xff]  }
 0x108   : > { %v503_v13 = vpop.f32.mrb[0].mxu0 }
 0x109   : > { %v505_v14 = vpop.f32.mrb[1].mxu0 }
 0x10a   : > { %v507_v15 = vpop.f32.mrb[2].mxu0  ;;  %v16532_v21 = vpop.f32.mrb[0].mxu1 }
 0x10b   : > { %v16528_v16 = vpack.c.bf16 %v507_v15, %v503_v13  ;;  %v509_v18 = vpop.f32.mrb[3].mxu0  ;;  %v554_v24 = vpop.f32.mrb[1].mxu1  ;;  %v15027_v13 = vld [vmem:[%s19893_s2 + $0x48] ss:$12 sps:$4 sm:$0xff]   ;;  %v15034_v15 = vld [vmem:[%s19893_s2 + $0x64] ss:$12 sps:$4 sm:$0xff]  }
 0x10c   : > { %v16530_v19 = vpack.c.bf16 %v509_v18, %v505_v14  ;;  %v14343_v26 = vpop.f32.mrb[2].mxu1  ;;  %v15031_v14 = vld [vmem:[%s19893_s2 + $0x50] ss:$12 sps:$4 sm:$0xff]   ;;  %v15035_v18 = vld [vmem:[%s19893_s2 + $0x128] ss:$12 sps:$4 sm:$0xff]  }
 0x10d   : > { %v557_v28 = vpop.f32.mrb[3].mxu1  ;;  %v15036_v26 = vld [vmem:[%s19893_s2 + $0x68] ss:$12 sps:$4 sm:$0xff]  }
 0x10e   : > { %v16538_v30 = vpack.c.bf16 %v557_v28, %v554_v24  ;;  %v15032_v24 = vld [vmem:[%s19893_s2 + $0x60] ss:$12 sps:$4 sm:$0xff]   ;;  %v15037_v28 = vld [vmem:[%s19893_s2 + $0x78] ss:$12 sps:$4 sm:$0xff]  }
 0x110   : > { %v16534_v23 = vpop.f32.mrb[4].mxu0 }
 0x111   : > { %v16536_v25 = vpop.f32.mrb[5].mxu0 }
 0x112   : > { %v517_v27 = vpop.f32.mrb[6].mxu0 }
 0x113   : > { %v518_v29 = vpop.f32.mrb[7].mxu0  ;;  %v15039_v27 = vld [vmem:[%s19893_s2 + $0x7c] ss:$12 sps:$4 sm:$0xff]  }
 0x114   : > { %v15041_v29 = vld [vmem:[%s19893_s2 + $0x80] ss:$12 sps:$4 sm:$0xff]  }
 0x120   : > { %v710_v31 = vpop.f32.mrb[8].mxu0 }
 0x121   : > { %v712_v32 = vpop.f32.mrb[9].mxu0 }
 0x122   : > { %v714_v33 = vpop.f32.mrb[10].mxu0  ;;  %v14358_v42 = vpop.f32.mrb[4].mxu1 }
 0x123   : > { %v775_v35 = vpack.c.bf16 %v714_v33, %v710_v31  ;;  %v716_v36 = vpop.f32.mrb[11].mxu0  ;;  %v761_v45 = vpop.f32.mrb[5].mxu1  ;;  %v780_v4 = vpack.c.bf16 %v14358_v42, %v14358_v42  ;;  %v15044_v31 = vld [vmem:[%s19893_s2 + $0x94] ss:$12 sps:$4 sm:$0xff]   ;;  %v15042_v33 = vld [vmem:[%s19893_s2 + $0x90] ss:$12 sps:$4 sm:$0xff]  }
 0x124   : > { %v776_v39 = vpack.c.bf16 %v716_v36, %v712_v32  ;;  %v14359_v47 = vpop.f32.mrb[6].mxu1  ;;  %v15045_v32 = vld [vmem:[%s19893_s2 + $0x158] ss:$12 sps:$4 sm:$0xff]   ;;  %v15050_v36 = vld [vmem:[%s19893_s2 + $0x170] ss:$12 sps:$4 sm:$0xff]  }
 0x125   : > { %v764_v51 = vpop.f32.mrb[7].mxu1  ;;  %v15058_v42 = vld [vmem:[%s19893_s2 + $0xdc] ss:$12 sps:$4 sm:$0xff]   ;;  %v15063_v47 = vld [vmem:[%s19893_s2 + $0x1b8] ss:$12 sps:$4 sm:$0xff]  }
 0x126   : > { %1241 = vmatprep.mubr.bf16.mxu0 %v776_v39  ;;  %1343 = vmatprep.mubr.bf16.mxu1 %v776_v39  ;;  %v777_v56 = vpack.c.bf16 %v764_v51, %v761_v45  ;;  %v15054_v39 = vld [vmem:[%s19893_s2 + $0xc4] ss:$12 sps:$4 sm:$0xff]   ;;  %v16703_v45 = vpack.c.bf16 %v16536_v25, %v16536_v25  ;;  %v15064_v51 = vld [vmem:[%s19893_s2 + $0x108] ss:$12 sps:$4 sm:$0xff]  }
 0x127   : > { %1242 = vmatmul.mubr.bf16.vlgmr.msra.gmra.mrb[16].mxu0 %v775_v35  ;;  %1344 = vmatmul.mubr.bf16.vlgmr.msra.gmra.mrb[8].mxu1 %v775_v35  ;;  %v15049_v35 = vld [vmem:[%s19893_s2 + $0xac] ss:$12 sps:$4 sm:$0xff]   ;;  %v15060_v25 = vld [vmem:[%s19893_s2 + $0xf0] ss:$12 sps:$4 sm:$0xff]  }
 0x128   : > { %1261 = vmatpush1.bf16.msra.mxu0 %v14992_v34  ;;  %14361 = vmatpush3.bf16.msra.mxu1 %v14995_v12  ;;  %v720_v43 = vpop.f32.mrb[12].mxu0  ;;  %v15030_v12 = vld [vmem:[%s19893_s2 + $0x110] ss:$12 sps:$4 sm:$0xff]   ;;  %v15046_v34 = vld [vmem:[%s19893_s2 + $0x98] ss:$12 sps:$4 sm:$0xff]  }
 0x129   : > { %1262 = vmatprep.subr.bf16.mxu0 %v14998_v37  ;;  %14362 = vmatprep.subr.bf16.mxu1 %v14999_v38  ;;  %v722_v46 = vpop.f32.mrb[13].mxu0  ;;  %v778_v52 = vpack.c.bf16 %v720_v43, %v720_v43  ;;  %v15047_v37 = vld [vmem:[%s19893_s2 + $0xa8] ss:$12 sps:$4 sm:$0xff]   ;;  %v15059_v43 = vld [vmem:[%s19893_s2 + $0x1a0] ss:$12 sps:$4 sm:$0xff]  }
 0x12a   : > { %v779_v48 = vpack.c.bf16 %v722_v46, %v722_v46  ;;  %v724_v49 = vpop.f32.mrb[14].mxu0  ;;  %v15062_v46 = vld [vmem:[%s19893_s2 + $0xf4] ss:$12 sps:$4 sm:$0xff]  }
 0x12b   : > { %v725_v53 = vpop.f32.mrb[15].mxu0  ;;  %v15067_v49 = vld [vmem:[%s19893_s2 + $0x1d0] ss:$12 sps:$4 sm:$0xff]  }
 0x12c   : > { %1263 = vmatpush1.bf16.msra.mxu0 %v14996_v40  ;;  %14363 = vmatpush3.bf16.msra.mxu1 %v14999_v38  ;;  %v15051_v38 = vld [vmem:[%s19893_s2 + $0xb0] ss:$12 sps:$4 sm:$0xff]   ;;  %v15055_v40 = vld [vmem:[%s19893_s2 + $0x188] ss:$12 sps:$4 sm:$0xff]  }
 0x12d   : > { %1251 = vmatprep.mubr.bf16.mxu0 %v779_v48  ;;  %1264 = vmatprep.subr.bf16.mxu0 %v15002_v41  ;;  %v15052_v41 = vld [vmem:[%s19893_s2 + $0xc0] ss:$12 sps:$4 sm:$0xff]   ;;  %v15071_v53 = vld [vmem:[%s19893_s2 + $0x1e8] ss:$12 sps:$4 sm:$0xff]  }
 0x12e   : > { %1351 = vmatprep.mubr.bf16.mxu1 %v779_v48  ;;  %14364 = vmatprep.subr.bf16.mxu1 %v15003_v44  ;;  %v15066_v48 = vld [vmem:[%s19893_s2 + $0x10c] ss:$12 sps:$4 sm:$0xff]  }
 0x12f   : > { %1252 = vmatmul.mubr.bf16.gmra.mrb[20].mxu0 %v778_v52  ;;  %1352 = vmatmul.mubr.bf16.gmra.mrb[12].mxu1 %v778_v52  ;;  %v15070_v52 = vld [vmem:[%s19893_s2 + $0x124] ss:$12 sps:$4 sm:$0xff]  }
 0x130   : > { %1265 = vmatpush1.bf16.msra.mxu0 %v15000_v50  ;;  %14365 = vmatpush3.bf16.msra.mxu1 %v15003_v44  ;;  %v15056_v44 = vld [vmem:[%s19893_s2 + $0xd8] ss:$12 sps:$4 sm:$0xff]   ;;  %v16724_v50 = vpack.c.bf16 %v16534_v23, %v16534_v23  ;;  %v15068_v23 = vld [vmem:[%s19893_s2 + $0x120] ss:$12 sps:$4 sm:$0xff]  }
 0x131   : > { %1266 = vmatprep.subr.bf16.mxu0 %v15006_v54  ;;  %14366 = vmatprep.subr.bf16.mxu1 %v15007_v55  ;;  %v15074_v54 = vld [vmem:[%s19893_s2 + $0x13c] ss:$12 sps:$4 sm:$0xff]  }
 0x132   : > { %14370 = vmatprep.mubr.msk.bf16.mxu1 %vm1202_vm2, %v777_v56  ;;  %1292 = vmatprep.mubr.bf16.mxu0 %v16210_v1 }
 0x134   : > { %1267 = vmatpush1.bf16.msra.mxu0 %v15004_v57  ;;  %14367 = vmatpush3.bf16.msra.mxu1 %v15007_v55  ;;  %v15072_v55 = vld [vmem:[%s19893_s2 + $0x138] ss:$12 sps:$4 sm:$0xff]   ;;  %v16752_v57 = vpack.c.bf16 %v16532_v21, %v16532_v21  ;;  %v16100_v21 = vld [vmem:[%s16322_s27 + $0x1c] ss:$12 sps:$4 sm:$0xff]  }
 0x135   : > { %1268 = vmatprep.subr.bf16.mxu0 %v15010_v58  ;;  %14368 = vmatprep.subr.bf16.mxu1 %v15011_v59  ;;  %v16098_v58 = vld [vmem:[%s16322_s27 + $0x4] ss:$12 sps:$4 sm:$0xff]  }
 0x138   : > { %1269 = vmatpush1.bf16.msra.mxu0 %v15008_v60  ;;  %14369 = vmatpush3.bf16.msra.mxu1 %v15011_v59  ;;  %v15075_v59 = vld [vmem:[%s19893_s2 + $0x150] ss:$12 sps:$4 sm:$0xff]   ;;  %v15080_v60 = vld [vmem:[%s19893_s2 + $0x16c] ss:$12 sps:$4 sm:$0xff]  }
 0x139   : > { %1749 = vmatprep.subr.bf16.mxu0 %v15014_v61  ;;  %13690 = vmatprep.subr.bf16.mxu1 %v15015_v62  ;;  %v16099_v61 = vld [vmem:[%s16322_s27] ss:$12 sps:$4 sm:$0xff]   ;;  %v15078_v62 = vld [vmem:[%s19893_s2 + $0x168] ss:$12 sps:$4 sm:$0xff]  }
 0x13b   : > { %11630 = vmatmul.mubr.msk.bf16.vlgmr.msra.gmra.mrb[16].mxu0 %vm1202_vm2, %v777_v56  ;;  %14371 = vmatmul.mubr.msk.bf16.vlgmr.msra.gmra.mrb[16].mxu1 %vm1202_vm2, %v780_v4  ;;  %v15077_v56 = vld [vmem:[%s19893_s2 + $0x154] ss:$12 sps:$4 sm:$0xff]  }
 0x13c   : > { %1750 = vmatpush1.bf16.msra.mxu0 %v15012_v63  ;;  %13691 = vmatpush3.bf16.msra.mxu1 %v15016_v0  ;;  %v15083_v63 = vld [vmem:[%s19893_s2 + $0x184] ss:$12 sps:$4 sm:$0xff]  }
 0x13d   : > { %1883 = vmatprep.mubr.bf16.mxu1 %v16530_v19  ;;  %1751 = vmatprep.subr.bf16.mxu0 %v15019_v2  ;;  %v16101_v0 = vld [vmem:[%s16322_s27 + $0x18] ss:$12 sps:$4 sm:$0xff]   ;;  %v16102_v2 = vld [vmem:[%s16322_s27 + $0x34] ss:$12 sps:$4 sm:$0xff]  }
 0x13e   : > { %13692 = vmatprep.subr.bf16.mxu1 %v15020_v3  ;;  %1302 = vmatprep.mubr.bf16.mxu0 %v16210_v1  ;;  %v15081_v3 = vld [vmem:[%s19893_s2 + $0x180] ss:$12 sps:$4 sm:$0xff]  }
 0x140   : > { %1752 = vmatpush1.bf16.msra.mxu0 %v15017_v5  ;;  %13693 = vmatpush3.bf16.msra.mxu1 %v15021_v6  ;;  %v16103_v5 = vld [vmem:[%s16322_s27 + $0x30] ss:$12 sps:$4 sm:$0xff]   ;;  %v16104_v6 = vld [vmem:[%s16322_s27 + $0x4c] ss:$12 sps:$4 sm:$0xff]  }
 0x141   : > { %1753 = vmatprep.subr.bf16.mxu0 %v15024_v7  ;;  %13694 = vmatprep.subr.bf16.mxu1 %v15025_v8  ;;  %v15084_v7 = vld [vmem:[%s19893_s2 + $0x198] ss:$12 sps:$4 sm:$0xff]   ;;  %v15089_v8 = vld [vmem:[%s19893_s2 + $0x1b4] ss:$12 sps:$4 sm:$0xff]  }
 0x143   : > { %11631 = vmatmul.mubr.msk.bf16.gmra.mrb[24].mxu0 %vm1202_vm2, %v780_v4  ;;  %v15086_v4 = vld [vmem:[%s19893_s2 + $0x19c] ss:$12 sps:$4 sm:$0xff]  }
 0x144   : > { %1754 = vmatpush1.bf16.msra.mxu0 %v15022_v9  ;;  %1781 = vmatprep.mubr.bf16.mxu0 %v16530_v19  ;;  %v15040_v19 = vld [vmem:[%s19893_s2 + $0x140] ss:$12 sps:$4 sm:$0xff]   ;;  %v16105_v9 = vld [vmem:[%s16322_s27 + $0x48] ss:$12 sps:$4 sm:$0xff]  }
 0x145   : > { %13695 = vmatpush3.bf16.msra.mxu1 %v15026_v10  ;;  %1755 = vmatprep.subr.bf16.mxu0 %v15029_v11  ;;  %v16106_v10 = vld [vmem:[%s16322_s27 + $0x64] ss:$12 sps:$4 sm:$0xff]  }
 0x146   : > { %13696 = vmatprep.subr.bf16.mxu1 %v15030_v12  ;;  %v15087_v11 = vld [vmem:[%s19893_s2 + $0x1b0] ss:$12 sps:$4 sm:$0xff]   ;;  %v16107_v12 = vld [vmem:[%s16322_s27 + $0x60] ss:$12 sps:$4 sm:$0xff]  }
 0x148   : > { %1756 = vmatpush1.bf16.msra.mxu0 %v15027_v13  ;;  %v15090_v13 = vld [vmem:[%s19893_s2 + $0x1c8] ss:$12 sps:$4 sm:$0xff]  }
 0x149   : > { %13697 = vmatpush3.bf16.msra.mxu1 %v15031_v14  ;;  %1757 = vmatprep.subr.bf16.mxu0 %v15034_v15  ;;  %v15093_v14 = vld [vmem:[%s19892_s1 + $0x18] sm:$0xff]   ;;  %v15096_v15 = vld [vmem:[%s19893_s2 + $0x1e4] ss:$12 sps:$4 sm:$0xff]  }
 0x14a   : > { %13698 = vmatprep.subr.bf16.mxu1 %v15035_v18  ;;  %v16108_v18 = vld [vmem:[%s16322_s27 + $0x8] ss:$12 sps:$4 sm:$0xff]  }
 0x14c   : > { %1758 = vmatpush1.bf16.msra.mxu0 %v15032_v24  ;;  %v15094_v24 = vld [vmem:[%s19893_s2 + $0x1e0] ss:$12 sps:$4 sm:$0xff]  }
 0x14d   : > { %13699 = vmatpush3.bf16.msra.mxu1 %v15036_v26  ;;  %1759 = vmatprep.subr.bf16.mxu0 %v15039_v27  ;;  %v16109_v26 = vld [vmem:[%s16322_s27 + $0x20] ss:$12 sps:$4 sm:$0xff]  }
 0x14e   : > { %13700 = vmatprep.subr.bf16.mxu1 %v15040_v19  ;;  %v15097_v27 = vld [vmem:[%s19892_s1 + $0x20] ss:$0 sps:$4 sm:$0x33]   ;;  %v16110_v19 = vld [vmem:[%s16322_s27 + $0x38] ss:$12 sps:$4 sm:$0xff]  }
 0x150   : > { %1760 = vmatpush1.bf16.msra.mxu0 %v15037_v28  ;;  %v16111_v28 = vld [vmem:[%s16322_s27 + $0x50] ss:$12 sps:$4 sm:$0xff]  }
 0x151   : > { %13701 = vmatpush3.bf16.msra.mxu1 %v15041_v29  ;;  %1761 = vmatprep.subr.bf16.mxu0 %v15044_v31  ;;  %v16112_v29 = vld [vmem:[%s16322_s27 + $0x68] ss:$12 sps:$4 sm:$0xff]  }
 0x152   : > { %13702 = vmatprep.subr.bf16.mxu1 %v15045_v32  ;;  %v15100_v31 = vld [vmem:[%s19893_s2 + $0x3f4] ss:$12 sps:$4 sm:$0xff]  }
 0x153   : > { %v16113_v32 = vld [vmem:[%s16322_s27 + $0x80] ss:$0 sps:$4 sm:$0x33]  }
 0x154   : > { %1762 = vmatpush1.bf16.msra.mxu0 %v15042_v33  ;;  %v15103_v33 = vld [vmem:[%s19893_s2 + $0x40c] ss:$12 sps:$4 sm:$0xff]  }
 0x155   : > { %13703 = vmatpush3.bf16.msra.mxu1 %v15046_v34  ;;  %1763 = vmatprep.subr.bf16.mxu0 %v15049_v35  ;;  %v15101_v34 = vld [vmem:[%s19893_s2 + $0x408] ss:$12 sps:$4 sm:$0xff]   ;;  %v15106_v35 = vld [vmem:[%s19893_s2 + $0x424] ss:$12 sps:$4 sm:$0xff]  }
 0x156   : > { %13704 = vmatprep.subr.bf16.mxu1 %v15050_v36  ;;  %v15104_v36 = vld [vmem:[%s19893_s2 + $0x420] ss:$12 sps:$4 sm:$0xff]  }
 0x158   : > { %1764 = vmatpush1.bf16.msra.mxu0 %v15047_v37  ;;  %v15109_v37 = vld [vmem:[%s19893_s2 + $0x43c] ss:$12 sps:$4 sm:$0xff]  }
 0x159   : > { %13705 = vmatpush3.bf16.msra.mxu1 %v15051_v38  ;;  %1765 = vmatprep.subr.bf16.mxu0 %v15054_v39  ;;  %v15107_v38 = vld [vmem:[%s19893_s2 + $0x438] ss:$12 sps:$4 sm:$0xff]   ;;  %v15112_v39 = vld [vmem:[%s19893_s2 + $0x454] ss:$12 sps:$4 sm:$0xff]  }
 0x15a   : > { %14374 = vmatprep.subr.bf16.mxu1 %v15055_v40 }
 0x15c   : > { %1884 = vmatmul.mubr.bf16.vlgmr.msra.gmra.mrb[20].mxu1 %v16528_v16  ;;  %1766 = vmatpush1.bf16.msra.mxu0 %v15052_v41  ;;  %v15113_v41 = vld [vmem:[%s19893_s2 + $0x468] ss:$12 sps:$4 sm:$0xff]  }
 0x15d   : > { %1891 = vmatprep.mubr.bf16.mxu1 %v16703_v45  ;;  %14375 = vmatpush3.bf16.msra.mxu1 %v15055_v40  ;;  %v15110_v40 = vld [vmem:[%s19893_s2 + $0x450] ss:$12 sps:$4 sm:$0xff]  }
 0x15e   : > { %1767 = vmatprep.subr.bf16.mxu0 %v15058_v42  ;;  %14376 = vmatprep.subr.bf16.mxu1 %v15059_v43  ;;  %v15115_v42 = vld [vmem:[%s19893_s2 + $0x46c] ss:$12 sps:$4 sm:$0xff]  }
 0x160   : > { %1768 = vmatpush1.bf16.msra.mxu0 %v15056_v44  ;;  %v15116_v44 = vld [vmem:[%s19893_s2 + $0x480] ss:$12 sps:$4 sm:$0xff]  }
 0x161   : > { %14377 = vmatpush3.bf16.msra.mxu1 %v15059_v43  ;;  %1769 = vmatprep.subr.bf16.mxu0 %v15062_v46  ;;  %v15118_v43 = vld [vmem:[%s19893_s2 + $0x484] ss:$12 sps:$4 sm:$0xff]   ;;  %v15121_v46 = vld [vmem:[%s19893_s2 + $0x49c] ss:$12 sps:$4 sm:$0xff]  }
 0x162   : > { %14378 = vmatprep.subr.bf16.mxu1 %v15063_v47 }
 0x164   : > { %1892 = vmatmul.mubr.bf16.gmra.mrb[24].mxu1 %v16724_v50  ;;  %1770 = vmatpush1.bf16.msra.mxu0 %v15060_v25  ;;  %v15125_v25 = vld [vmem:[%s19893_s2 + $0x4b8] ss:$12 sps:$4 sm:$0xff]  }
 0x165   : > { %14379 = vmatpush3.bf16.msra.mxu1 %v15063_v47  ;;  %14384 = vmatprep.mubr.msk.bf16.mxu1 %vm1202_vm2, %v16538_v30  ;;  %v15124_v47 = vld [vmem:[%s19893_s2 + $0x4b4] ss:$12 sps:$4 sm:$0xff]  }
 0x166   : > { %1771 = vmatprep.subr.bf16.mxu0 %v15066_v48  ;;  %14380 = vmatprep.subr.bf16.mxu1 %v15067_v49  ;;  %v15122_v48 = vld [vmem:[%s19893_s2 + $0x4b0] ss:$12 sps:$4 sm:$0xff]  }
 0x168   : > { %1772 = vmatpush1.bf16.msra.mxu0 %v15064_v51  ;;  %v15130_v51 = vld [vmem:[%s19893_s2 + $0x4d0] ss:$12 sps:$4 sm:$0xff]  }
 0x169   : > { %14381 = vmatpush3.bf16.msra.mxu1 %v15067_v49  ;;  %1773 = vmatprep.subr.bf16.mxu0 %v15070_v52  ;;  %v15126_v49 = vld [vmem:[%s19893_s2 + $0x3f8] ss:$12 sps:$4 sm:$0xff]   ;;  %v15127_v52 = vld [vmem:[%s19893_s2 + $0x4c8] ss:$12 sps:$4 sm:$0xff]  }
 0x16a   : > { %14382 = vmatprep.subr.bf16.mxu1 %v15071_v53 }
 0x16c   : > { %1774 = vmatpush1.bf16.msra.mxu0 %v15068_v23  ;;  %v15132_v23 = vld [vmem:[%s19893_s2 + $0x4e0] ss:$12 sps:$4 sm:$0xff]  }
 0x16d   : > { %14383 = vmatpush3.bf16.msra.mxu1 %v15071_v53  ;;  %1775 = vmatprep.subr.bf16.mxu0 %v15074_v54  ;;  %v15131_v53 = vld [vmem:[%s19893_s2 + $0x410] ss:$12 sps:$4 sm:$0xff]  }
 0x16e   : > { %1965 = vmatprep.subr.bf16.mxu1 %v16098_v58  ;;  %v15134_v54 = vld [vmem:[%s19893_s2 + $0x4e4] ss:$12 sps:$4 sm:$0xff]   ;;  %v15140_v58 = vld [vmem:[%s19893_s2 + $0x500] ss:$12 sps:$4 sm:$0xff]  }
 0x170   : > { %14385 = vmatmul.mubr.msk.bf16.vlgmr.msra.gmra.mrb[28].mxu1 %vm1202_vm2, %v16752_v57  ;;  %1776 = vmatpush1.bf16.msra.mxu0 %v15072_v55  ;;  %v15135_v55 = vld [vmem:[%s19893_s2 + $0x4e8] ss:$12 sps:$4 sm:$0xff]  }
 0x171   : > { %1966 = vmatpush1.bf16.msra.mxu1 %v16099_v61  ;;  %1777 = vmatprep.subr.bf16.mxu0 %v15077_v56  ;;  %v15136_v56 = vld [vmem:[%s19893_s2 + $0x428] ss:$12 sps:$4 sm:$0xff]  }
 0x172   : > { %1967 = vmatprep.subr.bf16.mxu1 %v16100_v21  ;;  %1997 = vmatprep.mubr.bf16.mxu1 %v16210_v1  ;;  %v15144_v61 = vld [vmem:[%s19893_s2 + $0x514] ss:$12 sps:$4 sm:$0xff]   ;;  %v15145_v21 = vld [vmem:[%s19893_s2 + $0x518] ss:$12 sps:$4 sm:$0xff]  }
 0x174   : > { %1778 = vmatpush1.bf16.msra.mxu0 %v15075_v59  ;;  %v15137_v59 = vld [vmem:[%s19893_s2 + $0x4f8] ss:$12 sps:$4 sm:$0xff]  }
 0x175   : > { %1968 = vmatpush1.bf16.msra.mxu1 %v16101_v0  ;;  %1779 = vmatprep.subr.bf16.mxu0 %v15080_v60  ;;  %v15141_v60 = vld [vmem:[%s19893_s2 + $0x440] ss:$12 sps:$4 sm:$0xff]  }
 0x176   : > { %1969 = vmatprep.subr.bf16.mxu1 %v16102_v2  ;;  %v15149_v0 = vld [vmem:[%s19893_s2 + $0x52c] ss:$12 sps:$4 sm:$0xff]   ;;  %v15150_v2 = vld [vmem:[%s19893_s2 + $0x530] ss:$12 sps:$4 sm:$0xff]  }
 0x178   : > { %1780 = vmatpush1.bf16.msra.mxu0 %v15078_v62  ;;  %v15142_v62 = vld [vmem:[%s19893_s2 + $0x510] ss:$12 sps:$4 sm:$0xff]  }
 0x179   : > { %1970 = vmatpush1.bf16.msra.mxu1 %v16103_v5  ;;  %1800 = vmatprep.subr.bf16.mxu0 %v15083_v63  ;;  %v15146_v63 = vld [vmem:[%s19893_s2 + $0x458] ss:$12 sps:$4 sm:$0xff]  }
 0x17a   : > { %1971 = vmatprep.subr.bf16.mxu1 %v16104_v6  ;;  %v15154_v5 = vld [vmem:[%s19893_s2 + $0x544] ss:$12 sps:$4 sm:$0xff]   ;;  %v15155_v6 = vld [vmem:[%s19893_s2 + $0x548] ss:$12 sps:$4 sm:$0xff]  }
 0x17b   : > { %1782 = vmatmul.mubr.bf16.vlgmr.msra.gmra.mrb[16].mxu0 %v16528_v16  ;;  %v15092_v16 = vld [vmem:[%s19893_s2 + $0x1cc] ss:$12 sps:$4 sm:$0xff]  }
 0x17c   : > { %1791 = vmatprep.mubr.bf16.mxu0 %v16703_v45  ;;  %1801 = vmatpush1.bf16.msra.mxu0 %v15081_v3  ;;  %v15119_v45 = vld [vmem:[%s19893_s2 + $0x498] ss:$12 sps:$4 sm:$0xff]   ;;  %v15147_v3 = vld [vmem:[%s19893_s2 + $0x528] ss:$12 sps:$4 sm:$0xff]  }
 0x17d   : > { %1972 = vmatpush1.bf16.msra.mxu1 %v16105_v9  ;;  %1802 = vmatprep.subr.bf16.mxu0 %v15086_v4  ;;  %v15151_v4 = vld [vmem:[%s19893_s2 + $0x470] ss:$12 sps:$4 sm:$0xff]  }
 0x17e   : > { %1973 = vmatprep.subr.bf16.mxu1 %v16106_v10  ;;  %v15159_v9 = vld [vmem:[%s19893_s2 + $0x55c] ss:$12 sps:$4 sm:$0xff]   ;;  %v15160_v10 = vld [vmem:[%s19893_s2 + $0x560] ss:$12 sps:$4 sm:$0xff]  }
 0x180   : > { %1803 = vmatpush1.bf16.msra.mxu0 %v15084_v7  ;;  %v15152_v7 = vld [vmem:[%s19893_s2 + $0x540] ss:$12 sps:$4 sm:$0xff]  }
 0x181   : > { %1974 = vmatpush1.bf16.msra.mxu1 %v16107_v12  ;;  %1804 = vmatprep.subr.bf16.mxu0 %v15089_v8  ;;  %v15156_v8 = vld [vmem:[%s19893_s2 + $0x488] ss:$12 sps:$4 sm:$0xff]  }
 0x182   : > { %11706 = vmatprep.subr.msk.bf16.mxu1 %vm459_vm1, %v16339_v17  ;;  %v15164_v12 = vld [vmem:[%s19893_s2 + $0x574] ss:$12 sps:$4 sm:$0xff]  }
 0x183   : > { %1792 = vmatmul.mubr.bf16.gmra.mrb[28].mxu0 %v16724_v50  ;;  %v15129_v50 = vld [vmem:[%s19893_s2 + $0x4cc] ss:$12 sps:$4 sm:$0xff]  }
 0x184   : > { %1805 = vmatpush1.bf16.msra.mxu0 %v15087_v11  ;;  %1832 = vmatprep.mubr.bf16.mxu0 %v16210_v1  ;;  %v15157_v11 = vld [vmem:[%s19893_s2 + $0x558] ss:$12 sps:$4 sm:$0xff]  }
 0x185   : > { %1976 = vmatpush1.bf16.msra.mxu1 %v16345_v20  ;;  %1806 = vmatprep.subr.bf16.mxu0 %v15092_v16  ;;  %v15161_v16 = vld [vmem:[%s19893_s2 + $0x4a0] ss:$12 sps:$4 sm:$0xff]  }
 0x186   : > { %14388 = vmatprep.subr.bf16.mxu1 %v16108_v18 }
 0x188   : > { %11707 = vmatmul.mubr.msk.bf16.vlgmr.msra.gmra.mrb[32].mxu1 %vm452_vm0, %v15093_v14  ;;  %1807 = vmatpush1.bf16.msra.mxu0 %v15090_v13  ;;  %v16987_v13 = vld [vmem:[%s19893_s2 + $0x578] ss:$12 sps:$4 sm:$0xff]  }
 0x189   : > { %14389 = vmatpush3.bf16.msra.mxu1 %v16108_v18  ;;  %1808 = vmatprep.subr.bf16.mxu0 %v15096_v15 }
 0x18a   : > { %14390 = vmatprep.subr.bf16.mxu1 %v16109_v26  ;;  %2007 = vmatprep.mubr.bf16.mxu1 %v16210_v1 }
 0x18c   : > { %1809 = vmatpush1.bf16.msra.mxu0 %v15094_v24 }
 0x18d   : > { %14391 = vmatpush3.bf16.msra.mxu1 %v16109_v26  ;;  %2497 = vmatprep.subr.bf16.mxu0 %v15100_v31 }
 0x18e   : > { %14392 = vmatprep.subr.bf16.mxu1 %v16110_v19 }
 0x18f   : > { %11697 = vmatmul.mubr.msk.bf16.vlgmr.msra.gmra.mrb[16].mxu0 %vm1202_vm2, %v16538_v30  ;;  %v15098_v30 = vld [vmem:[%s19893_s2 + $0x3f0] ss:$12 sps:$4 sm:$0xff]  }
 0x190   : > { %11708 = vmatmul.mubr.msk.bf16.gmra.mrb[36].mxu1 %vm452_vm0, %v15097_v27  ;;  %1842 = vmatprep.mubr.bf16.mxu0 %v16210_v1 }
 0x191   : > { %14393 = vmatpush3.bf16.msra.mxu1 %v16110_v19  ;;  %14400 = vmatprep.mubr.msk.bf16.mxu1 %vm452_vm0, %v15093_v14 }
 0x192   : > { %14394 = vmatprep.subr.bf16.mxu1 %v16111_v28  ;;  %2498 = vmatpush1.bf16.msra.mxu0 %v15098_v30 }
 0x193   : > { %2499 = vmatprep.subr.bf16.mxu0 %v15103_v33 }
 0x195   : > { %14395 = vmatpush3.bf16.msra.mxu1 %v16111_v28 }
 0x196   : > { %14396 = vmatprep.subr.bf16.mxu1 %v16112_v29  ;;  %2500 = vmatpush1.bf16.msra.mxu0 %v15101_v34 }
 0x197   : > { %11698 = vmatmul.mubr.msk.bf16.gmra.mrb[32].mxu0 %vm1202_vm2, %v16752_v57  ;;  %2501 = vmatprep.subr.bf16.mxu0 %v15106_v35  ;;  %v15139_v57 = vld [vmem:[%s19893_s2 + $0x4fc] ss:$12 sps:$4 sm:$0xff]  }
 0x199   : > { %14397 = vmatpush3.bf16.msra.mxu1 %v16112_v29 }
 0x19a   : > { %14852 = vmatprep.subr.msk.bf16.mxu1 %vm459_vm1, %v16113_v32  ;;  %2502 = vmatpush1.bf16.msra.mxu0 %v15104_v36 }
 0x19b   : > { %2503 = vmatprep.subr.bf16.mxu0 %v15109_v37 }
 0x19d   : > { %14399 = vmatpush3.bf16.msra.mxu1 %v16352_v22 }
 0x19e   : > { %2504 = vmatpush1.bf16.msra.mxu0 %v15107_v38  ;;  %13733 = vmatprep.subr.bf16.mxu1 %v15125_v25 }
 0x19f   : > { %2505 = vmatprep.subr.bf16.mxu0 %v15112_v39 }
 0x1a0   : > { %14401 = vmatmul.mubr.msk.bf16.vlgmr.msra.gmra.mrb[40].mxu1 %vm452_vm0, %v15097_v27 }
 0x1a1   : > { %13734 = vmatpush3.bf16.msra.mxu1 %v15126_v49 }
 0x1a2   : > { %2506 = vmatpush1.bf16.msra.mxu0 %v15110_v40  ;;  %13735 = vmatprep.subr.bf16.mxu1 %v15130_v51 }
 0x1a3   : > { %2507 = vmatprep.subr.bf16.mxu0 %v15115_v42 }
 0x1a5   : > { %13736 = vmatpush3.bf16.msra.mxu1 %v15131_v53 }
 0x1a6   : > { %2508 = vmatpush1.bf16.msra.mxu0 %v15113_v41  ;;  %13737 = vmatprep.subr.bf16.mxu1 %v15135_v55 }
 0x1a7   : > { %2509 = vmatprep.subr.bf16.mxu0 %v15118_v43 }
 0x1a9   : > { %13738 = vmatpush3.bf16.msra.mxu1 %v15136_v56 }
 0x1aa   : > { %2510 = vmatpush1.bf16.msra.mxu0 %v15116_v44  ;;  %13739 = vmatprep.subr.bf16.mxu1 %v15140_v58 }
 0x1ab   : > { %2511 = vmatprep.subr.bf16.mxu0 %v15121_v46 }
 0x1ad   : > { %13740 = vmatpush3.bf16.msra.mxu1 %v15141_v60 }
 0x1ae   : > { %2512 = vmatpush1.bf16.msra.mxu0 %v15119_v45  ;;  %13741 = vmatprep.subr.bf16.mxu1 %v15145_v21 }
 0x1af   : > { %2513 = vmatprep.subr.bf16.mxu0 %v15124_v47 }
 0x1b1   : > { %13742 = vmatpush3.bf16.msra.mxu1 %v15146_v63 }
 0x1b2   : > { %2514 = vmatpush1.bf16.msra.mxu0 %v15122_v48  ;;  %13743 = vmatprep.subr.bf16.mxu1 %v15150_v2 }
 0x1b3   : > { %2515 = vmatprep.subr.bf16.mxu0 %v15129_v50 }
 0x1b5   : > { %13744 = vmatpush3.bf16.msra.mxu1 %v15151_v4 }
 0x1b6   : > { %2516 = vmatpush1.bf16.msra.mxu0 %v15127_v52  ;;  %13745 = vmatprep.subr.bf16.mxu1 %v15155_v6 }
 0x1b7   : > { %2517 = vmatprep.subr.bf16.mxu0 %v15134_v54 }
 0x1b9   : > { %13746 = vmatpush3.bf16.msra.mxu1 %v15156_v8 }
 0x1ba   : > { %2518 = vmatpush1.bf16.msra.mxu0 %v15132_v23  ;;  %13747 = vmatprep.subr.bf16.mxu1 %v15160_v10 }
 0x1bb   : > { %2519 = vmatprep.subr.bf16.mxu0 %v15139_v57 }
 0x1bd   : > { %13748 = vmatpush3.bf16.msra.mxu1 %v15161_v16 }
 0x1be   : > { %2520 = vmatpush1.bf16.msra.mxu0 %v15137_v59  ;;  %14404 = vmatprep.subr.bf16.mxu1 %v16987_v13 }
 0x1bf   : > { %2521 = vmatprep.subr.bf16.mxu0 %v15144_v61 }
 0x1c2   : > { %2522 = vmatpush1.bf16.msra.mxu0 %v15142_v62 }
 0x1c3   : > { %2523 = vmatprep.subr.bf16.mxu0 %v15149_v0 }
 0x1c6   : > { %2524 = vmatpush1.bf16.msra.mxu0 %v15147_v3 }
 0x1c7   : > { %2525 = vmatprep.subr.bf16.mxu0 %v15154_v5 }
 0x1ca   : > { %2526 = vmatpush1.bf16.msra.mxu0 %v15152_v7 }
 0x1cb   : > { %2527 = vmatprep.subr.bf16.mxu0 %v15159_v9 }
 0x1ce   : > { %2528 = vmatpush1.bf16.msra.mxu0 %v15157_v11 }
 0x1cf   : > { %2548 = vmatprep.subr.bf16.mxu0 %v15164_v12 }
 0x1fa   : > { %v13671_v14 = vpop.f32.mrb[8].mxu1 }
 0x1fb   : > { %v13672_v15 = vpop.f32.mrb[9].mxu1 }
 0x1fc   : > { %v13673_v18 = vadd.f32 %v13672_v15, %v13671_v14  ;;  %v13674_v24 = vpop.f32.mrb[10].mxu1 }
 0x1fd   : > { %v13675_v26 = vpop.f32.mrb[11].mxu1 }
 0x1fe   : > { %v13676_v27 = vadd.f32 %v13675_v26, %v13674_v24  ;;  %v15168_v24 = vld [vmem:[%s19893_s2 + $0x58c] ss:$12 sps:$4 sm:$0xff]   ;;  %v15169_v26 = vld [vmem:[%s19893_s2 + $0x590] ss:$12 sps:$4 sm:$0xff]  }
 0x202   : > { %v1253_v19 = vpop.f32.mrb[20].mxu0  ;;  %v13677_v28 = vpop.f32.mrb[12].mxu1 }
 0x203   : > { %v1255_v29 = vpop.f32.mrb[21].mxu0  ;;  %v13678_v30 = vpop.f32.mrb[13].mxu1 }
 0x204   : > { %v13679_v31 = vadd.f32 %v13678_v30, %v13677_v28  ;;  %v1257_v32 = vpop.f32.mrb[22].mxu0  ;;  %v13680_v33 = vpop.f32.mrb[14].mxu1 }
 0x205   : > { %v1258_v34 = vpop.f32.mrb[23].mxu0  ;;  %v13681_v35 = vpop.f32.mrb[15].mxu1  ;;  %v15173_v32 = vld [vmem:[%s19893_s2 + $0x5a8] ss:$12 sps:$4 sm:$0xff]  }
 0x206   : > { %v15176_v35 = vld [vmem:[%s19893_s2 + $0x5bc] ss:$12 sps:$4 sm:$0xff]  }
 0x20e   : > { %v14372_v36 = vpop.f32.mrb[16].mxu1 }
 0x20f   : > { %v1402_v37 = vadd.f32 %v14372_v36, %v13679_v31  ;;  %v1393_v38 = vpop.f32.mrb[17].mxu1  ;;  %v15172_v31 = vld [vmem:[%s19893_s2 + $0x5a4] ss:$12 sps:$4 sm:$0xff]   ;;  %v15177_v36 = vld [vmem:[%s19893_s2 + $0x5c0] ss:$12 sps:$4 sm:$0xff]  }
 0x210   : > { %v1394_v39 = vadd.f32 %v13673_v18, %v1393_v38  ;;  %v14373_v40 = vpop.f32.mrb[18].mxu1  ;;  %v15162_v18 = vld [vmem:[%s19893_s2 + $0x570] ss:$12 sps:$4 sm:$0xff]  }
 0x211   : > { %v1396_v41 = vpop.f32.mrb[19].mxu1  ;;  %v15174_v40 = vld [vmem:[%s19893_s2 + $0x5b8] ss:$12 sps:$4 sm:$0xff]  }
 0x212   : > { %v1397_v42 = vadd.f32 %v13676_v27, %v1396_v41 }
 0x216   : > { %v1304_v43 = vpop.f32.mrb[24].mxu0 }
 0x217   : > { %v1305_v44 = vadd.f32 %v1304_v43, %v1253_v19  ;;  %v1306_v45 = vpop.f32.mrb[25].mxu0  ;;  %v15166_v19 = vld [vmem:[%s19893_s2 + $0x588] ss:$12 sps:$4 sm:$0xff]  }
 0x218   : > { %v1307_v46 = vadd.f32 %v1306_v45, %v1255_v29  ;;  %v1308_v47 = vpop.f32.mrb[26].mxu0  ;;  %v15180_v43 = vld [vmem:[%s19893_s2 + $0x5d4] ss:$12 sps:$4 sm:$0xff]   ;;  %v15181_v45 = vld [vmem:[%s19893_s2 + $0x5d8] ss:$12 sps:$4 sm:$0xff]  }
 0x219   : > { %v1309_v25 = vpop.f32.mrb[27].mxu0  ;;  %v15186_v47 = vld [vmem:[%s19893_s2 + $0x5ec] ss:$12 sps:$4 sm:$0xff]  }
 0x22f   : > { %v13706_v48 = vpop.f32.mrb[20].mxu1 }
 0x230   : > { %v13707_v49 = vpop.f32.mrb[21].mxu1 }
 0x231   : > { %v13708_v50 = vadd.f32 %v13707_v49, %v13706_v48  ;;  %v13709_v51 = vpop.f32.mrb[22].mxu1 }
 0x232   : > { %v13710_v52 = vpop.f32.mrb[23].mxu1 }
 0x233   : > { %v13711_v53 = vadd.f32 %v13710_v52, %v13709_v51  ;;  %v1886_v23 = vadd.f32 %v13708_v50, %v1394_v39  ;;  %v17045_v50 = vld [vmem:[%s16322_s27 + $0x4] ss:$12 sps:$4 sm:$0xff]  }
 0x235   : > { %v1889_v54 = vadd.f32 %v13711_v53, %v1397_v42 }
 0x237   : > { %v13712_v55 = vpop.f32.mrb[24].mxu1 }
 0x238   : > { %v13713_v56 = vpop.f32.mrb[25].mxu1 }
 0x239   : > { %v13714_v57 = vadd.f32 %v13713_v56, %v13712_v55  ;;  %v13715_v58 = vpop.f32.mrb[26].mxu1  ;;  %v17059_v55 = vld [vmem:[%s16322_s27] ss:$12 sps:$4 sm:$0xff]   ;;  %v17064_v56 = vld [vmem:[%s16322_s27 + $0x1c] ss:$12 sps:$4 sm:$0xff]  }
 0x23a   : > { %v13716_v59 = vpop.f32.mrb[27].mxu1  ;;  %v15192_v58 = vld [vmem:[%s19893_s2 + $0x61c] ss:$12 sps:$4 sm:$0xff]  }
 0x23b   : > { %v1894_v60 = vadd.f32 %v13714_v57, %v1402_v37  ;;  %v15187_v57 = vld [vmem:[%s19893_s2 + $0x600] ss:$12 sps:$4 sm:$0xff]   ;;  %v17074_v59 = vld [vmem:[%s16322_s27 + $0x18] ss:$12 sps:$4 sm:$0xff]  }
 0x243   : > { %v14386_v61 = vpop.f32.mrb[28].mxu1 }
 0x244   : > { %v16990_v21 = vadd.f32 %v14386_v61, %v1894_v60  ;;  %v1933_v62 = vpop.f32.mrb[29].mxu1  ;;  %v17078_v60 = vld [vmem:[%s16322_s27 + $0x34] ss:$12 sps:$4 sm:$0xff]   ;;  %v15190_v61 = vld [vmem:[%s19893_s2 + $0x618] ss:$12 sps:$4 sm:$0xff]  }
 0x245   : > { %v16992_v63 = vadd.f32 %v1933_v62, %v1886_v23  ;;  %v14387_v0 = vpop.f32.mrb[30].mxu1  ;;  %v15184_v23 = vld [vmem:[%s19893_s2 + $0x5e8] ss:$12 sps:$4 sm:$0xff]   ;;  %v17086_v62 = vld [vmem:[%s16322_s27 + $0x30] ss:$12 sps:$4 sm:$0xff]  }
 0x246   : > { %v1936_v2 = vpop.f32.mrb[31].mxu1  ;;  %v17090_v0 = vld [vmem:[%s16322_s27 + $0x4c] ss:$12 sps:$4 sm:$0xff]  }
 0x247   : > { %v16994_v3 = vadd.f32 %v1936_v2, %v1889_v54  ;;  %v15189_v54 = vld [vmem:[%s19893_s2 + $0x604] ss:$12 sps:$4 sm:$0xff]   ;;  %v17094_v2 = vld [vmem:[%s16322_s27 + $0x48] ss:$12 sps:$4 sm:$0xff]  }
 0x256   : > { %v1793_v4 = vpop.f32.mrb[28].mxu0 }
 0x257   : > { %v1794_v5 = vadd.f32 %v1793_v4, %v1305_v44  ;;  %v1795_v6 = vpop.f32.mrb[29].mxu0  ;;  %v17098_v4 = vld [vmem:[%s16322_s27 + $0x64] ss:$12 sps:$4 sm:$0xff]  }
 0x258   : > { %v1796_v7 = vadd.f32 %v1795_v6, %v1307_v46  ;;  %v1797_v8 = vpop.f32.mrb[30].mxu0  ;;  %v15178_v46 = vld [vmem:[%s19893_s2 + $0x5d0] ss:$12 sps:$4 sm:$0xff]   ;;  %v15182_v6 = vld [vmem:[%s19892_s1 + $0x24] sm:$0xff]  }
 0x259   : > { %v1798_v9 = vpop.f32.mrb[31].mxu0  ;;  %v17119_v8 = vld [vmem:[%s16322_s27 + $0x20] ss:$12 sps:$4 sm:$0xff]  }
 0x25a   : > { %v15183_v9 = vld [vmem:[%s19892_s1 + $0x2c] ss:$0 sps:$4 sm:$0x33]  }
 0x25b   : > { %v1999_v10 = vpop.f32.mrb[32].mxu1 }
 0x25c   : > { %v2001_v11 = vpop.f32.mrb[33].mxu1 }
 0x25d   : > { %v2003_v16 = vpop.f32.mrb[34].mxu1 }
 0x25e   : > { %v2064_v12 = vpack.c.bf16 %v2003_v16, %v1999_v10  ;;  %v2005_v14 = vpop.f32.mrb[35].mxu1  ;;  %v17127_v10 = vld [vmem:[%s16322_s27 + $0x38] ss:$12 sps:$4 sm:$0xff]   ;;  %v17139_v16 = vld [vmem:[%s16322_s27 + $0x68] ss:$12 sps:$4 sm:$0xff]  }
 0x25f   : > { %v2065_v15 = vpack.c.bf16 %v2005_v14, %v2001_v11  ;;  %v17134_v11 = vld [vmem:[%s16322_s27 + $0x50] ss:$12 sps:$4 sm:$0xff]   ;;  %v15195_v14 = vld [vmem:[%s19893_s2 + $0x634] ss:$12 sps:$4 sm:$0xff]  }
 0x261   : > { %2529 = vmatprep.mubr.bf16.mxu0 %v2065_v15  ;;  %2631 = vmatprep.mubr.bf16.mxu1 %v2065_v15  ;;  %v15193_v15 = vld [vmem:[%s19893_s2 + $0x630] ss:$12 sps:$4 sm:$0xff]  }
 0x262   : > { %2530 = vmatmul.mubr.bf16.vlgmr.msra.gmra.mrb[16].mxu0 %v2064_v12  ;;  %2632 = vmatmul.mubr.bf16.vlgmr.msra.gmra.mrb[44].mxu1 %v2064_v12  ;;  %v17144_v12 = vld [vmem:[%s16322_s27 + $0x80] ss:$0 sps:$4 sm:$0x33]  }
 0x263   : > { %v2009_v27 = vpop.f32.mrb[36].mxu1  ;;  %2549 = vmatpush1.bf16.msra.mxu0 %v15162_v18  ;;  %14405 = vmatpush3.bf16.msra.mxu1 %v16987_v13  ;;  %v15170_v13 = vld [vmem:[%s19893_s2 + $0x5a0] ss:$12 sps:$4 sm:$0xff]   ;;  %v15196_v18 = vld [vmem:[%s19893_s2 + $0x648] ss:$12 sps:$4 sm:$0xff]  }
 0x264   : > { %v2011_v28 = vpop.f32.mrb[37].mxu1  ;;  %2550 = vmatprep.subr.bf16.mxu0 %v15168_v24  ;;  %14406 = vmatprep.subr.bf16.mxu1 %v15169_v26  ;;  %v2067_v33 = vpack.c.bf16 %v2009_v27, %v2009_v27  ;;  %v15198_v24 = vld [vmem:[%s19893_s2 + $0x64c] ss:$12 sps:$4 sm:$0xff]  }
 0x265   : > { %v2068_v29 = vpack.c.bf16 %v2011_v28, %v2011_v28  ;;  %v2013_v30 = vpop.f32.mrb[38].mxu1  ;;  %v15199_v27 = vld [vmem:[%s19893_s2 + $0x660] ss:$12 sps:$4 sm:$0xff]   ;;  %v15202_v28 = vld [vmem:[%s19893_s2 + $0x678] ss:$12 sps:$4 sm:$0xff]  }
 0x266   : > { %v2014_v34 = vpop.f32.mrb[39].mxu1  ;;  %v15211_v30 = vld [vmem:[%s19893_s2 + $0x6b0] ss:$12 sps:$4 sm:$0xff]  }
 0x267   : > { %2539 = vmatprep.mubr.bf16.mxu0 %v2068_v29  ;;  %2551 = vmatpush1.bf16.msra.mxu0 %v15166_v19  ;;  %v15204_v19 = vld [vmem:[%s19893_s2 + $0x67c] ss:$12 sps:$4 sm:$0xff]  }
 0x268   : > { %2639 = vmatprep.mubr.bf16.mxu1 %v2068_v29  ;;  %14407 = vmatpush3.bf16.msra.mxu1 %v15169_v26  ;;  %v15201_v26 = vld [vmem:[%s19893_s2 + $0x664] ss:$12 sps:$4 sm:$0xff]   ;;  %v15207_v29 = vld [vmem:[%s19893_s2 + $0x694] ss:$12 sps:$4 sm:$0xff]  }
 0x269   : > { %2552 = vmatprep.subr.bf16.mxu0 %v15172_v31  ;;  %14408 = vmatprep.subr.bf16.mxu1 %v15173_v32  ;;  %v15212_v31 = vld [vmem:[%s19893_s2 + $0x5f0] ss:$12 sps:$4 sm:$0xff]   ;;  %v15208_v34 = vld [vmem:[%s19893_s2 + $0x6a8] ss:$12 sps:$4 sm:$0xff]  }
 0x26a   : > { %v1844_v37 = vpop.f32.mrb[32].mxu0  ;;  %2540 = vmatmul.mubr.bf16.gmra.mrb[36].mxu0 %v2067_v33  ;;  %2640 = vmatmul.mubr.bf16.gmra.mrb[48].mxu1 %v2067_v33  ;;  %v15210_v33 = vld [vmem:[%s19893_s2 + $0x6ac] ss:$12 sps:$4 sm:$0xff]  }
 0x26b   : > { %v17024_v38 = vadd.f32 %v1844_v37, %v1794_v5  ;;  %v1846_v39 = vpop.f32.mrb[33].mxu0  ;;  %2553 = vmatpush1.bf16.msra.mxu0 %v15170_v13  ;;  %2580 = vmatprep.mubr.bf16.mxu0 %v16210_v1  ;;  %v17102_v5 = vld [vmem:[%s16322_s27 + $0x60] ss:$12 sps:$4 sm:$0xff]   ;;  %v15215_v13 = vld [vmem:[%s19893_s2 + $0x6c4] ss:$12 sps:$4 sm:$0xff]  }
 0x26c   : > { %v17030_v41 = vadd.f32 %v1846_v39, %v1796_v7  ;;  %v1848_v42 = vpop.f32.mrb[34].mxu0  ;;  %14409 = vmatpush3.bf16.msra.mxu1 %v15173_v32  ;;  %2554 = vmatprep.subr.bf16.mxu0 %v15176_v35  ;;  %v17112_v7 = vld [vmem:[%s16322_s27 + $0x8] ss:$12 sps:$4 sm:$0xff]   ;;  %v15205_v32 = vld [vmem:[%s19893_s2 + $0x690] ss:$12 sps:$4 sm:$0xff]  }
 0x26d   : > { %v1849_v44 = vpop.f32.mrb[35].mxu0  ;;  %14410 = vmatprep.subr.bf16.mxu1 %v15177_v36  ;;  %v15216_v35 = vld [vmem:[%s19893_s2 + $0x6c8] ss:$12 sps:$4 sm:$0xff]   ;;  %v15218_v42 = vld [vmem:[%s19893_s2 + $0x6d8] ss:$12 sps:$4 sm:$0xff]  }
 0x26e   : > { %v15217_v37 = vld [vmem:[%s19893_s2 + $0x608] ss:$12 sps:$4 sm:$0xff]  }
 0x26f   : > { %2555 = vmatpush1.bf16.msra.mxu0 %v15174_v40  ;;  %v15220_v39 = vld [vmem:[%s19893_s2 + $0x6dc] ss:$12 sps:$4 sm:$0xff]   ;;  %v15221_v40 = vld [vmem:[%s19893_s2 + $0x6e0] ss:$12 sps:$4 sm:$0xff]  }
 0x270   : > { %14411 = vmatpush3.bf16.msra.mxu1 %v15177_v36  ;;  %2556 = vmatprep.subr.bf16.mxu0 %v15180_v43  ;;  %v15213_v36 = vld [vmem:[%s19893_s2 + $0x6c0] ss:$12 sps:$4 sm:$0xff]  }
 0x271   : > { %14412 = vmatprep.subr.bf16.mxu1 %v15181_v45  ;;  %v15222_v43 = vld [vmem:[%s19893_s2 + $0x620] ss:$12 sps:$4 sm:$0xff]  }
 0x272   : > { %v15225_v44 = vld [vmem:[%s19893_s2 + $0x6f4] ss:$12 sps:$4 sm:$0xff]  }
 0x273   : > { %v14402_v25 = vpop.f32.mrb[40].mxu1  ;;  %2557 = vmatpush1.bf16.msra.mxu0 %v15178_v46  ;;  %v15223_v46 = vld [vmem:[%s19893_s2 + $0x6f0] ss:$12 sps:$4 sm:$0xff]  }
 0x274   : > { %v2050_v48 = vpop.f32.mrb[41].mxu1  ;;  %14413 = vmatpush3.bf16.msra.mxu1 %v15181_v45  ;;  %3254 = vmatprep.subr.bf16.mxu0 %v15186_v47  ;;  %v2069_v53 = vpack.c.bf16 %v14402_v25, %v14402_v25  ;;  %v15226_v45 = vld [vmem:[%s19893_s2 + $0x6f8] ss:$12 sps:$4 sm:$0xff]  }
 0x275   : > { %v14403_v49 = vpop.f32.mrb[42].mxu1  ;;  %2722 = vmatprep.subr.bf16.mxu1 %v17045_v50  ;;  %v15227_v47 = vld [vmem:[%s19893_s2 + $0x638] ss:$12 sps:$4 sm:$0xff]  }
 0x276   : > { %v2053_v51 = vpop.f32.mrb[43].mxu1  ;;  %v15230_v25 = vld [vmem:[%s19893_s2 + $0x70c] ss:$12 sps:$4 sm:$0xff]   ;;  %v15228_v49 = vld [vmem:[%s19893_s2 + $0x708] ss:$12 sps:$4 sm:$0xff]  }
 0x277   : > { %v2066_v52 = vpack.c.bf16 %v2053_v51, %v2050_v48  ;;  %v15231_v48 = vld [vmem:[%s19893_s2 + $0x710] ss:$12 sps:$4 sm:$0xff]  }
 0x278   : > { %v15232_v51 = vld [vmem:[%s19893_s2 + $0x650] ss:$12 sps:$4 sm:$0xff]  }
 0x279   : > { %11858 = vmatmul.mubr.msk.bf16.vlgmr.msra.gmra.mrb[16].mxu0 %vm1202_vm2, %v2066_v52  ;;  %14414 = vmatprep.mubr.msk.bf16.mxu1 %vm1202_vm2, %v2066_v52  ;;  %v15235_v52 = vld [vmem:[%s19893_s2 + $0x724] ss:$12 sps:$4 sm:$0xff]  }
 0x27a   : > { %14415 = vmatmul.mubr.msk.bf16.vlgmr.msra.gmra.mrb[52].mxu1 %vm1202_vm2, %v2069_v53  ;;  %2590 = vmatprep.mubr.bf16.mxu0 %v16210_v1 }
 0x27b   : > { %2723 = vmatpush1.bf16.msra.mxu1 %v17059_v55  ;;  %2754 = vmatprep.mubr.bf16.mxu1 %v16210_v1 }
 0x27c   : > { %2724 = vmatprep.subr.bf16.mxu1 %v17064_v56  ;;  %3255 = vmatpush1.bf16.msra.mxu0 %v15184_v23  ;;  %v15233_v23 = vld [vmem:[%s19893_s2 + $0x720] ss:$12 sps:$4 sm:$0xff]  }
 0x27d   : > { %3256 = vmatprep.subr.bf16.mxu0 %v15189_v54  ;;  %v15237_v54 = vld [vmem:[%s19893_s2 + $0x668] ss:$12 sps:$4 sm:$0xff]  }
 0x27f   : > { %2725 = vmatpush1.bf16.msra.mxu1 %v17074_v59 }
 0x280   : > { %2726 = vmatprep.subr.bf16.mxu1 %v17078_v60  ;;  %3257 = vmatpush1.bf16.msra.mxu0 %v15187_v57  ;;  %v15240_v57 = vld [vmem:[%s19893_s2 + $0x73c] ss:$12 sps:$4 sm:$0xff]  }
 0x281   : > { %11859 = vmatmul.mubr.msk.bf16.gmra.mrb[40].mxu0 %vm1202_vm2, %v2069_v53  ;;  %3258 = vmatprep.subr.bf16.mxu0 %v15192_v58  ;;  %v15236_v53 = vld [vmem:[%s19893_s2 + $0x728] ss:$12 sps:$4 sm:$0xff]   ;;  %v15241_v58 = vld [vmem:[%s19893_s2 + $0x740] ss:$12 sps:$4 sm:$0xff]  }
 0x283   : > { %2727 = vmatpush1.bf16.msra.mxu1 %v17086_v62 }
 0x284   : > { %2728 = vmatprep.subr.bf16.mxu1 %v17090_v0  ;;  %3259 = vmatpush1.bf16.msra.mxu0 %v15190_v61  ;;  %v15238_v61 = vld [vmem:[%s19893_s2 + $0x738] ss:$12 sps:$4 sm:$0xff]  }
 0x285   : > { %3260 = vmatprep.subr.bf16.mxu0 %v15195_v14  ;;  %v15246_v14 = vld [vmem:[%s19893_s2 + $0x758] ss:$12 sps:$4 sm:$0xff]  }
 0x287   : > { %2729 = vmatpush1.bf16.msra.mxu1 %v17094_v2 }
 0x288   : > { %2730 = vmatprep.subr.bf16.mxu1 %v17098_v4  ;;  %3261 = vmatpush1.bf16.msra.mxu0 %v15193_v15  ;;  %v15243_v15 = vld [vmem:[%s19893_s2 + $0x750] ss:$12 sps:$4 sm:$0xff]  }
 0x289   : > { %3262 = vmatprep.subr.bf16.mxu0 %v15198_v24  ;;  %v15250_v24 = vld [vmem:[%s19893_s2 + $0x76c] ss:$12 sps:$4 sm:$0xff]  }
 0x28b   : > { %2731 = vmatpush1.bf16.msra.mxu1 %v17102_v5 }
 0x28c   : > { %11867 = vmatprep.subr.msk.bf16.mxu1 %vm459_vm1, %v16339_v17  ;;  %3263 = vmatpush1.bf16.msra.mxu0 %v15196_v18  ;;  %v15247_v18 = vld [vmem:[%s19893_s2 + $0x698] ss:$12 sps:$4 sm:$0xff]  }
 0x28d   : > { %3264 = vmatprep.subr.bf16.mxu0 %v15201_v26  ;;  %v15251_v26 = vld [vmem:[%s19893_s2 + $0x770] ss:$12 sps:$4 sm:$0xff]  }
 0x28f   : > { %2733 = vmatpush1.bf16.msra.mxu1 %v16345_v20 }
 0x290   : > { %14418 = vmatprep.subr.bf16.mxu1 %v17112_v7  ;;  %3265 = vmatpush1.bf16.msra.mxu0 %v15199_v27 }
 0x291   : > { %3266 = vmatprep.subr.bf16.mxu0 %v15204_v19 }
 0x292   : > { %11868 = vmatmul.mubr.msk.bf16.vlgmr.msra.gmra.mrb[56].mxu1 %vm452_vm0, %v15182_v6 }
 0x293   : > { %14419 = vmatpush3.bf16.msra.mxu1 %v17112_v7  ;;  %2764 = vmatprep.mubr.bf16.mxu1 %v16210_v1 }
 0x294   : > { %14420 = vmatprep.subr.bf16.mxu1 %v17119_v8  ;;  %3267 = vmatpush1.bf16.msra.mxu0 %v15202_v28 }
 0x295   : > { %3268 = vmatprep.subr.bf16.mxu0 %v15207_v29 }
 0x297   : > { %14421 = vmatpush3.bf16.msra.mxu1 %v17119_v8 }
 0x298   : > { %14422 = vmatprep.subr.bf16.mxu1 %v17127_v10  ;;  %3269 = vmatpush1.bf16.msra.mxu0 %v15205_v32 }
 0x299   : > { %3270 = vmatprep.subr.bf16.mxu0 %v15210_v33 }
 0x29a   : > { %11869 = vmatmul.mubr.msk.bf16.gmra.mrb[60].mxu1 %vm452_vm0, %v15183_v9 }
 0x29b   : > { %14423 = vmatpush3.bf16.msra.mxu1 %v17127_v10  ;;  %14430 = vmatprep.mubr.msk.bf16.mxu1 %vm452_vm0, %v15182_v6  ;;  %v15242_v6 = vld [vmem:[%s19893_s2 + $0x680] ss:$12 sps:$4 sm:$0xff]  }
 0x29c   : > { %14424 = vmatprep.subr.bf16.mxu1 %v17134_v11  ;;  %3271 = vmatpush1.bf16.msra.mxu0 %v15208_v34 }
 0x29d   : > { %3272 = vmatprep.subr.bf16.mxu0 %v15215_v13 }
 0x29f   : > { %14425 = vmatpush3.bf16.msra.mxu1 %v17134_v11 }
 0x2a0   : > { %14426 = vmatprep.subr.bf16.mxu1 %v17139_v16  ;;  %3273 = vmatpush1.bf16.msra.mxu0 %v15213_v36 }
 0x2a1   : > { %3274 = vmatprep.subr.bf16.mxu0 %v15220_v39 }
 0x2a3   : > { %14427 = vmatpush3.bf16.msra.mxu1 %v17139_v16 }
 0x2a4   : > { %14853 = vmatprep.subr.msk.bf16.mxu1 %vm459_vm1, %v17144_v12  ;;  %3275 = vmatpush1.bf16.msra.mxu0 %v15218_v42 }
 0x2a5   : > { %3276 = vmatprep.subr.bf16.mxu0 %v15225_v44 }
 0x2a7   : > { %14429 = vmatpush3.bf16.msra.mxu1 %v16352_v22 }
 0x2a8   : > { %13776 = vmatprep.subr.bf16.mxu1 %v15211_v30  ;;  %3277 = vmatpush1.bf16.msra.mxu0 %v15223_v46 }
 0x2a9   : > { %3278 = vmatprep.subr.bf16.mxu0 %v15230_v25 }
 0x2aa   : > { %14431 = vmatmul.mubr.msk.bf16.vlgmr.msra.gmra.mrb[64].mxu1 %vm452_vm0, %v15183_v9  ;;  %v15245_v9 = vld [vmem:[%s19893_s2 + $0x754] ss:$12 sps:$4 sm:$0xff]  }
 0x2ab   : > { %13777 = vmatpush3.bf16.msra.mxu1 %v15212_v31 }
 0x2ac   : > { %13778 = vmatprep.subr.bf16.mxu1 %v15216_v35  ;;  %3279 = vmatpush1.bf16.msra.mxu0 %v15228_v49 }
 0x2ad   : > { %3280 = vmatprep.subr.bf16.mxu0 %v15235_v52 }
 0x2af   : > { %13779 = vmatpush3.bf16.msra.mxu1 %v15217_v37 }
 0x2b0   : > { %13780 = vmatprep.subr.bf16.mxu1 %v15221_v40  ;;  %3281 = vmatpush1.bf16.msra.mxu0 %v15233_v23 }
 0x2b1   : > { %3282 = vmatprep.subr.bf16.mxu0 %v15240_v57 }
 0x2b3   : > { %13781 = vmatpush3.bf16.msra.mxu1 %v15222_v43 }
 0x2b4   : > { %13782 = vmatprep.subr.bf16.mxu1 %v15226_v45  ;;  %3283 = vmatpush1.bf16.msra.mxu0 %v15238_v61 }
 0x2b5   : > { %3284 = vmatprep.subr.bf16.mxu0 %v15245_v9 }
 0x2b7   : > { %13783 = vmatpush3.bf16.msra.mxu1 %v15227_v47 }
 0x2b8   : > { %13784 = vmatprep.subr.bf16.mxu1 %v15231_v48  ;;  %3285 = vmatpush1.bf16.msra.mxu0 %v15243_v15 }
 0x2b9   : > { %3305 = vmatprep.subr.bf16.mxu0 %v15250_v24  ;;  %v15254_v24 = vld [vmem:[%s19893_s2 + $0x784] ss:$12 sps:$4 sm:$0xff]  }
 0x2bb   : > { %13785 = vmatpush3.bf16.msra.mxu1 %v15232_v51 }
 0x2bc   : > { %13786 = vmatprep.subr.bf16.mxu1 %v15236_v53 }
 0x2bf   : > { %13787 = vmatpush3.bf16.msra.mxu1 %v15237_v54 }
 0x2c0   : > { %13788 = vmatprep.subr.bf16.mxu1 %v15241_v58 }
 0x2c3   : > { %13789 = vmatpush3.bf16.msra.mxu1 %v15242_v6 }
 0x2c4   : > { %13790 = vmatprep.subr.bf16.mxu1 %v15246_v14 }
 0x2c7   : > { %13791 = vmatpush3.bf16.msra.mxu1 %v15247_v18 }
 0x2c8   : > { %14434 = vmatprep.subr.bf16.mxu1 %v15251_v26 }
 0x335   : > { %v13749_v27 = vpop.f32.mrb[44].mxu1 }
 0x336   : > { %v13750_v19 = vpop.f32.mrb[45].mxu1 }
 0x337   : > { %v13751_v28 = vadd.f32 %v13750_v19, %v13749_v27  ;;  %v13752_v29 = vpop.f32.mrb[46].mxu1  ;;  %v15252_v27 = vld [vmem:[%s19893_s2 + $0x780] ss:$12 sps:$4 sm:$0xff]  }
 0x338   : > { %v13753_v30 = vpop.f32.mrb[47].mxu1 }
 0x339   : > { %v13754_v31 = vadd.f32 %v13753_v30, %v13752_v29  ;;  %v15258_v30 = vld [vmem:[%s19893_s2 + $0x79c] ss:$12 sps:$4 sm:$0xff]  }
 0x33d   : > { %v2541_v32 = vpop.f32.mrb[36].mxu0  ;;  %v13755_v33 = vpop.f32.mrb[48].mxu1 }
 0x33e   : > { %v2543_v34 = vpop.f32.mrb[37].mxu0  ;;  %v13756_v13 = vpop.f32.mrb[49].mxu1 }
 0x33f   : > { %v13757_v35 = vadd.f32 %v13756_v13, %v13755_v33  ;;  %v2545_v36 = vpop.f32.mrb[38].mxu0  ;;  %v13758_v37 = vpop.f32.mrb[50].mxu1  ;;  %v15263_v13 = vld [vmem:[%s19893_s2 + $0x7b8] ss:$12 sps:$4 sm:$0xff]  }
 0x340   : > { %v2546_v39 = vpop.f32.mrb[39].mxu0  ;;  %v13759_v40 = vpop.f32.mrb[51].mxu1  ;;  %v15266_v36 = vld [vmem:[%s19893_s2 + $0x7cc] ss:$12 sps:$4 sm:$0xff]   ;;  %v15267_v37 = vld [vmem:[%s19893_s2 + $0x7d0] ss:$12 sps:$4 sm:$0xff]  }
 0x341   : > { %v15264_v39 = vld [vmem:[%s19893_s2 + $0x7c8] ss:$12 sps:$4 sm:$0xff]   ;;  %v15272_v40 = vld [vmem:[%s19893_s2 + $0x7e4] ss:$12 sps:$4 sm:$0xff]  }
 0x34d   : > { %v14416_v42 = vpop.f32.mrb[52].mxu1 }
 0x34e   : > { %v2690_v43 = vadd.f32 %v14416_v42, %v13757_v35  ;;  %v2681_v44 = vpop.f32.mrb[53].mxu1  ;;  %v15260_v35 = vld [vmem:[%s19893_s2 + $0x7b0] ss:$12 sps:$4 sm:$0xff]  }
 0x34f   : > { %v2682_v45 = vadd.f32 %v13751_v28, %v2681_v44  ;;  %v14417_v46 = vpop.f32.mrb[54].mxu1 }
 0x350   : > { %v17283_v47 = vadd.f32 %v2690_v43, %v16990_v21  ;;  %v2684_v25 = vpop.f32.mrb[55].mxu1 }
 0x351   : > { %v17286_v48 = vadd.f32 %v2682_v45, %v16992_v63  ;;  %v2685_v49 = vadd.f32 %v13754_v31, %v2684_v25  ;;  %v15259_v31 = vld [vmem:[%s19893_s2 + $0x7a0] ss:$12 sps:$4 sm:$0xff]  }
 0x353   : > { %v17289_v51 = vadd.f32 %v2685_v49, %v16994_v3  ;;  %v15248_v3 = vld [vmem:[%s19893_s2 + $0x768] ss:$12 sps:$4 sm:$0xff]   ;;  %v15270_v49 = vld [vmem:[%s19893_s2 + $0x7e0] ss:$12 sps:$4 sm:$0xff]  }
 0x354   : > { %v2592_v52 = vpop.f32.mrb[40].mxu0 }
 0x355   : > { %v2593_v53 = vadd.f32 %v2592_v52, %v2541_v32  ;;  %v2594_v23 = vpop.f32.mrb[41].mxu0  ;;  %v15275_v52 = vld [vmem:[%s19893_s2 + $0x7fc] ss:$12 sps:$4 sm:$0xff]  }
 0x356   : > { %v2595_v54 = vadd.f32 %v2594_v23, %v2543_v34  ;;  %v2596_v57 = vpop.f32.mrb[42].mxu0  ;;  %v15262_v34 = vld [vmem:[%s19893_s2 + $0x7b4] ss:$12 sps:$4 sm:$0xff]  }
 0x357   : > { %v17292_v58 = vadd.f32 %v2593_v53, %v17024_v38  ;;  %v2597_v61 = vpop.f32.mrb[43].mxu0  ;;  %v15255_v38 = vld [vmem:[%s19893_s2 + $0x788] ss:$12 sps:$4 sm:$0xff]   ;;  %v15273_v53 = vld [vmem:[%s19893_s2 + $0x7f8] ss:$12 sps:$4 sm:$0xff]  }
 0x358   : > { %v17295_v21 = vadd.f32 %v2595_v54, %v17030_v41  ;;  %v15278_v23 = vld [vmem:[%s19893_s2 + $0x814] ss:$12 sps:$4 sm:$0xff]   ;;  %v15276_v54 = vld [vmem:[%s19893_s2 + $0x810] ss:$12 sps:$4 sm:$0xff]  }
 0x359   : > { %v15268_v57 = vld [vmem:[%s19892_s1 + $0x30] sm:$0xff]   ;;  %v15269_v61 = vld [vmem:[%s19892_s1 + $0x38] ss:$0 sps:$4 sm:$0x33]  }
 0x365   : > { %v2756_v6 = vpop.f32.mrb[56].mxu1 }
 0x366   : > { %v2758_v9 = vpop.f32.mrb[57].mxu1 }
 0x367   : > { %v2760_v63 = vpop.f32.mrb[58].mxu1 }
 0x368   : > { %v2821_v14 = vpack.c.bf16 %v2760_v63, %v2756_v6  ;;  %v2762_v15 = vpop.f32.mrb[59].mxu1  ;;  %v15281_v6 = vld [vmem:[%s19893_s2 + $0x82c] ss:$12 sps:$4 sm:$0xff]  }
 0x369   : > { %v2822_v18 = vpack.c.bf16 %v2762_v15, %v2758_v9  ;;  %v15279_v9 = vld [vmem:[%s19893_s2 + $0x828] ss:$12 sps:$4 sm:$0xff]   ;;  %v15282_v63 = vld [vmem:[%s19893_s2 + $0x840] ss:$12 sps:$4 sm:$0xff]  }
 0x36a   : > { %v15287_v15 = vld [vmem:[%s19893_s2 + $0x85c] ss:$12 sps:$4 sm:$0xff]  }
 0x36b   : > { %3286 = vmatprep.mubr.bf16.mxu0 %v2822_v18  ;;  %3388 = vmatprep.mubr.bf16.mxu1 %v2822_v18  ;;  %v15285_v18 = vld [vmem:[%s19893_s2 + $0x858] ss:$12 sps:$4 sm:$0xff]  }
 0x36c   : > { %3287 = vmatmul.mubr.bf16.vlgmr.msra.gmra.mrb[16].mxu0 %v2821_v14  ;;  %3389 = vmatmul.mubr.bf16.vlgmr.msra.gmra.mrb[68].mxu1 %v2821_v14  ;;  %v15284_v14 = vld [vmem:[%s19893_s2 + $0x844] ss:$12 sps:$4 sm:$0xff]  }
 0x36d   : > { %v2766_v41 = vpop.f32.mrb[60].mxu1  ;;  %3306 = vmatpush1.bf16.msra.mxu0 %v15248_v3  ;;  %14435 = vmatpush3.bf16.msra.mxu1 %v15251_v26  ;;  %v15256_v26 = vld [vmem:[%s19893_s2 + $0x798] ss:$12 sps:$4 sm:$0xff]   ;;  %v15290_v3 = vld [vmem:[%s19893_s2 + $0x874] ss:$12 sps:$4 sm:$0xff]  }
 0x36e   : > { %v2768_v19 = vpop.f32.mrb[61].mxu1  ;;  %3307 = vmatprep.subr.bf16.mxu0 %v15254_v24  ;;  %14436 = vmatprep.subr.bf16.mxu1 %v15255_v38  ;;  %v2824_v32 = vpack.c.bf16 %v2766_v41, %v2766_v41  ;;  %v15288_v24 = vld [vmem:[%s19893_s2 + $0x870] ss:$12 sps:$4 sm:$0xff]   ;;  %v15297_v41 = vld [vmem:[%s19893_s2 + $0x8a8] ss:$12 sps:$4 sm:$0xff]  }
 0x36f   : > { %v2825_v28 = vpack.c.bf16 %v2768_v19, %v2768_v19  ;;  %v2770_v29 = vpop.f32.mrb[62].mxu1  ;;  %v15291_v19 = vld [vmem:[%s19893_s2 + $0x888] ss:$12 sps:$4 sm:$0xff]  }
 0x370   : > { %v2771_v33 = vpop.f32.mrb[63].mxu1  ;;  %v15294_v29 = vld [vmem:[%s19893_s2 + $0x8a0] ss:$12 sps:$4 sm:$0xff]  }
 0x371   : > { %3296 = vmatprep.mubr.bf16.mxu0 %v2825_v28  ;;  %3308 = vmatpush1.bf16.msra.mxu0 %v15252_v27  ;;  %v15298_v27 = vld [vmem:[%s19893_s2 + $0x7e8] ss:$12 sps:$4 sm:$0xff]   ;;  %v15303_v33 = vld [vmem:[%s19893_s2 + $0x800] ss:$12 sps:$4 sm:$0xff]  }
 0x372   : > { %3396 = vmatprep.mubr.bf16.mxu1 %v2825_v28  ;;  %14437 = vmatpush3.bf16.msra.mxu1 %v15255_v38  ;;  %v15293_v38 = vld [vmem:[%s19893_s2 + $0x88c] ss:$12 sps:$4 sm:$0xff]   ;;  %v15296_v28 = vld [vmem:[%s19893_s2 + $0x8a4] ss:$12 sps:$4 sm:$0xff]  }
 0x373   : > { %3309 = vmatprep.subr.bf16.mxu0 %v15258_v30  ;;  %14438 = vmatprep.subr.bf16.mxu1 %v15259_v31  ;;  %v15301_v30 = vld [vmem:[%s19893_s2 + $0x8bc] ss:$12 sps:$4 sm:$0xff]  }
 0x374   : > { %3297 = vmatmul.mubr.bf16.gmra.mrb[44].mxu0 %v2824_v32  ;;  %3397 = vmatmul.mubr.bf16.gmra.mrb[72].mxu1 %v2824_v32  ;;  %v15299_v32 = vld [vmem:[%s19893_s2 + $0x8b8] ss:$12 sps:$4 sm:$0xff]  }
 0x375   : > { %3310 = vmatpush1.bf16.msra.mxu0 %v15256_v26  ;;  %3337 = vmatprep.mubr.bf16.mxu0 %v16210_v1  ;;  %v15306_v26 = vld [vmem:[%s19893_s2 + $0x8d4] ss:$12 sps:$4 sm:$0xff]  }
 0x376   : > { %14439 = vmatpush3.bf16.msra.mxu1 %v15259_v31  ;;  %3311 = vmatprep.subr.bf16.mxu0 %v15262_v34  ;;  %v15302_v31 = vld [vmem:[%s19893_s2 + $0x8c0] ss:$12 sps:$4 sm:$0xff]   ;;  %v15307_v34 = vld [vmem:[%s19893_s2 + $0x8d8] ss:$12 sps:$4 sm:$0xff]  }
 0x377   : > { %14440 = vmatprep.subr.bf16.mxu1 %v15263_v13 }
 0x379   : > { %3312 = vmatpush1.bf16.msra.mxu0 %v15260_v35  ;;  %v15308_v35 = vld [vmem:[%s19893_s2 + $0x818] ss:$12 sps:$4 sm:$0xff]  }
 0x37a   : > { %14441 = vmatpush3.bf16.msra.mxu1 %v15263_v13  ;;  %3313 = vmatprep.subr.bf16.mxu0 %v15266_v36  ;;  %v15304_v13 = vld [vmem:[%s19893_s2 + $0x8d0] ss:$12 sps:$4 sm:$0xff]   ;;  %v15311_v36 = vld [vmem:[%s19893_s2 + $0x8ec] ss:$12 sps:$4 sm:$0xff]  }
 0x37b   : > { %14442 = vmatprep.subr.bf16.mxu1 %v15267_v37 }
 0x37d   : > { %v14432_v42 = vpop.f32.mrb[64].mxu1  ;;  %3314 = vmatpush1.bf16.msra.mxu0 %v15264_v39  ;;  %v15309_v39 = vld [vmem:[%s19893_s2 + $0x8e8] ss:$12 sps:$4 sm:$0xff]  }
 0x37e   : > { %v2807_v43 = vpop.f32.mrb[65].mxu1  ;;  %14443 = vmatpush3.bf16.msra.mxu1 %v15267_v37  ;;  %4011 = vmatprep.subr.bf16.mxu0 %v15272_v40  ;;  %v2826_v25 = vpack.c.bf16 %v14432_v42, %v14432_v42  ;;  %v15312_v37 = vld [vmem:[%s19893_s2 + $0x8f0] ss:$12 sps:$4 sm:$0xff]  }
 0x37f   : > { %v14433_v44 = vpop.f32.mrb[66].mxu1  ;;  %3479 = vmatprep.subr.bf16.mxu1 %v17045_v50  ;;  %v15313_v40 = vld [vmem:[%s19893_s2 + $0x830] ss:$12 sps:$4 sm:$0xff]  }
 0x380   : > { %v2810_v45 = vpop.f32.mrb[67].mxu1  ;;  %v15316_v42 = vld [vmem:[%s19893_s2 + $0x904] ss:$12 sps:$4 sm:$0xff]   ;;  %v15314_v44 = vld [vmem:[%s19893_s2 + $0x900] ss:$12 sps:$4 sm:$0xff]  }
 0x381   : > { %v2823_v46 = vpack.c.bf16 %v2810_v45, %v2807_v43  ;;  %v15317_v43 = vld [vmem:[%s19893_s2 + $0x908] ss:$12 sps:$4 sm:$0xff]  }
 0x382   : > { %v15318_v45 = vld [vmem:[%s19893_s2 + $0x848] ss:$12 sps:$4 sm:$0xff]  }
 0x383   : > { %12019 = vmatmul.mubr.msk.bf16.vlgmr.msra.gmra.mrb[16].mxu0 %vm1202_vm2, %v2823_v46  ;;  %14444 = vmatprep.mubr.msk.bf16.mxu1 %vm1202_vm2, %v2823_v46  ;;  %v15321_v46 = vld [vmem:[%s19893_s2 + $0x91c] ss:$12 sps:$4 sm:$0xff]  }
 0x384   : > { %14445 = vmatmul.mubr.msk.bf16.vlgmr.msra.gmra.mrb[76].mxu1 %vm1202_vm2, %v2826_v25  ;;  %3347 = vmatprep.mubr.bf16.mxu0 %v16210_v1 }
 0x385   : > { %3480 = vmatpush1.bf16.msra.mxu1 %v17059_v55  ;;  %3511 = vmatprep.mubr.bf16.mxu1 %v16210_v1 }
 0x386   : > { %3481 = vmatprep.subr.bf16.mxu1 %v17064_v56  ;;  %4012 = vmatpush1.bf16.msra.mxu0 %v15270_v49  ;;  %v15319_v49 = vld [vmem:[%s19893_s2 + $0x918] ss:$12 sps:$4 sm:$0xff]  }
 0x387   : > { %4013 = vmatprep.subr.bf16.mxu0 %v15275_v52  ;;  %v15323_v52 = vld [vmem:[%s19893_s2 + $0x860] ss:$12 sps:$4 sm:$0xff]  }
 0x389   : > { %3482 = vmatpush1.bf16.msra.mxu1 %v17074_v59 }
 0x38a   : > { %3483 = vmatprep.subr.bf16.mxu1 %v17078_v60  ;;  %4014 = vmatpush1.bf16.msra.mxu0 %v15273_v53  ;;  %v15326_v53 = vld [vmem:[%s19893_s2 + $0x934] ss:$12 sps:$4 sm:$0xff]  }
 0x38b   : > { %12020 = vmatmul.mubr.msk.bf16.gmra.mrb[48].mxu0 %vm1202_vm2, %v2826_v25  ;;  %4015 = vmatprep.subr.bf16.mxu0 %v15278_v23  ;;  %v15322_v25 = vld [vmem:[%s19893_s2 + $0x920] ss:$12 sps:$4 sm:$0xff]   ;;  %v15327_v23 = vld [vmem:[%s19893_s2 + $0x938] ss:$12 sps:$4 sm:$0xff]  }
 0x38d   : > { %3484 = vmatpush1.bf16.msra.mxu1 %v17086_v62 }
 0x38e   : > { %3485 = vmatprep.subr.bf16.mxu1 %v17090_v0  ;;  %4016 = vmatpush1.bf16.msra.mxu0 %v15276_v54  ;;  %v15324_v54 = vld [vmem:[%s19893_s2 + $0x930] ss:$12 sps:$4 sm:$0xff]  }
 0x38f   : > { %4017 = vmatprep.subr.bf16.mxu0 %v15281_v6  ;;  %v15332_v6 = vld [vmem:[%s19893_s2 + $0x950] ss:$12 sps:$4 sm:$0xff]  }
 0x391   : > { %3486 = vmatpush1.bf16.msra.mxu1 %v17094_v2 }
 0x392   : > { %3487 = vmatprep.subr.bf16.mxu1 %v17098_v4  ;;  %4018 = vmatpush1.bf16.msra.mxu0 %v15279_v9  ;;  %v15329_v9 = vld [vmem:[%s19893_s2 + $0x948] ss:$12 sps:$4 sm:$0xff]  }
 0x393   : > { %4019 = vmatprep.subr.bf16.mxu0 %v15284_v14  ;;  %v15336_v14 = vld [vmem:[%s19893_s2 + $0x964] ss:$12 sps:$4 sm:$0xff]  }
 0x395   : > { %3488 = vmatpush1.bf16.msra.mxu1 %v17102_v5 }
 0x396   : > { %12028 = vmatprep.subr.msk.bf16.mxu1 %vm459_vm1, %v16339_v17  ;;  %4020 = vmatpush1.bf16.msra.mxu0 %v15282_v63  ;;  %v15333_v63 = vld [vmem:[%s19893_s2 + $0x890] ss:$12 sps:$4 sm:$0xff]  }
 0x397   : > { %4021 = vmatprep.subr.bf16.mxu0 %v15287_v15  ;;  %v15337_v15 = vld [vmem:[%s19893_s2 + $0x968] ss:$12 sps:$4 sm:$0xff]  }
 0x399   : > { %3490 = vmatpush1.bf16.msra.mxu1 %v16345_v20 }
 0x39a   : > { %14448 = vmatprep.subr.bf16.mxu1 %v17112_v7  ;;  %4022 = vmatpush1.bf16.msra.mxu0 %v15285_v18 }
 0x39b   : > { %4023 = vmatprep.subr.bf16.mxu0 %v15290_v3 }
 0x39c   : > { %12029 = vmatmul.mubr.msk.bf16.vlgmr.msra.gmra.mrb[80].mxu1 %vm452_vm0, %v15268_v57 }
 0x39d   : > { %14449 = vmatpush3.bf16.msra.mxu1 %v17112_v7  ;;  %3521 = vmatprep.mubr.bf16.mxu1 %v16210_v1 }
 0x39e   : > { %14450 = vmatprep.subr.bf16.mxu1 %v17119_v8  ;;  %4024 = vmatpush1.bf16.msra.mxu0 %v15288_v24 }
 0x39f   : > { %4025 = vmatprep.subr.bf16.mxu0 %v15293_v38 }
 0x3a1   : > { %14451 = vmatpush3.bf16.msra.mxu1 %v17119_v8 }
 0x3a2   : > { %14452 = vmatprep.subr.bf16.mxu1 %v17127_v10  ;;  %4026 = vmatpush1.bf16.msra.mxu0 %v15291_v19 }
 0x3a3   : > { %4027 = vmatprep.subr.bf16.mxu0 %v15296_v28 }
 0x3a4   : > { %12030 = vmatmul.mubr.msk.bf16.gmra.mrb[84].mxu1 %vm452_vm0, %v15269_v61 }
 0x3a5   : > { %14453 = vmatpush3.bf16.msra.mxu1 %v17127_v10  ;;  %14460 = vmatprep.mubr.msk.bf16.mxu1 %vm452_vm0, %v15268_v57  ;;  %v15328_v57 = vld [vmem:[%s19893_s2 + $0x878] ss:$12 sps:$4 sm:$0xff]  }
 0x3a6   : > { %14454 = vmatprep.subr.bf16.mxu1 %v17134_v11  ;;  %4028 = vmatpush1.bf16.msra.mxu0 %v15294_v29 }
 0x3a7   : > { %4029 = vmatprep.subr.bf16.mxu0 %v15301_v30 }
 0x3a9   : > { %14455 = vmatpush3.bf16.msra.mxu1 %v17134_v11 }
 0x3aa   : > { %14456 = vmatprep.subr.bf16.mxu1 %v17139_v16  ;;  %4030 = vmatpush1.bf16.msra.mxu0 %v15299_v32 }
 0x3ab   : > { %4031 = vmatprep.subr.bf16.mxu0 %v15306_v26 }
 0x3ad   : > { %14457 = vmatpush3.bf16.msra.mxu1 %v17139_v16 }
 0x3ae   : > { %14854 = vmatprep.subr.msk.bf16.mxu1 %vm459_vm1, %v17144_v12  ;;  %4032 = vmatpush1.bf16.msra.mxu0 %v15304_v13 }
 0x3af   : > { %4033 = vmatprep.subr.bf16.mxu0 %v15311_v36 }
 0x3b1   : > { %14459 = vmatpush3.bf16.msra.mxu1 %v16352_v22 }
 0x3b2   : > { %13819 = vmatprep.subr.bf16.mxu1 %v15297_v41  ;;  %4034 = vmatpush1.bf16.msra.mxu0 %v15309_v39 }
 0x3b3   : > { %4035 = vmatprep.subr.bf16.mxu0 %v15316_v42 }
 0x3b4   : > { %14461 = vmatmul.mubr.msk.bf16.vlgmr.msra.gmra.mrb[88].mxu1 %vm452_vm0, %v15269_v61  ;;  %v15331_v61 = vld [vmem:[%s19893_s2 + $0x94c] ss:$12 sps:$4 sm:$0xff]  }
 0x3b5   : > { %13820 = vmatpush3.bf16.msra.mxu1 %v15298_v27 }
 0x3b6   : > { %13821 = vmatprep.subr.bf16.mxu1 %v15302_v31  ;;  %4036 = vmatpush1.bf16.msra.mxu0 %v15314_v44 }
 0x3b7   : > { %4037 = vmatprep.subr.bf16.mxu0 %v15321_v46 }
 0x3b9   : > { %13822 = vmatpush3.bf16.msra.mxu1 %v15303_v33 }
 0x3ba   : > { %13823 = vmatprep.subr.bf16.mxu1 %v15307_v34  ;;  %4038 = vmatpush1.bf16.msra.mxu0 %v15319_v49 }
 0x3bb   : > { %4039 = vmatprep.subr.bf16.mxu0 %v15326_v53 }
 0x3bd   : > { %13824 = vmatpush3.bf16.msra.mxu1 %v15308_v35 }
 0x3be   : > { %13825 = vmatprep.subr.bf16.mxu1 %v15312_v37  ;;  %4040 = vmatpush1.bf16.msra.mxu0 %v15324_v54 }
 0x3bf   : > { %4041 = vmatprep.subr.bf16.mxu0 %v15331_v61 }
 0x3c1   : > { %13826 = vmatpush3.bf16.msra.mxu1 %v15313_v40 }
 0x3c2   : > { %13827 = vmatprep.subr.bf16.mxu1 %v15317_v43  ;;  %4042 = vmatpush1.bf16.msra.mxu0 %v15329_v9 }
 0x3c3   : > { %4062 = vmatprep.subr.bf16.mxu0 %v15336_v14  ;;  %v15340_v14 = vld [vmem:[%s19893_s2 + $0x97c] ss:$12 sps:$4 sm:$0xff]  }
 0x3c5   : > { %13828 = vmatpush3.bf16.msra.mxu1 %v15318_v45 }
 0x3c6   : > { %13829 = vmatprep.subr.bf16.mxu1 %v15322_v25 }
 0x3c9   : > { %13830 = vmatpush3.bf16.msra.mxu1 %v15323_v52 }
 0x3ca   : > { %13831 = vmatprep.subr.bf16.mxu1 %v15327_v23 }
 0x3cd   : > { %13832 = vmatpush3.bf16.msra.mxu1 %v15328_v57 }
 0x3ce   : > { %13833 = vmatprep.subr.bf16.mxu1 %v15332_v6 }
 0x3d1   : > { %13834 = vmatpush3.bf16.msra.mxu1 %v15333_v63 }
 0x3d2   : > { %14464 = vmatprep.subr.bf16.mxu1 %v15337_v15 }
 0x43f   : > { %v13792_v18 = vpop.f32.mrb[68].mxu1 }
 0x440   : > { %v13793_v3 = vpop.f32.mrb[69].mxu1 }
 0x441   : > { %v13794_v24 = vadd.f32 %v13793_v3, %v13792_v18  ;;  %v13795_v38 = vpop.f32.mrb[70].mxu1  ;;  %v15338_v18 = vld [vmem:[%s19893_s2 + $0x978] ss:$12 sps:$4 sm:$0xff]  }
 0x442   : > { %v13796_v41 = vpop.f32.mrb[71].mxu1 }
 0x443   : > { %v13797_v27 = vadd.f32 %v13796_v41, %v13795_v38  ;;  %v15344_v41 = vld [vmem:[%s19893_s2 + $0x994] ss:$12 sps:$4 sm:$0xff]  }
 0x447   : > { %v3298_v19 = vpop.f32.mrb[44].mxu0  ;;  %v13798_v28 = vpop.f32.mrb[72].mxu1 }
 0x448   : > { %v3300_v29 = vpop.f32.mrb[45].mxu0  ;;  %v13799_v30 = vpop.f32.mrb[73].mxu1 }
 0x449   : > { %v13800_v31 = vadd.f32 %v13799_v30, %v13798_v28  ;;  %v3302_v32 = vpop.f32.mrb[46].mxu0  ;;  %v13801_v33 = vpop.f32.mrb[74].mxu1  ;;  %v15349_v30 = vld [vmem:[%s19893_s2 + $0x9b0] ss:$12 sps:$4 sm:$0xff]  }
 0x44a   : > { %v3303_v26 = vpop.f32.mrb[47].mxu0  ;;  %v13802_v34 = vpop.f32.mrb[75].mxu1  ;;  %v15352_v32 = vld [vmem:[%s19893_s2 + $0x9c4] ss:$12 sps:$4 sm:$0xff]   ;;  %v15353_v33 = vld [vmem:[%s19893_s2 + $0x9c8] ss:$12 sps:$4 sm:$0xff]  }
 0x44b   : > { %v15350_v26 = vld [vmem:[%s19893_s2 + $0x9c0] ss:$12 sps:$4 sm:$0xff]  }
 0x457   : > { %v14446_v13 = vpop.f32.mrb[76].mxu1 }
 0x458   : > { %v3447_v35 = vadd.f32 %v14446_v13, %v13800_v31  ;;  %v3438_v36 = vpop.f32.mrb[77].mxu1  ;;  %v15346_v31 = vld [vmem:[%s19893_s2 + $0x9a8] ss:$12 sps:$4 sm:$0xff]  }
 0x459   : > { %v3439_v37 = vadd.f32 %v13794_v24, %v3438_v36  ;;  %v14447_v39 = vpop.f32.mrb[78].mxu1 }
 0x45a   : > { %v17531_v40 = vadd.f32 %v3447_v35, %v17283_v47  ;;  %v3441_v42 = vpop.f32.mrb[79].mxu1 }
 0x45b   : > { %v17534_v43 = vadd.f32 %v3439_v37, %v17286_v48  ;;  %v3442_v44 = vadd.f32 %v13797_v27, %v3441_v42  ;;  %v15345_v27 = vld [vmem:[%s19893_s2 + $0x998] ss:$12 sps:$4 sm:$0xff]  }
 0x45c   : > { %v15379_v42 = vld [vmem:[%s19893_s2 + $0xa84] ss:$12 sps:$4 sm:$0xff]  }
 0x45d   : > { %v17537_v45 = vadd.f32 %v3442_v44, %v17289_v51  ;;  %v15334_v51 = vld [vmem:[%s19893_s2 + $0x960] ss:$12 sps:$4 sm:$0xff]  }
 0x45e   : > { %v3349_v46 = vpop.f32.mrb[48].mxu0  ;;  %v15383_v44 = vld [vmem:[%s19893_s2 + $0xaa0] ss:$12 sps:$4 sm:$0xff]  }
 0x45f   : > { %v3350_v25 = vadd.f32 %v3349_v46, %v3298_v19  ;;  %v3351_v49 = vpop.f32.mrb[49].mxu0  ;;  %v15384_v46 = vld [vmem:[%s19893_s2 + $0x9e0] ss:$12 sps:$4 sm:$0xff]  }
 0x460   : > { %v3352_v52 = vadd.f32 %v3351_v49, %v3300_v29  ;;  %v3353_v53 = vpop.f32.mrb[50].mxu0  ;;  %v15348_v29 = vld [vmem:[%s19893_s2 + $0x9ac] ss:$12 sps:$4 sm:$0xff]   ;;  %v15382_v49 = vld [vmem:[%s19893_s2 + $0xa9c] ss:$12 sps:$4 sm:$0xff]  }
 0x461   : > { %v17540_v23 = vadd.f32 %v3350_v25, %v17292_v58  ;;  %v3354_v54 = vpop.f32.mrb[51].mxu0  ;;  %v15341_v58 = vld [vmem:[%s19893_s2 + $0x980] ss:$12 sps:$4 sm:$0xff]  }
 0x462   : > { %v17543_v47 = vadd.f32 %v3352_v52, %v17295_v21  ;;  %v15377_v25 = vld [vmem:[%s19893_s2 + $0xa80] ss:$12 sps:$4 sm:$0xff]   ;;  %v15380_v52 = vld [vmem:[%s19893_s2 + $0xa98] ss:$12 sps:$4 sm:$0xff]  }
 0x463   : > { %v15387_v53 = vld [vmem:[%s19893_s2 + $0xab4] ss:$12 sps:$4 sm:$0xff]   ;;  %v15388_v54 = vld [vmem:[%s19893_s2 + $0xab8] ss:$12 sps:$4 sm:$0xff]  }
 0x46f   : > { %v3513_v57 = vpop.f32.mrb[80].mxu1 }
 0x470   : > { %v3515_v61 = vpop.f32.mrb[81].mxu1 }
 0x471   : > { %v3517_v48 = vpop.f32.mrb[82].mxu1 }
 0x472   : > { %v3578_v6 = vpack.c.bf16 %v3517_v48, %v3513_v57  ;;  %v3519_v9 = vpop.f32.mrb[83].mxu1  ;;  %v15385_v57 = vld [vmem:[%s19893_s2 + $0xab0] ss:$12 sps:$4 sm:$0xff]   ;;  %v15392_v48 = vld [vmem:[%s19893_s2 + $0xacc] ss:$12 sps:$4 sm:$0xff]  }
 0x473   : > { %v3579_v63 = vpack.c.bf16 %v3519_v9, %v3515_v61  ;;  %v15389_v61 = vld [vmem:[%s19893_s2 + $0x9f8] ss:$12 sps:$4 sm:$0xff]   ;;  %v15390_v9 = vld [vmem:[%s19893_s2 + $0xac8] ss:$12 sps:$4 sm:$0xff]  }
 0x475   : > { %4043 = vmatprep.mubr.bf16.mxu0 %v3579_v63  ;;  %4145 = vmatprep.mubr.bf16.mxu1 %v3579_v63  ;;  %v15394_v63 = vld [vmem:[%s19893_s2 + $0xa10] ss:$12 sps:$4 sm:$0xff]  }
 0x476   : > { %4044 = vmatmul.mubr.bf16.vlgmr.msra.gmra.mrb[16].mxu0 %v3578_v6  ;;  %4146 = vmatmul.mubr.bf16.vlgmr.msra.gmra.mrb[92].mxu1 %v3578_v6  ;;  %v15393_v6 = vld [vmem:[%s19893_s2 + $0xad0] ss:$12 sps:$4 sm:$0xff]  }
 0x477   : > { %v3523_v21 = vpop.f32.mrb[84].mxu1  ;;  %4063 = vmatpush1.bf16.msra.mxu0 %v15334_v51  ;;  %14465 = vmatpush3.bf16.msra.mxu1 %v15337_v15  ;;  %v15342_v15 = vld [vmem:[%s19893_s2 + $0x990] ss:$12 sps:$4 sm:$0xff]  }
 0x478   : > { %v3525_v3 = vpop.f32.mrb[85].mxu1  ;;  %4064 = vmatprep.subr.bf16.mxu0 %v15340_v14  ;;  %14466 = vmatprep.subr.bf16.mxu1 %v15341_v58  ;;  %v3581_v19 = vpack.c.bf16 %v3523_v21, %v3523_v21  ;;  %v15397_v51 = vld [vmem:[%s19893_s2 + $0xae4] ss:$12 sps:$4 sm:$0xff]   ;;  %v15398_v14 = vld [vmem:[%s19893_s2 + $0xae8] ss:$12 sps:$4 sm:$0xff]  }
 0x479   : > { %v3582_v24 = vpack.c.bf16 %v3525_v3, %v3525_v3  ;;  %v3527_v38 = vpop.f32.mrb[86].mxu1  ;;  %v15399_v21 = vld [vmem:[%s19893_s2 + $0xa28] ss:$12 sps:$4 sm:$0xff]  }
 0x47a   : > { %v3528_v28 = vpop.f32.mrb[87].mxu1  ;;  %v15402_v3 = vld [vmem:[%s19893_s2 + $0xafc] ss:$12 sps:$4 sm:$0xff]   ;;  %v15404_v38 = vld [vmem:[%s19893_s2 + $0xa40] ss:$12 sps:$4 sm:$0xff]  }
 0x47b   : > { %4053 = vmatprep.mubr.bf16.mxu0 %v3582_v24  ;;  %4065 = vmatpush1.bf16.msra.mxu0 %v15338_v18  ;;  %v15400_v18 = vld [vmem:[%s19893_s2 + $0xaf8] ss:$12 sps:$4 sm:$0xff]  }
 0x47c   : > { %4153 = vmatprep.mubr.bf16.mxu1 %v3582_v24  ;;  %14467 = vmatpush3.bf16.msra.mxu1 %v15341_v58  ;;  %v15395_v58 = vld [vmem:[%s19893_s2 + $0xae0] ss:$12 sps:$4 sm:$0xff]   ;;  %v15409_v28 = vld [vmem:[%s19893_s2 + $0xa58] ss:$12 sps:$4 sm:$0xff]  }
 0x47d   : > { %4066 = vmatprep.subr.bf16.mxu0 %v15344_v41  ;;  %14468 = vmatprep.subr.bf16.mxu1 %v15345_v27  ;;  %v15403_v24 = vld [vmem:[%s19893_s2 + $0xb00] ss:$12 sps:$4 sm:$0xff]  }
 0x47e   : > { %4054 = vmatmul.mubr.bf16.gmra.mrb[52].mxu0 %v3581_v19  ;;  %4154 = vmatmul.mubr.bf16.gmra.mrb[96].mxu1 %v3581_v19  ;;  %v15407_v41 = vld [vmem:[%s19893_s2 + $0xb14] ss:$12 sps:$4 sm:$0xff]   ;;  %v15405_v19 = vld [vmem:[%s19893_s2 + $0xb10] ss:$12 sps:$4 sm:$0xff]  }
 0x47f   : > { %4067 = vmatpush1.bf16.msra.mxu0 %v15342_v15  ;;  %4094 = vmatprep.mubr.bf16.mxu0 %v16210_v1  ;;  %v15412_v15 = vld [vmem:[%s19893_s2 + $0xb2c] ss:$12 sps:$4 sm:$0xff]  }
 0x480   : > { %14469 = vmatpush3.bf16.msra.mxu1 %v15345_v27  ;;  %4068 = vmatprep.subr.bf16.mxu0 %v15348_v29  ;;  %v15408_v27 = vld [vmem:[%s19893_s2 + $0xb18] ss:$12 sps:$4 sm:$0xff]   ;;  %v15413_v29 = vld [vmem:[%s19893_s2 + $0xb30] ss:$12 sps:$4 sm:$0xff]  }
 0x481   : > { %14470 = vmatprep.subr.bf16.mxu1 %v15349_v30 }
 0x483   : > { %4069 = vmatpush1.bf16.msra.mxu0 %v15346_v31  ;;  %v15414_v31 = vld [vmem:[%s19893_s2 + $0xa70] ss:$12 sps:$4 sm:$0xff]  }
 0x484   : > { %14471 = vmatpush3.bf16.msra.mxu1 %v15349_v30  ;;  %4070 = vmatprep.subr.bf16.mxu0 %v15352_v32  ;;  %v15410_v30 = vld [vmem:[%s19893_s2 + $0xb28] ss:$12 sps:$4 sm:$0xff]   ;;  %v15417_v32 = vld [vmem:[%s19893_s2 + $0xb44] ss:$12 sps:$4 sm:$0xff]  }
 0x485   : > { %14472 = vmatprep.subr.bf16.mxu1 %v15353_v33 }
 0x487   : > { %v14462_v34 = vpop.f32.mrb[88].mxu1  ;;  %4071 = vmatpush1.bf16.msra.mxu0 %v15350_v26  ;;  %v15415_v26 = vld [vmem:[%s19893_s2 + $0xb40] ss:$12 sps:$4 sm:$0xff]  }
 0x488   : > { %v3564_v13 = vpop.f32.mrb[89].mxu1  ;;  %14473 = vmatpush3.bf16.msra.mxu1 %v15353_v33  ;;  %14478 = vmatprep.subr.bf16.mxu0 %v17112_v7  ;;  %v3583_v39 = vpack.c.bf16 %v14462_v34, %v14462_v34  ;;  %v15418_v33 = vld [vmem:[%s19893_s2 + $0xb48] ss:$12 sps:$4 sm:$0xff]  }
 0x489   : > { %v14463_v35 = vpop.f32.mrb[90].mxu1  ;;  %4236 = vmatprep.subr.bf16.mxu1 %v17045_v50  ;;  %v15354_v50 = vld [vmem:[%s19892_s1 + $0x3c] sm:$0xff]   ;;  %v15419_v34 = vld [vmem:[%s19893_s2 + $0xa88] ss:$12 sps:$4 sm:$0xff]  }
 0x48a   : > { %v3567_v36 = vpop.f32.mrb[91].mxu1  ;;  %v15423_v35 = vld [vmem:[%s19893_s2 + $0xb60] ss:$12 sps:$4 sm:$0xff]  }
 0x48b   : > { %v3580_v37 = vpack.c.bf16 %v3567_v36, %v3564_v13  ;;  %v15422_v13 = vld [vmem:[%s19893_s2 + $0xb5c] ss:$12 sps:$4 sm:$0xff]  }
 0x48d   : > { %12180 = vmatmul.mubr.msk.bf16.vlgmr.msra.gmra.mrb[16].mxu0 %vm1202_vm2, %v3580_v37  ;;  %14474 = vmatprep.mubr.msk.bf16.mxu1 %vm1202_vm2, %v3580_v37 }
 0x48e   : > { %14475 = vmatmul.mubr.msk.bf16.vlgmr.msra.gmra.mrb[100].mxu1 %vm1202_vm2, %v3583_v39  ;;  %4104 = vmatprep.mubr.bf16.mxu0 %v16210_v1 }
 0x48f   : > { %4237 = vmatpush1.bf16.msra.mxu1 %v17059_v55  ;;  %14479 = vmatpush3.bf16.msra.mxu0 %v17112_v7  ;;  %v15358_v55 = vld [vmem:[%s19893_s2 + $0x9dc] ss:$12 sps:$4 sm:$0xff]   ;;  %v15368_v7 = vld [vmem:[%s19893_s2 + $0xa38] ss:$12 sps:$4 sm:$0xff]  }
 0x490   : > { %4238 = vmatprep.subr.bf16.mxu1 %v17064_v56  ;;  %14480 = vmatprep.subr.bf16.mxu0 %v17119_v8  ;;  %v15356_v56 = vld [vmem:[%s19893_s2 + $0x9d8] ss:$12 sps:$4 sm:$0xff]  }
 0x491   : > { %4268 = vmatprep.mubr.bf16.mxu1 %v16210_v1 }
 0x493   : > { %4239 = vmatpush1.bf16.msra.mxu1 %v17074_v59  ;;  %14481 = vmatpush3.bf16.msra.mxu0 %v17119_v8  ;;  %v15355_v59 = vld [vmem:[%s19892_s1 + $0x44] ss:$0 sps:$4 sm:$0x33]   ;;  %v15370_v8 = vld [vmem:[%s19893_s2 + $0xa3c] ss:$12 sps:$4 sm:$0xff]  }
 0x494   : > { %4240 = vmatprep.subr.bf16.mxu1 %v17078_v60  ;;  %14482 = vmatprep.subr.bf16.mxu0 %v17127_v10  ;;  %v15361_v60 = vld [vmem:[%s19893_s2 + $0x9f4] ss:$12 sps:$4 sm:$0xff]  }
 0x495   : > { %12181 = vmatmul.mubr.msk.bf16.gmra.mrb[56].mxu0 %vm1202_vm2, %v3583_v39 }
 0x496   : > { %14490 = vmatprep.mubr.msk.bf16.mxu0 %vm452_vm0, %v15354_v50 }
 0x497   : > { %4241 = vmatpush1.bf16.msra.mxu1 %v17086_v62  ;;  %14483 = vmatpush3.bf16.msra.mxu0 %v17127_v10  ;;  %v15359_v62 = vld [vmem:[%s19893_s2 + $0x9f0] ss:$12 sps:$4 sm:$0xff]  }
 0x498   : > { %4242 = vmatprep.subr.bf16.mxu1 %v17090_v0  ;;  %14484 = vmatprep.subr.bf16.mxu0 %v17134_v11  ;;  %v15364_v0 = vld [vmem:[%s19893_s2 + $0xa0c] ss:$12 sps:$4 sm:$0xff]   ;;  %v15371_v10 = vld [vmem:[%s19893_s2 + $0xa50] ss:$12 sps:$4 sm:$0xff]  }
 0x49b   : > { %4243 = vmatpush1.bf16.msra.mxu1 %v17094_v2  ;;  %14485 = vmatpush3.bf16.msra.mxu0 %v17134_v11  ;;  %v15362_v2 = vld [vmem:[%s19893_s2 + $0xa08] ss:$12 sps:$4 sm:$0xff]  }
 0x49c   : > { %4244 = vmatprep.subr.bf16.mxu1 %v17098_v4  ;;  %14486 = vmatprep.subr.bf16.mxu0 %v17139_v16  ;;  %v15367_v4 = vld [vmem:[%s19893_s2 + $0xa24] ss:$12 sps:$4 sm:$0xff]   ;;  %v15373_v11 = vld [vmem:[%s19893_s2 + $0xa54] ss:$12 sps:$4 sm:$0xff]  }
 0x49f   : > { %4245 = vmatpush1.bf16.msra.mxu1 %v17102_v5  ;;  %14487 = vmatpush3.bf16.msra.mxu0 %v17139_v16  ;;  %v15365_v5 = vld [vmem:[%s19893_s2 + $0xa20] ss:$12 sps:$4 sm:$0xff]   ;;  %v15374_v16 = vld [vmem:[%s19893_s2 + $0xa68] ss:$12 sps:$4 sm:$0xff]  }
 0x4a0   : > { %12189 = vmatprep.subr.msk.bf16.mxu1 %vm459_vm1, %v16339_v17  ;;  %14855 = vmatprep.subr.msk.bf16.mxu0 %vm459_vm1, %v17144_v12  ;;  %v15376_v12 = vld [vmem:[%s19893_s2 + $0xa6c] ss:$12 sps:$4 sm:$0xff]  }
 0x4a3   : > { %4247 = vmatpush1.bf16.msra.mxu1 %v16345_v20  ;;  %14489 = vmatpush3.bf16.msra.mxu0 %v16352_v22 }
 0x4a4   : > { %4768 = vmatprep.subr.bf16.mxu0 %v15358_v55  ;;  %13862 = vmatprep.subr.bf16.mxu1 %v15383_v44 }
 0x4a6   : > { %12190 = vmatmul.mubr.msk.bf16.vlgmr.msra.gmra.mrb[104].mxu1 %vm452_vm0, %v15354_v50  ;;  %14491 = vmatmul.mubr.msk.bf16.vlgmr.msra.gmra.mrb[60].mxu0 %vm452_vm0, %v15355_v59 }
 0x4a7   : > { %4278 = vmatprep.mubr.bf16.mxu1 %v16210_v1  ;;  %4769 = vmatpush1.bf16.msra.mxu0 %v15356_v56 }
 0x4a8   : > { %4770 = vmatprep.subr.bf16.mxu0 %v15361_v60  ;;  %13863 = vmatpush3.bf16.msra.mxu1 %v15384_v46 }
 0x4a9   : > { %13864 = vmatprep.subr.bf16.mxu1 %v15388_v54 }
 0x4ab   : > { %4771 = vmatpush1.bf16.msra.mxu0 %v15359_v62 }
 0x4ac   : > { %4772 = vmatprep.subr.bf16.mxu0 %v15364_v0  ;;  %13865 = vmatpush3.bf16.msra.mxu1 %v15389_v61 }
 0x4ad   : > { %13866 = vmatprep.subr.bf16.mxu1 %v15393_v6 }
 0x4ae   : > { %12191 = vmatmul.mubr.msk.bf16.gmra.mrb[108].mxu1 %vm452_vm0, %v15355_v59 }
 0x4af   : > { %4773 = vmatpush1.bf16.msra.mxu0 %v15362_v2 }
 0x4b0   : > { %4774 = vmatprep.subr.bf16.mxu0 %v15367_v4  ;;  %13867 = vmatpush3.bf16.msra.mxu1 %v15394_v63 }
 0x4b1   : > { %13868 = vmatprep.subr.bf16.mxu1 %v15398_v14 }
 0x4b3   : > { %4775 = vmatpush1.bf16.msra.mxu0 %v15365_v5 }
 0x4b4   : > { %4776 = vmatprep.subr.bf16.mxu0 %v15370_v8  ;;  %13869 = vmatpush3.bf16.msra.mxu1 %v15399_v21 }
 0x4b5   : > { %13870 = vmatprep.subr.bf16.mxu1 %v15403_v24 }
 0x4b7   : > { %4777 = vmatpush1.bf16.msra.mxu0 %v15368_v7 }
 0x4b8   : > { %4778 = vmatprep.subr.bf16.mxu0 %v15373_v11  ;;  %13871 = vmatpush3.bf16.msra.mxu1 %v15404_v38  ;;  %v15420_v38 = vld [vmem:[%s19893_s2 + $0xb58] ss:$12 sps:$4 sm:$0xff]  }
 0x4b9   : > { %13872 = vmatprep.subr.bf16.mxu1 %v15408_v27 }
 0x4bb   : > { %4779 = vmatpush1.bf16.msra.mxu0 %v15371_v10 }
 0x4bc   : > { %4780 = vmatprep.subr.bf16.mxu0 %v15376_v12  ;;  %13873 = vmatpush3.bf16.msra.mxu1 %v15409_v28 }
 0x4bd   : > { %13874 = vmatprep.subr.bf16.mxu1 %v15413_v29 }
 0x4bf   : > { %4781 = vmatpush1.bf16.msra.mxu0 %v15374_v16 }
 0x4c0   : > { %4782 = vmatprep.subr.bf16.mxu0 %v15379_v42  ;;  %13875 = vmatpush3.bf16.msra.mxu1 %v15414_v31  ;;  %v15431_v31 = vld [vmem:[%s19893_s2 + $0xb90] ss:$12 sps:$4 sm:$0xff]  }
 0x4c1   : > { %13876 = vmatprep.subr.bf16.mxu1 %v15418_v33 }
 0x4c3   : > { %4783 = vmatpush1.bf16.msra.mxu0 %v15377_v25 }
 0x4c4   : > { %4784 = vmatprep.subr.bf16.mxu0 %v15382_v49  ;;  %13877 = vmatpush3.bf16.msra.mxu1 %v15419_v34  ;;  %v15434_v34 = vld [vmem:[%s19893_s2 + $0xba4] ss:$12 sps:$4 sm:$0xff]  }
 0x4c5   : > { %14494 = vmatprep.subr.bf16.mxu1 %v15423_v35 }
 0x4c7   : > { %4785 = vmatpush1.bf16.msra.mxu0 %v15380_v52 }
 0x4c8   : > { %4786 = vmatprep.subr.bf16.mxu0 %v15387_v53 }
 0x4cb   : > { %4787 = vmatpush1.bf16.msra.mxu0 %v15385_v57 }
 0x4cc   : > { %4788 = vmatprep.subr.bf16.mxu0 %v15392_v48 }
 0x4cf   : > { %4789 = vmatpush1.bf16.msra.mxu0 %v15390_v9 }
 0x4d0   : > { %4790 = vmatprep.subr.bf16.mxu0 %v15397_v51 }
 0x4d3   : > { %4791 = vmatpush1.bf16.msra.mxu0 %v15395_v58 }
 0x4d4   : > { %4792 = vmatprep.subr.bf16.mxu0 %v15402_v3 }
 0x4d7   : > { %4793 = vmatpush1.bf16.msra.mxu0 %v15400_v18 }
 0x4d8   : > { %4794 = vmatprep.subr.bf16.mxu0 %v15407_v41  ;;  %v15427_v41 = vld [vmem:[%s19893_s2 + $0xb78] ss:$12 sps:$4 sm:$0xff]  }
 0x4db   : > { %4795 = vmatpush1.bf16.msra.mxu0 %v15405_v19  ;;  %v15424_v19 = vld [vmem:[%s19893_s2 + $0xb70] ss:$12 sps:$4 sm:$0xff]  }
 0x4dc   : > { %4796 = vmatprep.subr.bf16.mxu0 %v15412_v15  ;;  %v15430_v15 = vld [vmem:[%s19893_s2 + $0xb8c] ss:$12 sps:$4 sm:$0xff]  }
 0x4df   : > { %4797 = vmatpush1.bf16.msra.mxu0 %v15410_v30 }
 0x4e0   : > { %4798 = vmatprep.subr.bf16.mxu0 %v15417_v32 }
 0x4e3   : > { %4799 = vmatpush1.bf16.msra.mxu0 %v15415_v26  ;;  %v15428_v26 = vld [vmem:[%s19893_s2 + $0xb88] ss:$12 sps:$4 sm:$0xff]  }
 0x4e4   : > { %4819 = vmatprep.subr.bf16.mxu0 %v15422_v13  ;;  %v15435_v13 = vld [vmem:[%s19893_s2 + $0xba8] ss:$12 sps:$4 sm:$0xff]  }
 0x549   : > { %v13835_v36 = vpop.f32.mrb[92].mxu1 }
 0x54a   : > { %v13836_v37 = vpop.f32.mrb[93].mxu1 }
 0x54b   : > { %v13837_v39 = vadd.f32 %v13836_v37, %v13835_v36  ;;  %v13838_v50 = vpop.f32.mrb[94].mxu1  ;;  %v15438_v36 = vld [vmem:[%s19893_s2 + $0xbbc] ss:$12 sps:$4 sm:$0xff]   ;;  %v15439_v37 = vld [vmem:[%s19893_s2 + $0xbc0] ss:$12 sps:$4 sm:$0xff]  }
 0x54c   : > { %v13839_v55 = vpop.f32.mrb[95].mxu1 }
 0x54d   : > { %v13840_v56 = vadd.f32 %v13839_v55, %v13838_v50  ;;  %v15444_v50 = vld [vmem:[%s19893_s2 + $0xbd4] ss:$12 sps:$4 sm:$0xff]  }
 0x551   : > { %v4055_v59 = vpop.f32.mrb[52].mxu0  ;;  %v13841_v60 = vpop.f32.mrb[96].mxu1 }
 0x552   : > { %v4057_v62 = vpop.f32.mrb[53].mxu0  ;;  %v13842_v0 = vpop.f32.mrb[97].mxu1 }
 0x553   : > { %v13843_v2 = vadd.f32 %v13842_v0, %v13841_v60  ;;  %v4059_v4 = vpop.f32.mrb[54].mxu0  ;;  %v13844_v5 = vpop.f32.mrb[98].mxu1  ;;  %v15447_v60 = vld [vmem:[%s19893_s2 + $0xbec] ss:$12 sps:$4 sm:$0xff]   ;;  %v17855_v0 = vld [vmem:[%s16322_s27 + $0x1c] ss:$12 sps:$4 sm:$0xff]  }
 0x554   : > { %v4060_v7 = vpop.f32.mrb[55].mxu0  ;;  %v13845_v8 = vpop.f32.mrb[99].mxu1  ;;  %v15450_v4 = vld [vmem:[%s19893_s2 + $0xc04] ss:$12 sps:$4 sm:$0xff]  }
 0x555   : > { %v17866_v5 = vld [vmem:[%s16322_s27 + $0x18] ss:$12 sps:$4 sm:$0xff]   ;;  %v17870_v7 = vld [vmem:[%s16322_s27 + $0x34] ss:$12 sps:$4 sm:$0xff]  }
 0x556   : > { %v15448_v8 = vld [vmem:[%s19893_s2 + $0xc00] ss:$12 sps:$4 sm:$0xff]  }
 0x561   : > { %v14476_v10 = vpop.f32.mrb[100].mxu1 }
 0x562   : > { %v4204_v11 = vadd.f32 %v14476_v10, %v13843_v2  ;;  %v4195_v16 = vpop.f32.mrb[101].mxu1  ;;  %v15445_v2 = vld [vmem:[%s19893_s2 + $0xbe8] ss:$12 sps:$4 sm:$0xff]  }
 0x563   : > { %v4196_v12 = vadd.f32 %v13837_v39, %v4195_v16  ;;  %v14477_v42 = vpop.f32.mrb[102].mxu1  ;;  %v15436_v39 = vld [vmem:[%s19893_s2 + $0xbb8] ss:$12 sps:$4 sm:$0xff]   ;;  %v15453_v10 = vld [vmem:[%s19893_s2 + $0xc1c] ss:$12 sps:$4 sm:$0xff]  }
 0x564   : > { %v17779_v44 = vadd.f32 %v4204_v11, %v17531_v40  ;;  %v4198_v46 = vpop.f32.mrb[103].mxu1  ;;  %v17881_v11 = vld [vmem:[%s16322_s27 + $0x30] ss:$12 sps:$4 sm:$0xff]   ;;  %v17885_v16 = vld [vmem:[%s16322_s27 + $0x4c] ss:$12 sps:$4 sm:$0xff]  }
 0x565   : > { %v17782_v25 = vadd.f32 %v4196_v12, %v17534_v43  ;;  %v4199_v49 = vadd.f32 %v13840_v56, %v4198_v46  ;;  %v17838_v56 = vld [vmem:[%s16322_s27 + $0x4] ss:$12 sps:$4 sm:$0xff]   ;;  %v17892_v42 = vld [vmem:[%s16322_s27 + $0x48] ss:$12 sps:$4 sm:$0xff]  }
 0x566   : > { %v15451_v12 = vld [vmem:[%s19893_s2 + $0xc18] ss:$12 sps:$4 sm:$0xff]  }
 0x567   : > { %v17785_v52 = vadd.f32 %v4199_v49, %v17537_v45  ;;  %v17896_v46 = vld [vmem:[%s16322_s27 + $0x64] ss:$12 sps:$4 sm:$0xff]   ;;  %v17900_v49 = vld [vmem:[%s16322_s27 + $0x60] ss:$12 sps:$4 sm:$0xff]  }
 0x568   : > { %v4106_v53 = vpop.f32.mrb[56].mxu0 }
 0x569   : > { %v4107_v54 = vadd.f32 %v4106_v53, %v4055_v59  ;;  %v4108_v57 = vpop.f32.mrb[57].mxu0  ;;  %v15442_v59 = vld [vmem:[%s19893_s2 + $0xbd0] ss:$12 sps:$4 sm:$0xff]   ;;  %v15440_v53 = vld [vmem:[%s19892_s1 + $0x48] sm:$0xff]  }
 0x56a   : > { %v4109_v61 = vadd.f32 %v4108_v57, %v4057_v62  ;;  %v4110_v48 = vpop.f32.mrb[58].mxu0  ;;  %v17850_v62 = vld [vmem:[%s16322_s27] ss:$12 sps:$4 sm:$0xff]  }
 0x56b   : > { %v17788_v6 = vadd.f32 %v4107_v54, %v17540_v23  ;;  %v4111_v9 = vpop.f32.mrb[59].mxu0  ;;  %v17910_v54 = vld [vmem:[%s16322_s27 + $0x8] ss:$12 sps:$4 sm:$0xff]   ;;  %v17917_v57 = vld [vmem:[%s16322_s27 + $0x20] ss:$12 sps:$4 sm:$0xff]  }
 0x56c   : > { %v17791_v40 = vadd.f32 %v4109_v61, %v17543_v47  ;;  %v15426_v47 = vld [vmem:[%s19893_s2 + $0xb74] ss:$12 sps:$4 sm:$0xff]   ;;  %v15441_v61 = vld [vmem:[%s19892_s1 + $0x50] ss:$0 sps:$4 sm:$0x33]  }
 0x56d   : > { %v17925_v48 = vld [vmem:[%s16322_s27 + $0x38] ss:$12 sps:$4 sm:$0xff]   ;;  %v17932_v9 = vld [vmem:[%s16322_s27 + $0x50] ss:$12 sps:$4 sm:$0xff]  }
 0x579   : > { %v4270_v63 = vpop.f32.mrb[104].mxu1  ;;  %v14492_v51 = vpop.f32.mrb[60].mxu0 }
 0x57a   : > { %v4272_v43 = vpop.f32.mrb[105].mxu1  ;;  %v4321_v14 = vpop.f32.mrb[61].mxu0  ;;  %v4340_v55 = vpack.c.bf16 %v14492_v51, %v14492_v51  ;;  %v17942_v51 = vld [vmem:[%s16322_s27 + $0x80] ss:$0 sps:$4 sm:$0x33]  }
 0x57b   : > { %v4274_v58 = vpop.f32.mrb[106].mxu1  ;;  %v14493_v21 = vpop.f32.mrb[62].mxu0 }
 0x57c   : > { %v4335_v45 = vpack.c.bf16 %v4274_v58, %v4270_v63  ;;  %v4276_v18 = vpop.f32.mrb[107].mxu1  ;;  %v4324_v3 = vpop.f32.mrb[63].mxu0  ;;  %v17937_v63 = vld [vmem:[%s16322_s27 + $0x68] ss:$12 sps:$4 sm:$0xff]   ;;  %v15459_v21 = vld [vmem:[%s19893_s2 + $0xc4c] ss:$12 sps:$4 sm:$0xff]  }
 0x57d   : > { %v4336_v24 = vpack.c.bf16 %v4276_v18, %v4272_v43  ;;  %v4337_v23 = vpack.c.bf16 %v4324_v3, %v4321_v14  ;;  %v15456_v43 = vld [vmem:[%s19893_s2 + $0xc34] ss:$12 sps:$4 sm:$0xff]   ;;  %v15454_v14 = vld [vmem:[%s19893_s2 + $0xc30] ss:$12 sps:$4 sm:$0xff]   ;;  %s323_s27 = sand.u32 1, %s16200_s10  }
 0x57e   : > { %v15457_v58 = vld [vmem:[%s19893_s2 + $0xc48] ss:$12 sps:$4 sm:$0xff]   ;;  %v15460_v18 = vld [vmem:[%s19893_s2 + $0xc60] ss:$12 sps:$4 sm:$0xff]   ;;  %s324_s0 = scalar_lea.vmem [#allocation2], %s323_s27  ;;  %s11376_s13 = scalar_lea.sflag [#allocation3], %s323_s27 }
 0x57f   : > { %4800 = vmatprep.mubr.bf16.mxu0 %v4336_v24  ;;  %4902 = vmatprep.mubr.bf16.mxu1 %v4336_v24  ;;  %v15465_v3 = vld [vmem:[%s19893_s2 + $0xc7c] ss:$12 sps:$4 sm:$0xff]   ;;  %v15463_v24 = vld [vmem:[%s19893_s2 + $0xc78] ss:$12 sps:$4 sm:$0xff]   ;;  %s11388_s21 = sshll.u32 %s324_s0, 4  ;;  %s19851_s21 = int_to_ptr.vmem [resolvable:$true] %s11388_s21 }
 0x580   : > { %4801 = vmatmul.mubr.bf16.vlgmr.msra.gmra.mrb[16].mxu0 %v4335_v45  ;;  %4903 = vmatmul.mubr.bf16.vlgmr.msra.gmra.mrb[112].mxu1 %v4335_v45  ;;  %v15462_v45 = vld [vmem:[%s19893_s2 + $0xc64] ss:$12 sps:$4 sm:$0xff]   ;;  %s16146_s25 = scalar_lea.vmem %s19851_s21, 16  ;;  %p16153_p0 = scmp.lt.s32.totalorder %s19851_s21, %s16151_s28 }
 0x581   : > { %4820 = vmatpush1.bf16.msra.mxu0 %v15420_v38  ;;  %14495 = vmatpush3.bf16.msra.mxu1 %v15423_v35  ;;  %v4280_v27 = vpop.f32.mrb[108].mxu1  ;;  %v15432_v35 = vld [vmem:[%s19893_s2 + $0xba0] ss:$12 sps:$4 sm:$0xff]   ;;  %v15469_v38 = vld [vmem:[%s19893_s2 + $0xc98] ss:$12 sps:$4 sm:$0xff]   ;;  %p16147_p11 = scmp.ne.s32.totalorder %s19851_s21, %s16146_s25  ;;  %p16154_p1 = scmp.lt.s32.totalorder %s16152_s29, %s16146_s25 }
 0x582   : > { %4821 = vmatprep.subr.bf16.mxu0 %v15426_v47  ;;  %14496 = vmatprep.subr.bf16.mxu1 %v15427_v41  ;;  %v4282_v28 = vpop.f32.mrb[109].mxu1  ;;  %v4338_v32 = vpack.c.bf16 %v4280_v27, %v4280_v27  ;;  %v15466_v47 = vld [vmem:[%s19893_s2 + $0xc90] ss:$12 sps:$4 sm:$0xff]   ;;  %v15473_v27 = vld [vmem:[%s19893_s2 + $0xcac] ss:$12 sps:$4 sm:$0xff]  }
 0x583   : > { %v4339_v29 = vpack.c.bf16 %v4282_v28, %v4282_v28  ;;  %v4284_v30 = vpop.f32.mrb[110].mxu1  ;;  %v15471_v28 = vld [vmem:[%s19893_s2 + $0xca8] ss:$12 sps:$4 sm:$0xff]   ;;  %p16148_p12 = pnand %p16147_p11, %p16302_p5  ;;  %p16155_p2 = por %p16154_p1, %p16153_p0 }
 0x584   : > { %v4285_v33 = vpop.f32.mrb[111].mxu1  ;;  %v15479_v30 = vld [vmem:[%s19893_s2 + $0xcc8] ss:$12 sps:$4 sm:$0xff]  }
 0x585   : > { %4822 = vmatpush1.bf16.msra.mxu0 %v15424_v19  ;;  %14497 = vmatpush3.bf16.msra.mxu1 %v15427_v41  ;;  %v15470_v41 = vld [vmem:[%s19893_s2 + $0xbd8] ss:$12 sps:$4 sm:$0xff]   ;;  %v15474_v19 = vld [vmem:[%s19893_s2 + $0xcb0] ss:$12 sps:$4 sm:$0xff]   ;;  %p16149_p13 = pneg %p16148_p12 }
 0x586   : > { %4810 = vmatprep.mubr.bf16.mxu0 %v4339_v29  ;;  %4823 = vmatprep.subr.bf16.mxu0 %v15430_v15  ;;  %v15475_v15 = vld [vmem:[%s19893_s2 + $0xbf0] ss:$12 sps:$4 sm:$0xff]  }
 0x587   : > { %4910 = vmatprep.mubr.bf16.mxu1 %v4339_v29  ;;  %14498 = vmatprep.subr.bf16.mxu1 %v15431_v31  ;;  %v15478_v29 = vld [vmem:[%s19893_s2 + $0xcc4] ss:$12 sps:$4 sm:$0xff]   ;;  %v15483_v33 = vld [vmem:[%s19893_s2 + $0xcdc] ss:$12 sps:$4 sm:$0xff]   ;;  %p16156_p3 = pnand %p16155_p2, %p16149_p13 }
 0x588   : > { %4811 = vmatmul.mubr.bf16.gmra.mrb[64].mxu0 %v4338_v32  ;;  %4911 = vmatmul.mubr.bf16.gmra.mrb[116].mxu1 %v4338_v32  ;;  %v15480_v32 = vld [vmem:[%s19893_s2 + $0xc08] ss:$12 sps:$4 sm:$0xff]  }
 0x589   : > { %4824 = vmatpush1.bf16.msra.mxu0 %v15428_v26  ;;  %14499 = vmatpush3.bf16.msra.mxu1 %v15431_v31  ;;  %v15476_v31 = vld [vmem:[%s19893_s2 + $0xcc0] ss:$12 sps:$4 sm:$0xff]  }
 0x58a   : > { %4825 = vmatprep.subr.bf16.mxu0 %v15434_v34  ;;  %14500 = vmatprep.subr.bf16.mxu1 %v15435_v13  ;;  %v15484_v26 = vld [vmem:[%s19893_s2 + $0xce0] ss:$12 sps:$4 sm:$0xff]   ;;  %v15481_v34 = vld [vmem:[%s19893_s2 + $0xcd8] ss:$12 sps:$4 sm:$0xff]  }
 0x58b   : > { %14504 = vmatprep.mubr.msk.bf16.mxu1 %vm1202_vm2, %v4337_v23  ;;  %4851 = vmatprep.mubr.bf16.mxu0 %v16210_v1 }
 0x58d   : > { %4826 = vmatpush1.bf16.msra.mxu0 %v15432_v35  ;;  %14501 = vmatpush3.bf16.msra.mxu1 %v15435_v13  ;;  %v15485_v13 = vld [vmem:[%s19893_s2 + $0xc20] ss:$12 sps:$4 sm:$0xff]   ;;  %v15486_v35 = vld [vmem:[%s19893_s2 + $0xcf0] ss:$12 sps:$4 sm:$0xff]  }
 0x58e   : > { %4827 = vmatprep.subr.bf16.mxu0 %v15438_v36  ;;  %14502 = vmatprep.subr.bf16.mxu1 %v15439_v37  ;;  %v15488_v36 = vld [vmem:[%s19893_s2 + $0xcf4] ss:$12 sps:$4 sm:$0xff]  }
 0x591   : > { %4828 = vmatpush1.bf16.msra.mxu0 %v15436_v39  ;;  %14503 = vmatpush3.bf16.msra.mxu1 %v15439_v37  ;;  %v15489_v37 = vld [vmem:[%s19893_s2 + $0xcf8] ss:$12 sps:$4 sm:$0xff]  }
 0x592   : > { %4993 = vmatprep.subr.bf16.mxu1 %v17838_v56  ;;  %5525 = vmatprep.subr.bf16.mxu0 %v15444_v50  ;;  %v15490_v39 = vld [vmem:[%s19893_s2 + $0xc38] ss:$12 sps:$4 sm:$0xff]  }
 0x593   : > { %v15493_v50 = vld [vmem:[%s19893_s2 + $0xd0c] ss:$12 sps:$4 sm:$0xff]  }
 0x594   : > { %12341 = vmatmul.mubr.msk.bf16.vlgmr.msra.gmra.mrb[16].mxu0 %vm1202_vm2, %v4337_v23  ;;  %14505 = vmatmul.mubr.msk.bf16.vlgmr.msra.gmra.mrb[120].mxu1 %vm1202_vm2, %v4340_v55  ;;  %v15468_v23 = vld [vmem:[%s19893_s2 + $0xc94] ss:$12 sps:$4 sm:$0xff]  }
 0x595   : > { %4994 = vmatpush1.bf16.msra.mxu1 %v17850_v62  ;;  %4861 = vmatprep.mubr.bf16.mxu0 %v16210_v1 }
 0x596   : > { %4995 = vmatprep.subr.bf16.mxu1 %v17855_v0  ;;  %5025 = vmatprep.mubr.bf16.mxu1 %v16210_v1 }
 0x597   : > { %5526 = vmatpush1.bf16.msra.mxu0 %v15442_v59  ;;  %v15491_v59 = vld [vmem:[%s19893_s2 + $0xd08] ss:$12 sps:$4 sm:$0xff]  }
 0x598   : > { %5527 = vmatprep.subr.bf16.mxu0 %v15447_v60  ;;  %v15495_v60 = vld [vmem:[%s19893_s2 + $0xc50] ss:$12 sps:$4 sm:$0xff]  }
 0x599   : > { %4996 = vmatpush1.bf16.msra.mxu1 %v17866_v5 }
 0x59a   : > { %4997 = vmatprep.subr.bf16.mxu1 %v17870_v7 }
 0x59b   : > { %5528 = vmatpush1.bf16.msra.mxu0 %v15445_v2  ;;  %v15498_v2 = vld [vmem:[%s19893_s2 + $0xd24] ss:$12 sps:$4 sm:$0xff]  }
 0x59c   : > { %12342 = vmatmul.mubr.msk.bf16.gmra.mrb[68].mxu0 %vm1202_vm2, %v4340_v55  ;;  %5529 = vmatprep.subr.bf16.mxu0 %v15450_v4  ;;  %v15494_v55 = vld [vmem:[%s19893_s2 + $0xd10] ss:$12 sps:$4 sm:$0xff]   ;;  %v15499_v4 = vld [vmem:[%s19893_s2 + $0xd28] ss:$12 sps:$4 sm:$0xff]  }
 0x59d   : > { %4998 = vmatpush1.bf16.msra.mxu1 %v17881_v11 }
 0x59e   : > { %4999 = vmatprep.subr.bf16.mxu1 %v17885_v16 }
 0x59f   : > { %5530 = vmatpush1.bf16.msra.mxu0 %v15448_v8  ;;  %v15496_v8 = vld [vmem:[%s19893_s2 + $0xd20] ss:$12 sps:$4 sm:$0xff]  }
 0x5a0   : > { %5531 = vmatprep.subr.bf16.mxu0 %v15453_v10  ;;  %v15500_v10 = vld [vmem:[%s19893_s2 + $0xc68] ss:$12 sps:$4 sm:$0xff]  }
 0x5a1   : > { %5000 = vmatpush1.bf16.msra.mxu1 %v17892_v42 }
 0x5a2   : > { %5001 = vmatprep.subr.bf16.mxu1 %v17896_v46 }
 0x5a3   : > { %5532 = vmatpush1.bf16.msra.mxu0 %v15451_v12  ;;  %v15503_v12 = vld [vmem:[%s19893_s2 + $0xd3c] ss:$12 sps:$4 sm:$0xff]  }
 0x5a4   : > { %5533 = vmatprep.subr.bf16.mxu0 %v15456_v43  ;;  %v15505_v43 = vld [vmem:[%s19893_s2 + $0xc80] ss:$12 sps:$4 sm:$0xff]  }
 0x5a5   : > { %5002 = vmatpush1.bf16.msra.mxu1 %v17900_v49 }
 0x5a6   : > { %12350 = vmatprep.subr.msk.bf16.mxu1 %vm459_vm1, %v16339_v17 }
 0x5a7   : > { %5534 = vmatpush1.bf16.msra.mxu0 %v15454_v14  ;;  %v15508_v14 = vld [vmem:[%s19893_s2 + $0xd54] ss:$12 sps:$4 sm:$0xff]  }
 0x5a8   : > { %5535 = vmatprep.subr.bf16.mxu0 %v15459_v21 }
 0x5a9   : > { %5004 = vmatpush1.bf16.msra.mxu1 %v16345_v20 }
 0x5aa   : > { %14508 = vmatprep.subr.bf16.mxu1 %v17910_v54 }
 0x5ab   : > { %5536 = vmatpush1.bf16.msra.mxu0 %v15457_v58  ;;  %v15509_v58 = vld [vmem:[%s19893_s2 + $0xd58] ss:$12 sps:$4 sm:$0xff]  }
 0x5ac   : > { %12351 = vmatmul.mubr.msk.bf16.vlgmr.msra.gmra.mrb[124].mxu1 %vm452_vm0, %v15440_v53  ;;  %5537 = vmatprep.subr.bf16.mxu0 %v15462_v45 }
 0x5ad   : > { %14509 = vmatpush3.bf16.msra.mxu1 %v17910_v54  ;;  %5035 = vmatprep.mubr.bf16.mxu1 %v16210_v1 }
 0x5ae   : > { %14510 = vmatprep.subr.bf16.mxu1 %v17917_v57 }
 0x5af   : > { %5538 = vmatpush1.bf16.msra.mxu0 %v15460_v18 }
 0x5b0   : > { %5539 = vmatprep.subr.bf16.mxu0 %v15465_v3 }
 0x5b1   : > { %14511 = vmatpush3.bf16.msra.mxu1 %v17917_v57 }
 0x5b2   : > { %14512 = vmatprep.subr.bf16.mxu1 %v17925_v48 }
 0x5b3   : > { %5540 = vmatpush1.bf16.msra.mxu0 %v15463_v24 }
 0x5b4   : > { %12352 = vmatmul.mubr.msk.bf16.gmra.mrb[128].mxu1 %vm452_vm0, %v15441_v61  ;;  %5541 = vmatprep.subr.bf16.mxu0 %v15468_v23 }
 0x5b5   : > { %14513 = vmatpush3.bf16.msra.mxu1 %v17925_v48  ;;  %14520 = vmatprep.mubr.msk.bf16.mxu1 %vm452_vm0, %v15440_v53  ;;  %v15504_v53 = vld [vmem:[%s19893_s2 + $0xd40] ss:$12 sps:$4 sm:$0xff]  }
 0x5b6   : > { %14514 = vmatprep.subr.bf16.mxu1 %v17932_v9 }
 0x5b7   : > { %5542 = vmatpush1.bf16.msra.mxu0 %v15466_v47 }
 0x5b8   : > { %5543 = vmatprep.subr.bf16.mxu0 %v15473_v27 }
 0x5b9   : > { %14515 = vmatpush3.bf16.msra.mxu1 %v17932_v9 }
 0x5ba   : > { %14516 = vmatprep.subr.bf16.mxu1 %v17937_v63 }
 0x5bb   : > { %5544 = vmatpush1.bf16.msra.mxu0 %v15471_v28 }
 0x5bc   : > { %5545 = vmatprep.subr.bf16.mxu0 %v15478_v29 }
 0x5bd   : > { %14517 = vmatpush3.bf16.msra.mxu1 %v17937_v63 }
 0x5be   : > { %14856 = vmatprep.subr.msk.bf16.mxu1 %vm459_vm1, %v17942_v51 }
 0x5bf   : > { %5546 = vmatpush1.bf16.msra.mxu0 %v15476_v31 }
 0x5c0   : > { %5547 = vmatprep.subr.bf16.mxu0 %v15483_v33 }
 0x5c1   : > { %14519 = vmatpush3.bf16.msra.mxu1 %v16352_v22 }
 0x5c2   : > { %13905 = vmatprep.subr.bf16.mxu1 %v15469_v38 }
 0x5c3   : > { %5548 = vmatpush1.bf16.msra.mxu0 %v15481_v34 }
 0x5c4   : > { %14521 = vmatmul.mubr.msk.bf16.vlgmr.msra.gmra.mrb[132].mxu1 %vm452_vm0, %v15441_v61  ;;  %5549 = vmatprep.subr.bf16.mxu0 %v15488_v36  ;;  %v15501_v61 = vld [vmem:[%s19893_s2 + $0xd38] ss:$12 sps:$4 sm:$0xff]  }
 0x5c5   : > { %13906 = vmatpush3.bf16.msra.mxu1 %v15470_v41 }
 0x5c6   : > { %13907 = vmatprep.subr.bf16.mxu1 %v15474_v19 }
 0x5c7   : > { %5550 = vmatpush1.bf16.msra.mxu0 %v15486_v35 }
 0x5c8   : > { %5551 = vmatprep.subr.bf16.mxu0 %v15493_v50 }
 0x5c9   : > { %13908 = vmatpush3.bf16.msra.mxu1 %v15475_v15 }
 0x5ca   : > { %13909 = vmatprep.subr.bf16.mxu1 %v15479_v30 }
 0x5cb   : > { %5552 = vmatpush1.bf16.msra.mxu0 %v15491_v59 }
 0x5cc   : > { %5553 = vmatprep.subr.bf16.mxu0 %v15498_v2 }
 0x5cd   : > { %13910 = vmatpush3.bf16.msra.mxu1 %v15480_v32 }
 0x5ce   : > { %13911 = vmatprep.subr.bf16.mxu1 %v15484_v26 }
 0x5cf   : > { %5554 = vmatpush1.bf16.msra.mxu0 %v15496_v8 }
 0x5d0   : > { %5555 = vmatprep.subr.bf16.mxu0 %v15503_v12 }
 0x5d1   : > { %13912 = vmatpush3.bf16.msra.mxu1 %v15485_v13 }
 0x5d2   : > { %13913 = vmatprep.subr.bf16.mxu1 %v15489_v37 }
 0x5d3   : > { %5556 = vmatpush1.bf16.msra.mxu0 %v15501_v61 }
 0x5d4   : > { %5576 = vmatprep.subr.bf16.mxu0 %v15508_v14  ;;  %v15512_v14 = vld [vmem:[%s19893_s2 + $0xd6c] ss:$12 sps:$4 sm:$0xff]  }
 0x5d5   : > { %13914 = vmatpush3.bf16.msra.mxu1 %v15490_v39 }
 0x5d6   : > { %13915 = vmatprep.subr.bf16.mxu1 %v15494_v55 }
 0x5d9   : > { %13916 = vmatpush3.bf16.msra.mxu1 %v15495_v60 }
 0x5da   : > { %13917 = vmatprep.subr.bf16.mxu1 %v15499_v4 }
 0x5dd   : > { %13918 = vmatpush3.bf16.msra.mxu1 %v15500_v10 }
 0x5de   : > { %13919 = vmatprep.subr.bf16.mxu1 %v15504_v53 }
 0x5e1   : > { %13920 = vmatpush3.bf16.msra.mxu1 %v15505_v43 }
 0x5e2   : > { %14524 = vmatprep.subr.bf16.mxu1 %v15509_v58 }
 0x653   : > { %v13878_v21 = vpop.f32.mrb[112].mxu1 }
 0x654   : > { %v13879_v45 = vpop.f32.mrb[113].mxu1 }
 0x655   : > { %v13880_v18 = vadd.f32 %v13879_v45, %v13878_v21  ;;  %v13881_v3 = vpop.f32.mrb[114].mxu1  ;;  %v15510_v21 = vld [vmem:[%s19893_s2 + $0xd68] ss:$12 sps:$4 sm:$0xff]  }
 0x656   : > { %v13882_v24 = vpop.f32.mrb[115].mxu1 }
 0x657   : > { %v13883_v38 = vadd.f32 %v13882_v24, %v13881_v3  ;;  %v15516_v24 = vld [vmem:[%s19893_s2 + $0xd84] ss:$12 sps:$4 sm:$0xff]  }
 0x65b   : > { %v4812_v23 = vpop.f32.mrb[64].mxu0  ;;  %v13884_v47 = vpop.f32.mrb[116].mxu1 }
 0x65c   : > { %v4814_v41 = vpop.f32.mrb[65].mxu0  ;;  %v13885_v27 = vpop.f32.mrb[117].mxu1 }
 0x65d   : > { %v13886_v19 = vadd.f32 %v13885_v27, %v13884_v47  ;;  %v4816_v28 = vpop.f32.mrb[66].mxu0  ;;  %v13887_v15 = vpop.f32.mrb[118].mxu1  ;;  %v15521_v27 = vld [vmem:[%s19893_s2 + $0xda0] ss:$12 sps:$4 sm:$0xff]  }
 0x65e   : > { %v4817_v29 = vpop.f32.mrb[67].mxu0  ;;  %v13888_v30 = vpop.f32.mrb[119].mxu1  ;;  %v15524_v28 = vld [vmem:[%s19893_s2 + $0xdb4] ss:$12 sps:$4 sm:$0xff]   ;;  %v15525_v15 = vld [vmem:[%s19893_s2 + $0xdb8] ss:$12 sps:$4 sm:$0xff]  }
 0x65f   : > { %v15522_v29 = vld [vmem:[%s19893_s2 + $0xdb0] ss:$12 sps:$4 sm:$0xff]   ;;  %v15530_v30 = vld [vmem:[%s19893_s2 + $0xdcc] ss:$12 sps:$4 sm:$0xff]  }
 0x667   : > { %v14506_v31 = vpop.f32.mrb[120].mxu1 }
 0x668   : > { %v4961_v32 = vadd.f32 %v14506_v31, %v13886_v19  ;;  %v4952_v33 = vpop.f32.mrb[121].mxu1  ;;  %v15518_v19 = vld [vmem:[%s19893_s2 + $0xd98] ss:$12 sps:$4 sm:$0xff]  }
 0x669   : > { %v4953_v26 = vadd.f32 %v13880_v18, %v4952_v33  ;;  %v14507_v34 = vpop.f32.mrb[122].mxu1 }
 0x66a   : > { %v18075_v13 = vadd.f32 %v4961_v32, %v17779_v44  ;;  %v4955_v35 = vpop.f32.mrb[123].mxu1 }
 0x66b   : > { %v18078_v36 = vadd.f32 %v4953_v26, %v17782_v25  ;;  %v4956_v37 = vadd.f32 %v13883_v38, %v4955_v35  ;;  %v15517_v38 = vld [vmem:[%s19893_s2 + $0xd88] ss:$12 sps:$4 sm:$0xff]  }
 0x66d   : > { %v18081_v39 = vadd.f32 %v4956_v37, %v17785_v52  ;;  %v15506_v52 = vld [vmem:[%s19893_s2 + $0xd50] ss:$12 sps:$4 sm:$0xff]   ;;  %v15528_v37 = vld [vmem:[%s19893_s2 + $0xdc8] ss:$12 sps:$4 sm:$0xff]  }
 0x66f   : > { %v4863_v50 = vpop.f32.mrb[68].mxu0 }
 0x670   : > { %v4864_v55 = vadd.f32 %v4863_v50, %v4812_v23  ;;  %v4865_v59 = vpop.f32.mrb[69].mxu0  ;;  %v15533_v50 = vld [vmem:[%s19893_s2 + $0xde4] ss:$12 sps:$4 sm:$0xff]  }
 0x671   : > { %v4866_v60 = vadd.f32 %v4865_v59, %v4814_v41  ;;  %v4867_v2 = vpop.f32.mrb[70].mxu0  ;;  %v15520_v41 = vld [vmem:[%s19893_s2 + $0xd9c] ss:$12 sps:$4 sm:$0xff]  }
 0x672   : > { %v18084_v4 = vadd.f32 %v4864_v55, %v17788_v6  ;;  %v4868_v8 = vpop.f32.mrb[71].mxu0  ;;  %v15513_v6 = vld [vmem:[%s19893_s2 + $0xd70] ss:$12 sps:$4 sm:$0xff]   ;;  %v15560_v59 = vld [vmem:[%s19893_s2 + $0xea8] ss:$12 sps:$4 sm:$0xff]  }
 0x673   : > { %v18087_v44 = vadd.f32 %v4866_v60, %v17791_v40  ;;  %v15536_v55 = vld [vmem:[%s19893_s2 + $0xdfc] ss:$12 sps:$4 sm:$0xff]   ;;  %v15557_v60 = vld [vmem:[%s19893_s2 + $0xea0] ss:$12 sps:$4 sm:$0xff]  }
 0x674   : > { %v15561_v2 = vld [vmem:[%s19893_s2 + $0xde8] ss:$12 sps:$4 sm:$0xff]  }
 0x675   : > { %v15564_v8 = vld [vmem:[%s19893_s2 + $0xebc] ss:$12 sps:$4 sm:$0xff]  }
 0x67f   : > { %v5027_v10 = vpop.f32.mrb[124].mxu1 }
 0x680   : > { %v5029_v12 = vpop.f32.mrb[125].mxu1 }
 0x681   : > { %v5031_v25 = vpop.f32.mrb[126].mxu1 }
 0x682   : > { %v5092_v53 = vpack.c.bf16 %v5031_v25, %v5027_v10  ;;  %v5033_v61 = vpop.f32.mrb[127].mxu1  ;;  %v15565_v10 = vld [vmem:[%s19893_s2 + $0xec0] ss:$12 sps:$4 sm:$0xff]  }
 0x683   : > { %v5093_v43 = vpack.c.bf16 %v5033_v61, %v5029_v12  ;;  %v15562_v12 = vld [vmem:[%s19893_s2 + $0xeb8] ss:$12 sps:$4 sm:$0xff]   ;;  %v15566_v25 = vld [vmem:[%s19893_s2 + $0xe00] ss:$12 sps:$4 sm:$0xff]  }
 0x684   : > { %v15570_v61 = vld [vmem:[%s19893_s2 + $0xed8] ss:$12 sps:$4 sm:$0xff]  }
 0x685   : > { %5557 = vmatprep.mubr.bf16.mxu0 %v5093_v43  ;;  %5659 = vmatprep.mubr.bf16.mxu1 %v5093_v43  ;;  %v15567_v43 = vld [vmem:[%s19893_s2 + $0xed0] ss:$12 sps:$4 sm:$0xff]  }
 0x686   : > { %5558 = vmatmul.mubr.bf16.vlgmr.msra.gmra.mrb[16].mxu0 %v5092_v53  ;;  %5660 = vmatmul.mubr.bf16.vlgmr.msra.gmra.mrb[136].mxu1 %v5092_v53  ;;  %v15569_v53 = vld [vmem:[%s19893_s2 + $0xed4] ss:$12 sps:$4 sm:$0xff]  }
 0x687   : > { %v5037_v40 = vpop.f32.mrb[128].mxu1  ;;  %5577 = vmatpush1.bf16.msra.mxu0 %v15506_v52  ;;  %14525 = vmatpush3.bf16.msra.mxu1 %v15509_v58  ;;  %v15514_v58 = vld [vmem:[%s19893_s2 + $0xd80] ss:$12 sps:$4 sm:$0xff]   ;;  %v15571_v52 = vld [vmem:[%s19893_s2 + $0xe18] ss:$12 sps:$4 sm:$0xff]  }
 0x688   : > { %v5039_v45 = vpop.f32.mrb[129].mxu1  ;;  %5578 = vmatprep.subr.bf16.mxu0 %v15512_v14  ;;  %14526 = vmatprep.subr.bf16.mxu1 %v15513_v6  ;;  %v5095_v23 = vpack.c.bf16 %v5037_v40, %v5037_v40  ;;  %v15574_v14 = vld [vmem:[%s19893_s2 + $0xeec] ss:$12 sps:$4 sm:$0xff]   ;;  %v15572_v40 = vld [vmem:[%s19893_s2 + $0xee8] ss:$12 sps:$4 sm:$0xff]  }
 0x689   : > { %v5096_v18 = vpack.c.bf16 %v5039_v45, %v5039_v45  ;;  %v5041_v3 = vpop.f32.mrb[130].mxu1  ;;  %v15579_v45 = vld [vmem:[%s19893_s2 + $0xf04] ss:$12 sps:$4 sm:$0xff]  }
 0x68a   : > { %v5042_v47 = vpop.f32.mrb[131].mxu1  ;;  %v15577_v3 = vld [vmem:[%s19893_s2 + $0xf00] ss:$12 sps:$4 sm:$0xff]  }
 0x68b   : > { %5567 = vmatprep.mubr.bf16.mxu0 %v5096_v18  ;;  %5579 = vmatpush1.bf16.msra.mxu0 %v15510_v21  ;;  %v15576_v21 = vld [vmem:[%s19893_s2 + $0xe30] ss:$12 sps:$4 sm:$0xff]   ;;  %v15582_v47 = vld [vmem:[%s19893_s2 + $0xf18] ss:$12 sps:$4 sm:$0xff]  }
 0x68c   : > { %5667 = vmatprep.mubr.bf16.mxu1 %v5096_v18  ;;  %14527 = vmatpush3.bf16.msra.mxu1 %v15513_v6  ;;  %v15575_v6 = vld [vmem:[%s19893_s2 + $0xef0] ss:$12 sps:$4 sm:$0xff]   ;;  %v15580_v18 = vld [vmem:[%s19893_s2 + $0xf08] ss:$12 sps:$4 sm:$0xff]  }
 0x68d   : > { %5580 = vmatprep.subr.bf16.mxu0 %v15516_v24  ;;  %14528 = vmatprep.subr.bf16.mxu1 %v15517_v38  ;;  %v15581_v24 = vld [vmem:[%s19893_s2 + $0xe48] ss:$12 sps:$4 sm:$0xff]  }
 0x68e   : > { %5568 = vmatmul.mubr.bf16.gmra.mrb[72].mxu0 %v5095_v23  ;;  %5668 = vmatmul.mubr.bf16.gmra.mrb[140].mxu1 %v5095_v23  ;;  %v15585_v23 = vld [vmem:[%s19893_s2 + $0xf20] ss:$12 sps:$4 sm:$0xff]  }
 0x68f   : > { %5581 = vmatpush1.bf16.msra.mxu0 %v15514_v58  ;;  %5608 = vmatprep.mubr.bf16.mxu0 %v16210_v1  ;;  %v15586_v58 = vld [vmem:[%s19893_s2 + $0xe60] ss:$12 sps:$4 sm:$0xff]  }
 0x690   : > { %14529 = vmatpush3.bf16.msra.mxu1 %v15517_v38  ;;  %5582 = vmatprep.subr.bf16.mxu0 %v15520_v41  ;;  %v15584_v38 = vld [vmem:[%s19893_s2 + $0xf1c] ss:$12 sps:$4 sm:$0xff]   ;;  %v15589_v41 = vld [vmem:[%s19893_s2 + $0xf34] ss:$12 sps:$4 sm:$0xff]  }
 0x691   : > { %14530 = vmatprep.subr.bf16.mxu1 %v15521_v27 }
 0x693   : > { %5583 = vmatpush1.bf16.msra.mxu0 %v15518_v19  ;;  %v15587_v19 = vld [vmem:[%s19893_s2 + $0xf30] ss:$12 sps:$4 sm:$0xff]  }
 0x694   : > { %14531 = vmatpush3.bf16.msra.mxu1 %v15521_v27  ;;  %5584 = vmatprep.subr.bf16.mxu0 %v15524_v28  ;;  %v15590_v27 = vld [vmem:[%s19893_s2 + $0xf38] ss:$12 sps:$4 sm:$0xff]  }
 0x695   : > { %14532 = vmatprep.subr.bf16.mxu1 %v15525_v15  ;;  %v15591_v28 = vld [vmem:[%s19893_s2 + $0xe78] ss:$12 sps:$4 sm:$0xff]  }
 0x697   : > { %v14522_v31 = vpop.f32.mrb[132].mxu1  ;;  %5585 = vmatpush1.bf16.msra.mxu0 %v15522_v29  ;;  %v15595_v29 = vld [vmem:[%s19893_s2 + $0xf50] ss:$12 sps:$4 sm:$0xff]  }
 0x698   : > { %v5078_v32 = vpop.f32.mrb[133].mxu1  ;;  %14533 = vmatpush3.bf16.msra.mxu1 %v15525_v15  ;;  %6282 = vmatprep.subr.bf16.mxu0 %v15530_v30  ;;  %v5097_v35 = vpack.c.bf16 %v14522_v31, %v14522_v31  ;;  %v15594_v15 = vld [vmem:[%s19893_s2 + $0xf4c] ss:$12 sps:$4 sm:$0xff]  }
 0x699   : > { %v14523_v33 = vpop.f32.mrb[134].mxu1  ;;  %5750 = vmatprep.subr.bf16.mxu1 %v17838_v56  ;;  %v15531_v56 = vld [vmem:[%s19893_s2 + $0xde0] ss:$12 sps:$4 sm:$0xff]  }
 0x69a   : > { %v5081_v26 = vpop.f32.mrb[135].mxu1 }
 0x69b   : > { %v5094_v34 = vpack.c.bf16 %v5081_v26, %v5078_v32 }
 0x69d   : > { %12502 = vmatmul.mubr.msk.bf16.vlgmr.msra.gmra.mrb[16].mxu0 %vm1202_vm2, %v5094_v34  ;;  %14534 = vmatprep.mubr.msk.bf16.mxu1 %vm1202_vm2, %v5094_v34 }
 0x69e   : > { %14535 = vmatmul.mubr.msk.bf16.vlgmr.msra.gmra.mrb[144].mxu1 %vm1202_vm2, %v5097_v35  ;;  %5618 = vmatprep.mubr.bf16.mxu0 %v16210_v1 }
 0x69f   : > { %5751 = vmatpush1.bf16.msra.mxu1 %v17850_v62  ;;  %5782 = vmatprep.mubr.bf16.mxu1 %v16210_v1  ;;  %v15534_v62 = vld [vmem:[%s19893_s2 + $0xdf8] ss:$12 sps:$4 sm:$0xff]  }
 0x6a0   : > { %5752 = vmatprep.subr.bf16.mxu1 %v17855_v0  ;;  %6283 = vmatpush1.bf16.msra.mxu0 %v15528_v37  ;;  %v15526_v0 = vld [vmem:[%s19892_s1 + $0x54] sm:$0xff]  }
 0x6a1   : > { %6284 = vmatprep.subr.bf16.mxu0 %v15533_v50 }
 0x6a3   : > { %5753 = vmatpush1.bf16.msra.mxu1 %v17866_v5  ;;  %v15537_v5 = vld [vmem:[%s19893_s2 + $0xe10] ss:$12 sps:$4 sm:$0xff]  }
 0x6a4   : > { %5754 = vmatprep.subr.bf16.mxu1 %v17870_v7  ;;  %6285 = vmatpush1.bf16.msra.mxu0 %v15531_v56  ;;  %v15540_v7 = vld [vmem:[%s19893_s2 + $0xe28] ss:$12 sps:$4 sm:$0xff]  }
 0x6a5   : > { %12503 = vmatmul.mubr.msk.bf16.gmra.mrb[76].mxu0 %vm1202_vm2, %v5097_v35  ;;  %6286 = vmatprep.subr.bf16.mxu0 %v15536_v55 }
 0x6a7   : > { %5755 = vmatpush1.bf16.msra.mxu1 %v17881_v11  ;;  %v15545_v11 = vld [vmem:[%s19893_s2 + $0xe44] ss:$12 sps:$4 sm:$0xff]  }
 0x6a8   : > { %5756 = vmatprep.subr.bf16.mxu1 %v17885_v16  ;;  %6287 = vmatpush1.bf16.msra.mxu0 %v15534_v62  ;;  %v15543_v16 = vld [vmem:[%s19893_s2 + $0xe40] ss:$12 sps:$4 sm:$0xff]  }
 0x6ab   : > { %5757 = vmatpush1.bf16.msra.mxu1 %v17892_v42  ;;  %v15548_v42 = vld [vmem:[%s19893_s2 + $0xe5c] ss:$12 sps:$4 sm:$0xff]  }
 0x6ac   : > { %5758 = vmatprep.subr.bf16.mxu1 %v17896_v46  ;;  %v15546_v46 = vld [vmem:[%s19893_s2 + $0xe58] ss:$12 sps:$4 sm:$0xff]  }
 0x6af   : > { %5759 = vmatpush1.bf16.msra.mxu1 %v17900_v49  ;;  %v15551_v49 = vld [vmem:[%s19893_s2 + $0xe74] ss:$12 sps:$4 sm:$0xff]  }
 0x6b0   : > { %12511 = vmatprep.subr.msk.bf16.mxu1 %vm459_vm1, %v16339_v17  ;;  %v15527_v17 = vld [vmem:[%s19892_s1 + $0x5c] ss:$0 sps:$4 sm:$0x33]  }
 0x6b3   : > { %5761 = vmatpush1.bf16.msra.mxu1 %v16345_v20  ;;  %v15539_v20 = vld [vmem:[%s19893_s2 + $0xe14] ss:$12 sps:$4 sm:$0xff]  }
 0x6b4   : > { %14538 = vmatprep.subr.bf16.mxu1 %v17910_v54  ;;  %6288 = vmatprep.subr.bf16.mxu0 %v15539_v20 }
 0x6b5   : > { %6289 = vmatpush1.bf16.msra.mxu0 %v15537_v5 }
 0x6b6   : > { %12512 = vmatmul.mubr.msk.bf16.vlgmr.msra.gmra.mrb[148].mxu1 %vm452_vm0, %v15526_v0 }
 0x6b7   : > { %14539 = vmatpush3.bf16.msra.mxu1 %v17910_v54  ;;  %5792 = vmatprep.mubr.bf16.mxu1 %v16210_v1  ;;  %v15555_v54 = vld [vmem:[%s19893_s2 + $0xe90] ss:$12 sps:$4 sm:$0xff]  }
 0x6b8   : > { %14540 = vmatprep.subr.bf16.mxu1 %v17917_v57 }
 0x6bb   : > { %14541 = vmatpush3.bf16.msra.mxu1 %v17917_v57  ;;  %v15556_v57 = vld [vmem:[%s19893_s2 + $0xdd0] ss:$12 sps:$4 sm:$0xff]  }
 0x6bc   : > { %14542 = vmatprep.subr.bf16.mxu1 %v17925_v48 }
 0x6be   : > { %12513 = vmatmul.mubr.msk.bf16.gmra.mrb[152].mxu1 %vm452_vm0, %v15527_v17 }
 0x6bf   : > { %14543 = vmatpush3.bf16.msra.mxu1 %v17925_v48  ;;  %14550 = vmatprep.mubr.msk.bf16.mxu1 %vm452_vm0, %v15526_v0  ;;  %v15549_v48 = vld [vmem:[%s19893_s2 + $0xe70] ss:$12 sps:$4 sm:$0xff]  }
 0x6c0   : > { %14544 = vmatprep.subr.bf16.mxu1 %v17932_v9 }
 0x6c3   : > { %14545 = vmatpush3.bf16.msra.mxu1 %v17932_v9  ;;  %v15554_v9 = vld [vmem:[%s19893_s2 + $0xe8c] ss:$12 sps:$4 sm:$0xff]  }
 0x6c4   : > { %14546 = vmatprep.subr.bf16.mxu1 %v17937_v63 }
 0x6c7   : > { %14547 = vmatpush3.bf16.msra.mxu1 %v17937_v63  ;;  %v15552_v63 = vld [vmem:[%s19893_s2 + $0xe88] ss:$12 sps:$4 sm:$0xff]  }
 0x6c8   : > { %14857 = vmatprep.subr.msk.bf16.mxu1 %vm459_vm1, %v17942_v51  ;;  %v15559_v51 = vld [vmem:[%s19893_s2 + $0xea4] ss:$12 sps:$4 sm:$0xff]  }
 0x6cb   : > { %14549 = vmatpush3.bf16.msra.mxu1 %v16352_v22  ;;  %v15542_v22 = vld [vmem:[%s19893_s2 + $0xe2c] ss:$12 sps:$4 sm:$0xff]  }
 0x6cc   : > { %6290 = vmatprep.subr.bf16.mxu0 %v15542_v22  ;;  %13948 = vmatprep.subr.bf16.mxu1 %v15555_v54 }
 0x6cd   : > { %6291 = vmatpush1.bf16.msra.mxu0 %v15540_v7 }
 0x6ce   : > { %14551 = vmatmul.mubr.msk.bf16.vlgmr.msra.gmra.mrb[156].mxu1 %vm452_vm0, %v15527_v17  ;;  %6292 = vmatprep.subr.bf16.mxu0 %v15545_v11 }
 0x6cf   : > { %13949 = vmatpush3.bf16.msra.mxu1 %v15556_v57 }
 0x6d0   : > { %13950 = vmatprep.subr.bf16.mxu1 %v15560_v59 }
 0x6d1   : > { %6293 = vmatpush1.bf16.msra.mxu0 %v15543_v16 }
 0x6d2   : > { %6294 = vmatprep.subr.bf16.mxu0 %v15548_v42 }
 0x6d3   : > { %13951 = vmatpush3.bf16.msra.mxu1 %v15561_v2 }
 0x6d4   : > { %13952 = vmatprep.subr.bf16.mxu1 %v15565_v10 }
 0x6d5   : > { %6295 = vmatpush1.bf16.msra.mxu0 %v15546_v46 }
 0x6d6   : > { %6296 = vmatprep.subr.bf16.mxu0 %v15551_v49 }
 0x6d7   : > { %13953 = vmatpush3.bf16.msra.mxu1 %v15566_v25 }
 0x6d8   : > { %13954 = vmatprep.subr.bf16.mxu1 %v15570_v61  ;;  %v15598_v61 = vld [vmem:[%s19893_s2 + $0xf64] ss:$12 sps:$4 sm:$0xff]  }
 0x6d9   : > { %6297 = vmatpush1.bf16.msra.mxu0 %v15549_v48 }
 0x6da   : > { %6298 = vmatprep.subr.bf16.mxu0 %v15554_v9 }
 0x6db   : > { %13955 = vmatpush3.bf16.msra.mxu1 %v15571_v52 }
 0x6dc   : > { %13956 = vmatprep.subr.bf16.mxu1 %v15575_v6 }
 0x6dd   : > { %6299 = vmatpush1.bf16.msra.mxu0 %v15552_v63 }
 0x6de   : > { %6300 = vmatprep.subr.bf16.mxu0 %v15559_v51 }
 0x6df   : > { %13957 = vmatpush3.bf16.msra.mxu1 %v15576_v21  ;;  %v15603_v21 = vld [vmem:[%s19893_s2 + $0xf80] ss:$12 sps:$4 sm:$0xff]  }
 0x6e0   : > { %13958 = vmatprep.subr.bf16.mxu1 %v15580_v18 }
 0x6e1   : > { %6301 = vmatpush1.bf16.msra.mxu0 %v15557_v60 }
 0x6e2   : > { %6302 = vmatprep.subr.bf16.mxu0 %v15564_v8 }
 0x6e3   : > { %13959 = vmatpush3.bf16.msra.mxu1 %v15581_v24  ;;  %v15606_v24 = vld [vmem:[%s19893_s2 + $0xf94] ss:$12 sps:$4 sm:$0xff]  }
 0x6e4   : > { %13960 = vmatprep.subr.bf16.mxu1 %v15585_v23  ;;  %v15604_v23 = vld [vmem:[%s19893_s2 + $0xf90] ss:$12 sps:$4 sm:$0xff]  }
 0x6e5   : > { %6303 = vmatpush1.bf16.msra.mxu0 %v15562_v12 }
 0x6e6   : > { %6304 = vmatprep.subr.bf16.mxu0 %v15569_v53 }
 0x6e7   : > { %13961 = vmatpush3.bf16.msra.mxu1 %v15586_v58  ;;  %v15611_v58 = vld [vmem:[%s19893_s2 + $0xfb0] ss:$12 sps:$4 sm:$0xff]  }
 0x6e8   : > { %13962 = vmatprep.subr.bf16.mxu1 %v15590_v27 }
 0x6e9   : > { %6305 = vmatpush1.bf16.msra.mxu0 %v15567_v43  ;;  %v15596_v43 = vld [vmem:[%s19893_s2 + $0xf60] ss:$12 sps:$4 sm:$0xff]  }
 0x6ea   : > { %6306 = vmatprep.subr.bf16.mxu0 %v15574_v14 }
 0x6eb   : > { %13963 = vmatpush3.bf16.msra.mxu1 %v15591_v28 }
 0x6ec   : > { %14554 = vmatprep.subr.bf16.mxu1 %v15595_v29 }
 0x6ed   : > { %6307 = vmatpush1.bf16.msra.mxu0 %v15572_v40  ;;  %v15602_v40 = vld [vmem:[%s19893_s2 + $0xf7c] ss:$12 sps:$4 sm:$0xff]  }
 0x6ee   : > { %6308 = vmatprep.subr.bf16.mxu0 %v15579_v45 }
 0x6f1   : > { %6309 = vmatpush1.bf16.msra.mxu0 %v15577_v3  ;;  %v15600_v3 = vld [vmem:[%s19893_s2 + $0xf78] ss:$12 sps:$4 sm:$0xff]  }
 0x6f2   : > { %6310 = vmatprep.subr.bf16.mxu0 %v15584_v38  ;;  %v15607_v38 = vld [vmem:[%s19893_s2 + $0xf98] ss:$12 sps:$4 sm:$0xff]  }
 0x6f5   : > { %6311 = vmatpush1.bf16.msra.mxu0 %v15582_v47  ;;  %v15610_v47 = vld [vmem:[%s19893_s2 + $0xfac] ss:$12 sps:$4 sm:$0xff]  }
 0x6f6   : > { %6312 = vmatprep.subr.bf16.mxu0 %v15589_v41  ;;  %v15608_v41 = vld [vmem:[%s19893_s2 + $0xfa8] ss:$12 sps:$4 sm:$0xff]  }
 0x6f9   : > { %6313 = vmatpush1.bf16.msra.mxu0 %v15587_v19 }
 0x6fa   : > { %6333 = vmatprep.subr.bf16.mxu0 %v15594_v15 }
 0x759   : > { %v13921_v30 = vpop.f32.mrb[136].mxu1 }
 0x75a   : > { %v13922_v31 = vpop.f32.mrb[137].mxu1 }
 0x75b   : > { %v13923_v32 = vadd.f32 %v13922_v31, %v13921_v30  ;;  %v13924_v33 = vpop.f32.mrb[138].mxu1  ;;  %v15641_v31 = vld [vmem:[%s19896_s5 + $0x2a8] ss:$12 sps:$4 sm:$0xff]  }
 0x75c   : > { %v13925_v26 = vpop.f32.mrb[139].mxu1 }
 0x75d   : > { %v13926_v34 = vadd.f32 %v13925_v26, %v13924_v33  ;;  %v15646_v33 = vld [vmem:[%s19896_s5 + $0x2c0] ss:$12 sps:$4 sm:$0xff]  }
 0x75e   : > { %v15647_v26 = vld [vmem:[%s19896_s5 + $0x200] ss:$12 sps:$4 sm:$0xff]  }
 0x761   : > { %v5569_v35 = vpop.f32.mrb[72].mxu0  ;;  %v13927_v37 = vpop.f32.mrb[140].mxu1 }
 0x762   : > { %v5571_v50 = vpop.f32.mrb[73].mxu0  ;;  %v13928_v56 = vpop.f32.mrb[141].mxu1 }
 0x763   : > { %v13929_v55 = vadd.f32 %v13928_v56, %v13927_v37  ;;  %v5573_v62 = vpop.f32.mrb[74].mxu0  ;;  %v13930_v0 = vpop.f32.mrb[142].mxu1 }
 0x764   : > { %v5574_v17 = vpop.f32.mrb[75].mxu0  ;;  %v13931_v20 = vpop.f32.mrb[143].mxu1 }
 0x771   : > { %v14536_v5 = vpop.f32.mrb[144].mxu1 }
 0x772   : > { %v5718_v7 = vadd.f32 %v14536_v5, %v13929_v55  ;;  %v5709_v22 = vpop.f32.mrb[145].mxu1  ;;  %v6491_v5 = vlaneseq }
 0x773   : > { %v5710_v11 = vadd.f32 %v13923_v32, %v5709_v22  ;;  %v14537_v16 = vpop.f32.mrb[146].mxu1  ;;  %v15642_v32 = vld [vmem:[%s19896_s5 + $0x1e8] ss:$12 sps:$4 sm:$0xff]  }
 0x774   : > { %v18323_v42 = vadd.f32 %v5718_v7, %v18075_v13  ;;  %v5712_v46 = vpop.f32.mrb[147].mxu1 }
 0x775   : > { %v18326_v49 = vadd.f32 %v5710_v11, %v18078_v36  ;;  %v5713_v54 = vadd.f32 %v13926_v34, %v5712_v46  ;;  %v15651_v34 = vld [vmem:[%s19896_s5 + $0x2d8] ss:$12 sps:$4 sm:$0xff]  }
 0x777   : > { %v18329_v57 = vadd.f32 %v5713_v54, %v18081_v39  ;;  %v15592_v39 = vld [vmem:[%s19893_s2 + $0xf48] ss:$12 sps:$4 sm:$0xff]  }
 0x778   : > { %v5620_v48 = vpop.f32.mrb[76].mxu0 }
 0x779   : > { %v5621_v9 = vadd.f32 %v5620_v48, %v5569_v35  ;;  %v5622_v63 = vpop.f32.mrb[77].mxu0  ;;  %v15652_v35 = vld [vmem:[%s19896_s5 + $0x218] ss:$12 sps:$4 sm:$0xff]  }
 0x77a   : > { %v5623_v51 = vadd.f32 %v5622_v63, %v5571_v50  ;;  %v5624_v59 = vpop.f32.mrb[78].mxu0 }
 0x77b   : > { %v18332_v60 = vadd.f32 %v5621_v9, %v18084_v4  ;;  %v5625_v2 = vpop.f32.mrb[79].mxu0  ;;  %v15599_v4 = vld [vmem:[%s19893_s2 + $0xf68] ss:$12 sps:$4 sm:$0xff]   ;;  %v18401_v9 = vshrl.u32 %v6491_v5, 7 }
 0x77c   : > { %v18335_v13 = vadd.f32 %v5623_v51, %v18087_v44  ;;  %v6489_v51 = vld [vmem:[%s19894_s3] sm:$0x7] }
 0x77d   : > { %v6493_v63 = vsub.s32 0, %v18401_v9  ;;  %v6497_v59 = vsub.s32 1, %v18401_v9 }
 0x77f   : > { %v6494_v2 = vrot.slane %v6489_v51, %v6493_v63 }
 0x789   : > { %v5784_v8 = vpop.f32.mrb[148].mxu1 }
 0x78a   : > { %v5786_v10 = vpop.f32.mrb[149].mxu1 }
 0x78b   : > { %v5788_v36 = vpop.f32.mrb[150].mxu1 }
 0x78c   : > { %v5849_v12 = vpack.c.bf16 %v5788_v36, %v5784_v8  ;;  %v5790_v25 = vpop.f32.mrb[151].mxu1  ;;  %v6498_v8 = vrot.slane %v6489_v51, %v6497_v59 }
 0x78d   : > { %v5850_v53 = vpack.c.bf16 %v5790_v25, %v5786_v10  ;;  %v6501_v10 = vsub.s32 2, %v18401_v9 }
 0x78f   : > { %6314 = vmatprep.mubr.bf16.mxu0 %v5850_v53  ;;  %6416 = vmatprep.mubr.bf16.mxu1 %v5850_v53 }
 0x790   : > { %6315 = vmatmul.mubr.bf16.vlgmr.msra.gmra.mrb[16].mxu0 %v5849_v12  ;;  %6417 = vmatmul.mubr.bf16.vlgmr.msra.gmra.mrb[160].mxu1 %v5849_v12 }
 0x791   : > { %v5794_v44 = vpop.f32.mrb[152].mxu1  ;;  %6334 = vmatpush1.bf16.msra.mxu0 %v15592_v39  ;;  %14555 = vmatpush3.bf16.msra.mxu1 %v15595_v29 }
 0x792   : > { %v5796_v52 = vpop.f32.mrb[153].mxu1  ;;  %6335 = vmatprep.subr.bf16.mxu0 %v15598_v61  ;;  %14556 = vmatprep.subr.bf16.mxu1 %v15599_v4  ;;  %v5852_v45 = vpack.c.bf16 %v5794_v44, %v5794_v44 }
 0x793   : > { %v5853_v14 = vpack.c.bf16 %v5796_v52, %v5796_v52  ;;  %v5798_v6 = vpop.f32.mrb[154].mxu1 }
 0x794   : > { %v5799_v18 = vpop.f32.mrb[155].mxu1 }
 0x795   : > { %6324 = vmatprep.mubr.bf16.mxu0 %v5853_v14  ;;  %6336 = vmatpush1.bf16.msra.mxu0 %v15596_v43  ;;  %v6502_v43 = vrot.slane %v6489_v51, %v6501_v10  ;;  %v15622_v51 = vld [vmem:[%s19896_s5 + $0x214] ss:$12 sps:$4 sm:$0xff]  }
 0x796   : > { %6424 = vmatprep.mubr.bf16.mxu1 %v5853_v14  ;;  %14557 = vmatpush3.bf16.msra.mxu1 %v15599_v4 }
 0x797   : > { %6337 = vmatprep.subr.bf16.mxu0 %v15602_v40  ;;  %14558 = vmatprep.subr.bf16.mxu1 %v15603_v21 }
 0x798   : > { %6325 = vmatmul.mubr.bf16.gmra.mrb[80].mxu0 %v5852_v45  ;;  %6425 = vmatmul.mubr.bf16.gmra.mrb[164].mxu1 %v5852_v45 }
 0x799   : > { %6338 = vmatpush1.bf16.msra.mxu0 %v15600_v3  ;;  %6365 = vmatprep.mubr.bf16.mxu0 %v16210_v1 }
 0x79a   : > { %14559 = vmatpush3.bf16.msra.mxu1 %v15603_v21  ;;  %6339 = vmatprep.subr.bf16.mxu0 %v15606_v24 }
 0x79b   : > { %14560 = vmatprep.subr.bf16.mxu1 %v15607_v38 }
 0x79d   : > { %6340 = vmatpush1.bf16.msra.mxu0 %v15604_v23 }
 0x79e   : > { %14561 = vmatpush3.bf16.msra.mxu1 %v15607_v38  ;;  %6341 = vmatprep.subr.bf16.mxu0 %v15610_v47 }
 0x79f   : > { %14562 = vmatprep.subr.bf16.mxu1 %v15611_v58 }
 0x7a1   : > { %v14552_v27 = vpop.f32.mrb[156].mxu1  ;;  %6342 = vmatpush1.bf16.msra.mxu0 %v15608_v41 }
 0x7a2   : > { %v5835_v19 = vpop.f32.mrb[157].mxu1  ;;  %14563 = vmatpush3.bf16.msra.mxu1 %v15611_v58  ;;  %v5854_v30 = vpack.c.bf16 %v14552_v27, %v14552_v27  ;;  %13989 = vmatprep.subr.bf16.mxu0 %v15641_v31 }
 0x7a3   : > { %v14553_v28 = vpop.f32.mrb[158].mxu1 }
 0x7a4   : > { %v5838_v15 = vpop.f32.mrb[159].mxu1 }
 0x7a5   : > { %v5851_v29 = vpack.c.bf16 %v5838_v15, %v5835_v19 }
 0x7a7   : > { %12663 = vmatmul.mubr.msk.bf16.vlgmr.msra.gmra.mrb[16].mxu0 %vm1202_vm2, %v5851_v29  ;;  %14564 = vmatprep.mubr.msk.bf16.mxu1 %vm1202_vm2, %v5851_v29 }
 0x7a8   : > { %14565 = vmatmul.mubr.msk.bf16.vlgmr.msra.gmra.mrb[168].mxu1 %vm1202_vm2, %v5854_v30  ;;  %6375 = vmatprep.mubr.bf16.mxu0 %v16210_v1 }
 0x7a9   : > { %6582 = vmatprep.mubr.bf16.mxu1 %v16210_v1  ;;  %13990 = vmatpush3.bf16.msra.mxu0 %v15642_v32 }
 0x7aa   : > { %13991 = vmatprep.subr.bf16.mxu0 %v15646_v33 }
 0x7ad   : > { %13992 = vmatpush3.bf16.msra.mxu0 %v15647_v26 }
 0x7ae   : > { %13993 = vmatprep.subr.bf16.mxu0 %v15651_v34 }
 0x7af   : > { %12664 = vmatmul.mubr.msk.bf16.gmra.mrb[84].mxu0 %vm1202_vm2, %v5854_v30 }
 0x7b1   : > { %13994 = vmatpush3.bf16.msra.mxu0 %v15652_v35 }
 0x863   : > { %v13964_v37 = vpop.f32.mrb[160].mxu1 }
 0x864   : > { %v13965_v50 = vpop.f32.mrb[161].mxu1 }
 0x865   : > { %v13966_v56 = vadd.f32 %v13965_v50, %v13964_v37  ;;  %v13967_v55 = vpop.f32.mrb[162].mxu1 }
 0x866   : > { %v13968_v62 = vpop.f32.mrb[163].mxu1 }
 0x867   : > { %v13969_v0 = vadd.f32 %v13968_v62, %v13967_v55 }
 0x86b   : > { %v6326_v17 = vpop.f32.mrb[80].mxu0  ;;  %v13970_v20 = vpop.f32.mrb[164].mxu1 }
 0x86c   : > { %v6328_v7 = vpop.f32.mrb[81].mxu0  ;;  %v13971_v22 = vpop.f32.mrb[165].mxu1 }
 0x86d   : > { %v13972_v11 = vadd.f32 %v13971_v22, %v13970_v20  ;;  %v6330_v16 = vpop.f32.mrb[82].mxu0  ;;  %v13973_v46 = vpop.f32.mrb[166].mxu1 }
 0x86e   : > { %v6331_v54 = vpop.f32.mrb[83].mxu0  ;;  %v13974_v48 = vpop.f32.mrb[167].mxu1  ;;  %v15616_v16 = vld [vmem:[%s19896_s5 + $0x1e4] ss:$12 sps:$4 sm:$0xff]   ;;  %v15614_v46 = vld [vmem:[%s19896_s5 + $0x1e0] ss:$12 sps:$4 sm:$0xff]  }
 0x86f   : > { %v15619_v54 = vld [vmem:[%s19896_s5 + $0x1fc] ss:$12 sps:$4 sm:$0xff]   ;;  %v15617_v48 = vld [vmem:[%s19896_s5 + $0x1f8] ss:$12 sps:$4 sm:$0xff]  }
 0x87a   : > { %v6367_v36 = vpop.f32.mrb[16].mxu0 }
 0x87b   : > { %v6506_v12 = vadd.f32 %v6494_v2, %v6367_v36  ;;  %v6369_v25 = vpop.f32.mrb[17].mxu0  ;;  %v14566_v53 = vpop.f32.mrb[168].mxu1  ;;  %v15623_v36 = vld [vmem:[%s19896_s5 + $0x228] ss:$12 sps:$4 sm:$0xff]  }
 0x87c   : > { %v6507_v39 = vadd.f32 %v6498_v8, %v6369_v25  ;;  %v6475_v61 = vadd.f32 %v14566_v53, %v13972_v11  ;;  %v6371_v4 = vpop.f32.mrb[18].mxu0  ;;  %v6466_v44 = vpop.f32.mrb[169].mxu1  ;;  %v15613_v11 = vld [vmem:[%s19895_s4 + $0x8] sm:$0x1f]  }
 0x87d   : > { %v6509_v52 = vadd.f32 %v6494_v2, %v6371_v4  ;;  %v6467_v14 = vadd.f32 %v13966_v56, %v6466_v44  ;;  %v6373_v6 = vpop.f32.mrb[19].mxu0  ;;  %v14567_v40 = vpop.f32.mrb[170].mxu1  ;;  %v6515_v3 = vmax.f32 %v6506_v12, 0.0  ;;  %v15628_v12 = vld [vmem:[%s19896_s5 + $0x244] ss:$12 sps:$4 sm:$0xff]  }
 0x87e   : > { %v6488_v21 = vadd.f32 %v6475_v61, %v18323_v42  ;;  %v6510_v45 = vadd.f32 %v6498_v8, %v6373_v6  ;;  %v6469_v18 = vpop.f32.mrb[171].mxu1  ;;  %v6516_v47 = vmax.f32 %v6507_v39, 0.0  ;;  %v15626_v25 = vld [vmem:[%s19896_s5 + $0x240] ss:$12 sps:$4 sm:$0xff]   ;;  %v15631_v53 = vld [vmem:[%s19896_s5 + $0x25c] ss:$12 sps:$4 sm:$0xff]  }
 0x87f   : > { %v6518_v24 = vmax.f32 %v6509_v52, 0.0  ;;  %v6482_v38 = vadd.f32 %v6467_v14, %v18326_v49  ;;  %v6470_v23 = vadd.f32 %v13969_v0, %v6469_v18  ;;  %v15629_v39 = vld [vmem:[%s19896_s5 + $0x258] ss:$12 sps:$4 sm:$0xff]   ;;  %v15634_v61 = vld [vmem:[%s19896_s5 + $0x274] ss:$12 sps:$4 sm:$0xff]  }
 0x880   : > { %v6519_v58 = vmax.f32 %v6510_v45, 0.0  ;;  %v6514_v55 = vadd.f32 %v6502_v43, %v6488_v21  ;;  %v15632_v4 = vld [vmem:[%s19896_s5 + $0x270] ss:$12 sps:$4 sm:$0xff]   ;;  %v15637_v44 = vld [vmem:[%s19896_s5 + $0x28c] ss:$12 sps:$4 sm:$0xff]  }
 0x881   : > { %v18417_v41 = vpack.c.bf16 %v6518_v24, %v6515_v3  ;;  %v6508_v27 = vadd.f32 %v6502_v43, %v6482_v38  ;;  %v6485_v19 = vadd.f32 %v6470_v23, %v18329_v57  ;;  %v15640_v52 = vld [vmem:[%s19896_s5 + $0x2a4] ss:$12 sps:$4 sm:$0xff]   ;;  %v15638_v14 = vld [vmem:[%s19896_s5 + $0x2a0] ss:$12 sps:$4 sm:$0xff]   ;;  %v15645_v6 = vld [vmem:[%s19896_s5 + $0x2bc] ss:$12 sps:$4 sm:$0xff]  }
 0x882   : > { %v18420_v28 = vpack.c.bf16 %v6519_v58, %v6516_v47  ;;  %v6377_v15 = vpop.f32.mrb[84].mxu0  ;;  %v6523_v5 = vmax.f32 %v6514_v55, 0.0  ;;  %v15643_v40 = vld [vmem:[%s19896_s5 + $0x2b8] ss:$12 sps:$4 sm:$0xff]   ;;  %v15650_v21 = vld [vmem:[%s19896_s5 + $0x2d4] ss:$12 sps:$4 sm:$0xff]  }
 0x883   : > { %v6511_v29 = vadd.f32 %v6502_v43, %v6485_v19  ;;  %v6378_v30 = vadd.f32 %v6377_v15, %v6326_v17  ;;  %v6379_v42 = vpop.f32.mrb[85].mxu0  ;;  %v6517_v33 = vmax.f32 %v6508_v27, 0.0  ;;  %v15635_v43 = vld [vmem:[%s19896_s5 + $0x288] ss:$12 sps:$4 sm:$0xff]   ;;  %v15648_v45 = vld [vmem:[%s19896_s5 + $0x2d0] ss:$12 sps:$4 sm:$0xff]  }
 0x884   : > { %v6380_v31 = vadd.f32 %v6379_v42, %v6328_v7  ;;  %v6381_v32 = vpop.f32.mrb[86].mxu0  ;;  %6550 = vmatprep.subr.bf16.mxu1 %v18420_v28  ;;  %v6529_v7 = vpack.c.bf16 %v6523_v5, %v6523_v5  ;;  %v15655_v18 = vld [vmem:[%s19896_s5 + $0x2ec] ss:$12 sps:$4 sm:$0xff]   ;;  %v15656_v3 = vld [vmem:[%s19896_s5 + $0x2f0] ss:$12 sps:$4 sm:$0xff]  }
 0x885   : > { %v6520_v49 = vmax.f32 %v6511_v29, 0.0  ;;  %v6486_v26 = vadd.f32 %v6378_v30, %v18332_v60  ;;  %v6382_v34 = vpop.f32.mrb[87].mxu0  ;;  %6551 = vmatpush1.bf16.msra.mxu1 %v18417_v41  ;;  %v15612_v60 = vld [vmem:[%s19895_s4] sm:$0x1f]   ;;  %v15653_v24 = vld [vmem:[%s19896_s5 + $0x2e8] ss:$12 sps:$4 sm:$0xff]   ;;  %13995 = vmatprep.subr.bf16.mxu0 %v15656_v3 }
 0x886   : > { %v6487_v35 = vadd.f32 %v6380_v31, %v18335_v13  ;;  %v16211_v13 = vmov 0.0   ;;  %v18446_v22 = vsel %vm459_vm1, %v6529_v7, 0  ;;  %v15657_v38 = vld [vmem:[%s19896_s5 + $0x230] ss:$12 sps:$4 sm:$0xff]   ;;  %v15658_v23 = vld [vmem:[%s19896_s5 + $0x300] ss:$12 sps:$4 sm:$0xff]  }
 0x887   : > { %v18426_v57 = vpack.c.bf16 %v6520_v49, %v6517_v33  ;;  %v6512_v37 = vadd.f32 %v6494_v2, %v6486_v26  ;;  %v15620_v2 = vld [vmem:[%s19896_s5 + $0x210] ss:$12 sps:$4 sm:$0xff]   ;;  %13996 = vmatpush3.bf16.msra.mxu0 %v15657_v38  ;;  %v15661_v58 = vld [vmem:[%s19896_s5 + $0x308] ss:$12 sps:$4 sm:$0xff]   ;;  %v15666_v15 = vld [vmem:[%s19896_s5 + $0x320] ss:$12 sps:$4 sm:$0xff]  }
 0x888   : > { %v6513_v50 = vadd.f32 %v6498_v8, %v6487_v35  ;;  %v15625_v8 = vld [vmem:[%s19896_s5 + $0x22c] ss:$12 sps:$4 sm:$0xff]   ;;  %v15660_v47 = vld [vmem:[%s19896_s5 + $0x304] ss:$12 sps:$4 sm:$0xff]   ;;  %v15662_v27 = vld [vmem:[%s19896_s5 + $0x248] ss:$12 sps:$4 sm:$0xff]   ;;  %13997 = vmatprep.subr.bf16.mxu0 %v15661_v58 }
 0x889   : > { %v6521_v56 = vmax.f32 %v6512_v37, 0.0  ;;  %v15665_v19 = vld [vmem:[%s19896_s5 + $0x31c] ss:$12 sps:$4 sm:$0xff]   ;;  %v15663_v29 = vld [vmem:[%s19896_s5 + $0x318] ss:$12 sps:$4 sm:$0xff]  }
 0x88a   : > { %v6522_v62 = vmax.f32 %v6513_v50, 0.0  ;;  %v15667_v30 = vld [vmem:[%s19896_s5 + $0x260] ss:$12 sps:$4 sm:$0xff]   ;;  %v15668_v42 = vld [vmem:[%s19896_s5 + $0x330] ss:$12 sps:$4 sm:$0xff]  }
 0x88b   : > { %v6527_v0 = vpack.c.bf16 %v6521_v56, %v6521_v56  ;;  %13998 = vmatpush3.bf16.msra.mxu0 %v15662_v27  ;;  %v15670_v31 = vld [vmem:[%s19896_s5 + $0x334] ss:$12 sps:$4 sm:$0xff]   ;;  %v15671_v32 = vld [vmem:[%s19896_s5 + $0x338] ss:$12 sps:$4 sm:$0xff]   ;;  %v15676_v26 = vld [vmem:[%s19896_s5 + $0x350] ss:$12 sps:$4 sm:$0xff]  }
 0x88c   : > { %v18428_v17 = vpack.c.bf16 %v6522_v62, %v6522_v62  ;;  %13999 = vmatprep.subr.bf16.mxu0 %v15666_v15  ;;  %v15672_v33 = vld [vmem:[%s19896_s5 + $0x278] ss:$12 sps:$4 sm:$0xff]   ;;  %v15673_v34 = vld [vmem:[%s19896_s5 + $0x348] ss:$12 sps:$4 sm:$0xff]   ;;  %v15677_v35 = vld [vmem:[%s19896_s5 + $0x290] ss:$12 sps:$4 sm:$0xff]  }
 0x88d   : > { %v18431_v20 = vsel %vm459_vm1, %v6527_v0, 0  ;;  %v15675_v49 = vld [vmem:[%s19896_s5 + $0x34c] ss:$12 sps:$4 sm:$0xff]   ;;  %v15680_v37 = vld [vmem:[%s19896_s5 + $0x364] ss:$12 sps:$4 sm:$0xff]  }
 0x88e   : > { %12668 = vmatprep.subr.msk.bf16.mxu1 %vm459_vm1, %v18428_v17  ;;  %v15693_v3 = vld [vmem:[%s19896_s5 + $0x3b0] ss:$12 sps:$4 sm:$0xff]   ;;  %v15697_v38 = vld [vmem:[%s19896_s5 + $0xc8] ss:$12 sps:$4 sm:$0xff]   ;;  %v15702_v27 = vld [vmem:[%s19896_s5 + $0xe0] ss:$12 sps:$4 sm:$0xff]  }
 0x88f   : > { %6553 = vmatpush1.bf16.msra.mxu1 %v18431_v20  ;;  %14000 = vmatpush3.bf16.msra.mxu0 %v15667_v30  ;;  %v15701_v58 = vld [vmem:[%s19896_s5 + $0x1c] ss:$12 sps:$4 sm:$0xff]   ;;  %v15703_v15 = vld [vmem:[%s19896_s5 + $0x20] ss:$12 sps:$4 sm:$0xff]   ;;  %v15707_v30 = vld [vmem:[%s19896_s5 + $0xf8] ss:$12 sps:$4 sm:$0xff]  }
 0x890   : > { %14568 = vmatprep.subr.bf16.mxu1 %v16211_v13  ;;  %14001 = vmatprep.subr.bf16.mxu0 %v15671_v32  ;;  %v15711_v32 = vld [vmem:[%s19896_s5 + $0x4c] ss:$12 sps:$4 sm:$0xff]  }
 0x892   : > { %12669 = vmatmul.mubr.msk.bf16.vlgmr.msra.gmra.mrb[172].mxu1 %vm6537_vm3, %v15612_v60 }
 0x893   : > { %14569 = vmatpush3.bf16.msra.mxu1 %v18426_v57  ;;  %14572 = vmatprep.mubr.msk.bf16.mxu1 %vm16212_vm4, %v16211_v13 }
 0x894   : > { %14570 = vmatprep.subr.bf16.mxu1 %v16211_v13  ;;  %14002 = vmatpush3.bf16.msra.mxu0 %v15672_v33  ;;  %v15712_v33 = vld [vmem:[%s19896_s5 + $0x110] ss:$12 sps:$4 sm:$0xff]  }
 0x895   : > { %14003 = vmatprep.subr.bf16.mxu0 %v15676_v26  ;;  %v15713_v26 = vld [vmem:[%s19896_s5 + $0x50] ss:$12 sps:$4 sm:$0xff]  }
 0x897   : > { %14571 = vmatpush3.bf16.msra.mxu1 %v18446_v22 }
 0x898   : > { %6728 = vmatprep.subr.bf16.mxu1 %v18420_v28  ;;  %14004 = vmatpush3.bf16.msra.mxu0 %v15677_v35  ;;  %v15717_v35 = vld [vmem:[%s19896_s5 + $0x128] ss:$12 sps:$4 sm:$0xff]  }
 0x899   : > { %14584 = vmatprep.subr.bf16.mxu0 %v16211_v13 }
 0x89a   : > { %14573 = vmatmul.mubr.msk.bf16.vlgmr.msra.gmra.mrb[176].mxu1 %vm6537_vm3, %v15612_v60 }
 0x89b   : > { %6729 = vmatpush1.bf16.msra.mxu1 %v18417_v41  ;;  %6760 = vmatprep.mubr.bf16.mxu1 %v16210_v1 }
 0x89c   : > { %12674 = vmatprep.subr.msk.bf16.mxu1 %vm459_vm1, %v18428_v17 }
 0x89f   : > { %6731 = vmatpush1.bf16.msra.mxu1 %v18431_v20 }
 0x8a0   : > { %14576 = vmatprep.subr.bf16.mxu1 %v16211_v13 }
 0x8a2   : > { %12675 = vmatmul.mubr.msk.bf16.vlgmr.msra.gmra.mrb[180].mxu1 %vm6537_vm3, %v15613_v11 }
 0x8a3   : > { %14577 = vmatpush3.bf16.msra.mxu1 %v18426_v57  ;;  %14580 = vmatprep.mubr.msk.bf16.mxu1 %vm16212_vm4, %v16211_v13 }
 0x8a4   : > { %14578 = vmatprep.subr.bf16.mxu1 %v16211_v13 }
 0x8a7   : > { %14579 = vmatpush3.bf16.msra.mxu1 %v18446_v22 }
 0x8a8   : > { %7220 = vmatprep.subr.bf16.mxu1 %v15616_v16 }
 0x8aa   : > { %14581 = vmatmul.mubr.msk.bf16.vlgmr.msra.gmra.mrb[184].mxu1 %vm6537_vm3, %v15613_v11 }
 0x8ab   : > { %7221 = vmatpush1.bf16.msra.mxu1 %v15614_v46 }
 0x8ac   : > { %7222 = vmatprep.subr.bf16.mxu1 %v15619_v54 }
 0x8af   : > { %7223 = vmatpush1.bf16.msra.mxu1 %v15617_v48 }
 0x8b0   : > { %7224 = vmatprep.subr.bf16.mxu1 %v15622_v51 }
 0x8b3   : > { %7225 = vmatpush1.bf16.msra.mxu1 %v15620_v2 }
 0x8b4   : > { %7226 = vmatprep.subr.bf16.mxu1 %v15625_v8 }
 0x8b7   : > { %7227 = vmatpush1.bf16.msra.mxu1 %v15623_v36 }
 0x8b8   : > { %7228 = vmatprep.subr.bf16.mxu1 %v15628_v12  ;;  %v15678_v12 = vld [vmem:[%s19896_s5 + $0x360] ss:$12 sps:$4 sm:$0xff]  }
 0x8bb   : > { %7229 = vmatpush1.bf16.msra.mxu1 %v15626_v25  ;;  %v15681_v25 = vld [vmem:[%s19896_s5 + $0x368] ss:$12 sps:$4 sm:$0xff]  }
 0x8bc   : > { %7230 = vmatprep.subr.bf16.mxu1 %v15631_v53  ;;  %v15684_v53 = vld [vmem:[%s19896_s5 + $0x37c] ss:$12 sps:$4 sm:$0xff]  }
 0x8bf   : > { %7231 = vmatpush1.bf16.msra.mxu1 %v15629_v39  ;;  %v15682_v39 = vld [vmem:[%s19896_s5 + $0x378] ss:$12 sps:$4 sm:$0xff]  }
 0x8c0   : > { %7232 = vmatprep.subr.bf16.mxu1 %v15634_v61  ;;  %v15685_v61 = vld [vmem:[%s19896_s5 + $0x380] ss:$12 sps:$4 sm:$0xff]  }
 0x8c3   : > { %7233 = vmatpush1.bf16.msra.mxu1 %v15632_v4 }
 0x8c4   : > { %7234 = vmatprep.subr.bf16.mxu1 %v15637_v44  ;;  %v15688_v44 = vld [vmem:[%s19896_s5 + $0x394] ss:$12 sps:$4 sm:$0xff]  }
 0x8c7   : > { %7235 = vmatpush1.bf16.msra.mxu1 %v15635_v43 }
 0x8c8   : > { %7236 = vmatprep.subr.bf16.mxu1 %v15640_v52 }
 0x8cb   : > { %7237 = vmatpush1.bf16.msra.mxu1 %v15638_v14 }
 0x8cc   : > { %7238 = vmatprep.subr.bf16.mxu1 %v15645_v6 }
 0x8cf   : > { %7239 = vmatpush1.bf16.msra.mxu1 %v15643_v40  ;;  %v15686_v40 = vld [vmem:[%s19896_s5 + $0x390] ss:$12 sps:$4 sm:$0xff]  }
 0x8d0   : > { %7240 = vmatprep.subr.bf16.mxu1 %v15650_v21  ;;  %v15689_v21 = vld [vmem:[%s19896_s5 + $0x398] ss:$12 sps:$4 sm:$0xff]  }
 0x8d3   : > { %7241 = vmatpush1.bf16.msra.mxu1 %v15648_v45  ;;  %v15692_v45 = vld [vmem:[%s19896_s5 + $0x3ac] ss:$12 sps:$4 sm:$0xff]  }
 0x8d4   : > { %7242 = vmatprep.subr.bf16.mxu1 %v15655_v18  ;;  %v15690_v18 = vld [vmem:[%s19896_s5 + $0x3a8] ss:$12 sps:$4 sm:$0xff]  }
 0x8d7   : > { %7243 = vmatpush1.bf16.msra.mxu1 %v15653_v24  ;;  %v15696_v24 = vld [vmem:[%s19896_s5 + $0x4] ss:$12 sps:$4 sm:$0xff]  }
 0x8d8   : > { %7244 = vmatprep.subr.bf16.mxu1 %v15660_v47  ;;  %v15698_v47 = vld [vmem:[%s19896_s5 + $0x8] ss:$12 sps:$4 sm:$0xff]  }
 0x8db   : > { %7245 = vmatpush1.bf16.msra.mxu1 %v15658_v23  ;;  %v15694_v23 = vld [vmem:[%s19896_s5] ss:$12 sps:$4 sm:$0xff]  }
 0x8dc   : > { %7246 = vmatprep.subr.bf16.mxu1 %v15665_v19  ;;  %v15699_v19 = vld [vmem:[%s19896_s5 + $0x18] ss:$12 sps:$4 sm:$0xff]  }
 0x8df   : > { %7247 = vmatpush1.bf16.msra.mxu1 %v15663_v29  ;;  %v15706_v29 = vld [vmem:[%s19896_s5 + $0x34] ss:$12 sps:$4 sm:$0xff]  }
 0x8e0   : > { %7248 = vmatprep.subr.bf16.mxu1 %v15670_v31  ;;  %v15708_v31 = vld [vmem:[%s19896_s5 + $0x38] ss:$12 sps:$4 sm:$0xff]  }
 0x8e3   : > { %7249 = vmatpush1.bf16.msra.mxu1 %v15668_v42  ;;  %v15704_v42 = vld [vmem:[%s19896_s5 + $0x30] ss:$12 sps:$4 sm:$0xff]  }
 0x8e4   : > { %7250 = vmatprep.subr.bf16.mxu1 %v15675_v49  ;;  %v15709_v49 = vld [vmem:[%s19896_s5 + $0x48] ss:$12 sps:$4 sm:$0xff]  }
 0x8e7   : > { %7251 = vmatpush1.bf16.msra.mxu1 %v15673_v34  ;;  %v15716_v34 = vld [vmem:[%s19896_s5 + $0x64] ss:$12 sps:$4 sm:$0xff]  }
 0x8e8   : > { %7263 = vmatprep.subr.bf16.mxu1 %v15680_v37  ;;  %v15714_v37 = vld [vmem:[%s19896_s5 + $0x60] ss:$12 sps:$4 sm:$0xff]  }
 0x965   : > { %v6584_v50 = vpop.f32.mrb[172].mxu1 }
 0x966   : > { %v6586_v56 = vpop.f32.mrb[173].mxu1 }
 0x967   : > { %v6588_v55 = vpop.f32.mrb[174].mxu1 }
 0x968   : > { %v18597_v62 = vpack.c.bf16 %v6588_v55, %v6584_v50  ;;  %v6590_v0 = vpop.f32.mrb[175].mxu1  ;;  %v15718_v50 = vld [vmem:[%s19896_s5 + $0x68] ss:$12 sps:$4 sm:$0xff]   ;;  %v15722_v55 = vld [vmem:[%s19896_s5 + $0x140] ss:$12 sps:$4 sm:$0xff]  }
 0x969   : > { %v6635_v5 = vpack.c.bf16 %v6590_v0, %v6586_v56  ;;  %v15721_v56 = vld [vmem:[%s19896_s5 + $0x7c] ss:$12 sps:$4 sm:$0xff]   ;;  %v15719_v0 = vld [vmem:[%s19896_s5 + $0x78] ss:$12 sps:$4 sm:$0xff]  }
 0x96d   : > { %v6627_v60 = vpop.f32.mrb[176].mxu1 }
 0x96e   : > { %v14574_v7 = vpop.f32.mrb[177].mxu1 }
 0x96f   : > { %v6630_v11 = vpop.f32.mrb[178].mxu1  ;;  %v15727_v7 = vld [vmem:[%s19896_s5 + $0x158] ss:$12 sps:$4 sm:$0xff]  }
 0x970   : > { %v18599_v16 = vpack.c.bf16 %v6630_v11, %v6627_v60  ;;  %v14575_v46 = vpop.f32.mrb[179].mxu1  ;;  %v15726_v60 = vld [vmem:[%s19896_s5 + $0x94] ss:$12 sps:$4 sm:$0xff]   ;;  %v15724_v11 = vld [vmem:[%s19896_s5 + $0x90] ss:$12 sps:$4 sm:$0xff]  }
 0x971   : > { %v15728_v46 = vld [vmem:[%s19896_s5 + $0x98] ss:$12 sps:$4 sm:$0xff]  }
 0x975   : > { %v6762_v54 = vpop.f32.mrb[180].mxu1 }
 0x976   : > { %v6764_v48 = vpop.f32.mrb[181].mxu1 }
 0x977   : > { %v6766_v51 = vpop.f32.mrb[182].mxu1 }
 0x978   : > { %v6812_v2 = vpack.c.bf16 %v6766_v51, %v6762_v54  ;;  %v6768_v8 = vpop.f32.mrb[183].mxu1  ;;  %v15731_v54 = vld [vmem:[%s19896_s5 + $0xac] ss:$12 sps:$4 sm:$0xff]   ;;  %v15729_v51 = vld [vmem:[%s19896_s5 + $0xa8] ss:$12 sps:$4 sm:$0xff]  }
 0x979   : > { %v6813_v36 = vpack.c.bf16 %v6768_v8, %v6764_v48  ;;  %v15732_v48 = vld [vmem:[%s19896_s5 + $0x170] ss:$12 sps:$4 sm:$0xff]  }
 0x97a   : > { %v15736_v8 = vld [vmem:[%s19896_s5 + $0xc4] ss:$12 sps:$4 sm:$0xff]  }
 0x97b   : > { %7252 = vmatprep.mubr.bf16.mxu1 %v6813_v36  ;;  %7338 = vmatprep.mubr.bf16.mxu0 %v6813_v36  ;;  %v15734_v36 = vld [vmem:[%s19896_s5 + $0xc0] ss:$12 sps:$4 sm:$0xff]  }
 0x97c   : > { %7253 = vmatmul.mubr.bf16.vlgmr.msra.gmra.mrb[188].mxu1 %v6812_v2  ;;  %7339 = vmatmul.mubr.bf16.vlgmr.msra.gmra.mrb[88].mxu0 %v6812_v2  ;;  %v15733_v2 = vld [vmem:[%s19896_s5 + $0xb0] ss:$12 sps:$4 sm:$0xff]  }
 0x97d   : > { %7264 = vmatpush1.bf16.msra.mxu1 %v15678_v12  ;;  %14585 = vmatpush3.bf16.msra.mxu0 %v15681_v25  ;;  %v6805_v4 = vpop.f32.mrb[184].mxu1  ;;  %v15737_v12 = vld [vmem:[%s19896_s5 + $0x188] ss:$12 sps:$4 sm:$0xff]  }
 0x97e   : > { %7265 = vmatprep.subr.bf16.mxu1 %v15684_v53  ;;  %14586 = vmatprep.subr.bf16.mxu0 %v16211_v13  ;;  %v14582_v43 = vpop.f32.mrb[185].mxu1  ;;  %v15740_v25 = vld [vmem:[%s19896_s5 + $0xdc] ss:$12 sps:$4 sm:$0xff]   ;;  %v15738_v53 = vld [vmem:[%s19896_s5 + $0xd8] ss:$12 sps:$4 sm:$0xff]  }
 0x97f   : > { %v6808_v52 = vpop.f32.mrb[186].mxu1  ;;  %7295 = vmatprep.mubr.bf16.mxu1 %v16210_v1  ;;  %14592 = vmatprep.mubr.msk.bf16.mxu0 %vm16212_vm4, %v16211_v13  ;;  %v15748_v43 = vld [vmem:[%s19896_s5 + $0x10c] ss:$12 sps:$4 sm:$0xff]  }
 0x980   : > { %v6814_v14 = vpack.c.bf16 %v6808_v52, %v6805_v4  ;;  %v14583_v6 = vpop.f32.mrb[187].mxu1  ;;  %v15742_v4 = vld [vmem:[%s19896_s5 + $0xf0] ss:$12 sps:$4 sm:$0xff]   ;;  %v15746_v52 = vld [vmem:[%s19896_s5 + $0x108] ss:$12 sps:$4 sm:$0xff]  }
 0x981   : > { %7266 = vmatpush1.bf16.msra.mxu1 %v15682_v39  ;;  %14587 = vmatpush3.bf16.msra.mxu0 %v15685_v61  ;;  %v15741_v39 = vld [vmem:[%s19896_s5 + $0x1a0] ss:$12 sps:$4 sm:$0xff]   ;;  %v15752_v6 = vld [vmem:[%s19896_s5 + $0x124] ss:$12 sps:$4 sm:$0xff]  }
 0x982   : > { %7267 = vmatprep.subr.bf16.mxu1 %v15688_v44  ;;  %14588 = vmatprep.subr.bf16.mxu0 %v16211_v13  ;;  %v15744_v61 = vld [vmem:[%s19896_s5 + $0xf4] ss:$12 sps:$4 sm:$0xff]   ;;  %v15745_v44 = vld [vmem:[%s19896_s5 + $0x1b8] ss:$12 sps:$4 sm:$0xff]  }
 0x985   : > { %7268 = vmatpush1.bf16.msra.mxu1 %v15686_v40  ;;  %14589 = vmatpush3.bf16.msra.mxu0 %v15689_v21  ;;  %v15750_v40 = vld [vmem:[%s19896_s5 + $0x120] ss:$12 sps:$4 sm:$0xff]   ;;  %v15755_v21 = vld [vmem:[%s19896_s5 + $0x13c] ss:$12 sps:$4 sm:$0xff]  }
 0x986   : > { %7269 = vmatprep.subr.bf16.mxu1 %v15692_v45  ;;  %14590 = vmatprep.subr.bf16.mxu0 %v16211_v13  ;;  %v15753_v45 = vld [vmem:[%s19896_s5 + $0x138] ss:$12 sps:$4 sm:$0xff]  }
 0x989   : > { %7270 = vmatpush1.bf16.msra.mxu1 %v15690_v18  ;;  %14591 = vmatpush3.bf16.msra.mxu0 %v15693_v3  ;;  %v15758_v18 = vld [vmem:[%s19896_s5 + $0x154] ss:$12 sps:$4 sm:$0xff]   ;;  %v15756_v3 = vld [vmem:[%s19896_s5 + $0x150] ss:$12 sps:$4 sm:$0xff]  }
 0x98a   : > { %7711 = vmatprep.subr.bf16.mxu1 %v15696_v24  ;;  %14016 = vmatprep.subr.bf16.mxu0 %v15697_v38  ;;  %v15759_v24 = vld [vmem:[%s19895_s4 + $0x10] sm:$0x1f]   ;;  %v15762_v38 = vld [vmem:[%s19896_s5 + $0x16c] ss:$12 sps:$4 sm:$0xff]  }
 0x98c   : > { %12817 = vmatmul.mubr.msk.bf16.vlgmr.msra.gmra.mrb[188].mxu1 %vm7216_vm5, %v6814_v14  ;;  %14593 = vmatmul.mubr.msk.bf16.vlgmr.msra.gmra.mrb[92].mxu0 %vm7216_vm5, %v6814_v14  ;;  %v15749_v14 = vld [vmem:[%s19896_s5 + $0x1d0] ss:$12 sps:$4 sm:$0xff]  }
 0x98d   : > { %7712 = vmatpush1.bf16.msra.mxu1 %v15694_v23  ;;  %7743 = vmatprep.mubr.bf16.mxu1 %v6635_v5  ;;  %v15760_v23 = vld [vmem:[%s19896_s5 + $0x168] ss:$12 sps:$4 sm:$0xff]  }
 0x98e   : > { %14017 = vmatpush3.bf16.msra.mxu0 %v15698_v47  ;;  %7829 = vmatprep.mubr.bf16.mxu0 %v6635_v5  ;;  %v15723_v5 = vld [vmem:[%s19896_s5 + $0x80] ss:$12 sps:$4 sm:$0xff]   ;;  %v15765_v47 = vld [vmem:[%s19896_s5 + $0x184] ss:$12 sps:$4 sm:$0xff]  }
 0x98f   : > { %7713 = vmatprep.subr.bf16.mxu1 %v15701_v58  ;;  %14018 = vmatprep.subr.bf16.mxu0 %v15702_v27  ;;  %v15763_v58 = vld [vmem:[%s19896_s5 + $0x180] ss:$12 sps:$4 sm:$0xff]   ;;  %v15768_v27 = vld [vmem:[%s19896_s5 + $0x19c] ss:$12 sps:$4 sm:$0xff]  }
 0x991   : > { %7714 = vmatpush1.bf16.msra.mxu1 %v15699_v19  ;;  %v15766_v19 = vld [vmem:[%s19896_s5 + $0x198] ss:$12 sps:$4 sm:$0xff]  }
 0x992   : > { %14019 = vmatpush3.bf16.msra.mxu0 %v15703_v15  ;;  %7715 = vmatprep.subr.bf16.mxu1 %v15706_v29  ;;  %v15771_v15 = vld [vmem:[%s19896_s5 + $0x1b4] ss:$12 sps:$4 sm:$0xff]   ;;  %v15769_v29 = vld [vmem:[%s19896_s5 + $0x1b0] ss:$12 sps:$4 sm:$0xff]  }
 0x993   : > { %14020 = vmatprep.subr.bf16.mxu0 %v15707_v30  ;;  %v15772_v30 = vld [vmem:[%s19896_s5 + $0x1c8] ss:$12 sps:$4 sm:$0xff]  }
 0x995   : > { %7716 = vmatpush1.bf16.msra.mxu1 %v15704_v42  ;;  %v15777_v42 = vld [vmem:[%s19896_s5 + $0x3c4] ss:$12 sps:$4 sm:$0xff]  }
 0x996   : > { %14021 = vmatpush3.bf16.msra.mxu0 %v15708_v31  ;;  %7717 = vmatprep.subr.bf16.mxu1 %v15711_v32  ;;  %v15775_v31 = vld [vmem:[%s19896_s5 + $0x3c0] ss:$12 sps:$4 sm:$0xff]   ;;  %v15780_v32 = vld [vmem:[%s19896_s5 + $0x3dc] ss:$12 sps:$4 sm:$0xff]  }
 0x997   : > { %14022 = vmatprep.subr.bf16.mxu0 %v15712_v33  ;;  %v15778_v33 = vld [vmem:[%s19896_s5 + $0x3d8] ss:$12 sps:$4 sm:$0xff]  }
 0x999   : > { %7718 = vmatpush1.bf16.msra.mxu1 %v15709_v49  ;;  %v15783_v49 = vld [vmem:[%s19896_s5 + $0x3f4] ss:$12 sps:$4 sm:$0xff]  }
 0x99a   : > { %14023 = vmatpush3.bf16.msra.mxu0 %v15713_v26  ;;  %7719 = vmatprep.subr.bf16.mxu1 %v15716_v34  ;;  %v15781_v26 = vld [vmem:[%s19896_s5 + $0x3f0] ss:$12 sps:$4 sm:$0xff]   ;;  %v15802_v34 = vld [vmem:[%s19896_s5 + $0x488] ss:$12 sps:$4 sm:$0xff]  }
 0x99b   : > { %14024 = vmatprep.subr.bf16.mxu0 %v15717_v35  ;;  %v15784_v35 = vld [vmem:[%s19896_s5 + $0x408] ss:$12 sps:$4 sm:$0xff]  }
 0x99d   : > { %7720 = vmatpush1.bf16.msra.mxu1 %v15714_v37  ;;  %v15803_v37 = vld [vmem:[%s19896_s5 + $0x3c8] ss:$12 sps:$4 sm:$0xff]  }
 0x99e   : > { %14025 = vmatpush3.bf16.msra.mxu0 %v15718_v50  ;;  %7721 = vmatprep.subr.bf16.mxu1 %v15721_v56  ;;  %v15789_v50 = vld [vmem:[%s19896_s5 + $0x424] ss:$12 sps:$4 sm:$0xff]   ;;  %v15787_v56 = vld [vmem:[%s19896_s5 + $0x420] ss:$12 sps:$4 sm:$0xff]  }
 0x99f   : > { %14026 = vmatprep.subr.bf16.mxu0 %v15722_v55  ;;  %v15792_v55 = vld [vmem:[%s19896_s5 + $0x43c] ss:$12 sps:$4 sm:$0xff]  }
 0x9a1   : > { %7722 = vmatpush1.bf16.msra.mxu1 %v15719_v0  ;;  %v15790_v0 = vld [vmem:[%s19896_s5 + $0x438] ss:$12 sps:$4 sm:$0xff]  }
 0x9a2   : > { %14027 = vmatpush3.bf16.msra.mxu0 %v15723_v5  ;;  %7723 = vmatprep.subr.bf16.mxu1 %v15726_v60  ;;  %v15795_v5 = vld [vmem:[%s19896_s5 + $0x454] ss:$12 sps:$4 sm:$0xff]   ;;  %v15793_v60 = vld [vmem:[%s19896_s5 + $0x450] ss:$12 sps:$4 sm:$0xff]  }
 0x9a3   : > { %14028 = vmatprep.subr.bf16.mxu0 %v15727_v7  ;;  %v15798_v7 = vld [vmem:[%s19896_s5 + $0x46c] ss:$12 sps:$4 sm:$0xff]  }
 0x9a5   : > { %7724 = vmatpush1.bf16.msra.mxu1 %v15724_v11  ;;  %v15796_v11 = vld [vmem:[%s19896_s5 + $0x468] ss:$12 sps:$4 sm:$0xff]  }
 0x9a6   : > { %14029 = vmatpush3.bf16.msra.mxu0 %v15728_v46  ;;  %7725 = vmatprep.subr.bf16.mxu1 %v15731_v54  ;;  %v15801_v46 = vld [vmem:[%s19896_s5 + $0x484] ss:$12 sps:$4 sm:$0xff]   ;;  %v15799_v54 = vld [vmem:[%s19896_s5 + $0x480] ss:$12 sps:$4 sm:$0xff]  }
 0x9a7   : > { %14030 = vmatprep.subr.bf16.mxu0 %v15732_v48  ;;  %v15806_v48 = vld [vmem:[%s19896_s5 + $0x49c] ss:$12 sps:$4 sm:$0xff]  }
 0x9a9   : > { %7726 = vmatpush1.bf16.msra.mxu1 %v15729_v51  ;;  %v15807_v51 = vld [vmem:[%s19896_s5 + $0x4a0] ss:$12 sps:$4 sm:$0xff]  }
 0x9aa   : > { %14031 = vmatpush3.bf16.msra.mxu0 %v15733_v2  ;;  %7727 = vmatprep.subr.bf16.mxu1 %v15736_v8  ;;  %v15804_v2 = vld [vmem:[%s19896_s5 + $0x498] ss:$12 sps:$4 sm:$0xff]   ;;  %v15808_v8 = vld [vmem:[%s19896_s5 + $0x3e0] ss:$12 sps:$4 sm:$0xff]  }
 0x9ab   : > { %14596 = vmatprep.subr.bf16.mxu0 %v16211_v13 }
 0x9ad   : > { %7830 = vmatmul.mubr.bf16.vlgmr.msra.gmra.mrb[96].mxu0 %v18597_v62  ;;  %7728 = vmatpush1.bf16.msra.mxu1 %v15734_v36  ;;  %v15809_v36 = vld [vmem:[%s19896_s5 + $0x4b0] ss:$12 sps:$4 sm:$0xff]  }
 0x9ae   : > { %14597 = vmatpush3.bf16.msra.mxu0 %v15737_v12  ;;  %7729 = vmatprep.subr.bf16.mxu1 %v15740_v25  ;;  %v15811_v12 = vld [vmem:[%s19896_s5 + $0x4b4] ss:$12 sps:$4 sm:$0xff]   ;;  %v15812_v25 = vld [vmem:[%s19896_s5 + $0x4b8] ss:$12 sps:$4 sm:$0xff]  }
 0x9af   : > { %14598 = vmatprep.subr.bf16.mxu0 %v16211_v13  ;;  %14604 = vmatprep.mubr.msk.bf16.mxu0 %vm16212_vm4, %v16211_v13 }
 0x9b1   : > { %7730 = vmatpush1.bf16.msra.mxu1 %v15738_v53  ;;  %v15813_v53 = vld [vmem:[%s19896_s5 + $0x3f8] ss:$12 sps:$4 sm:$0xff]  }
 0x9b2   : > { %14599 = vmatpush3.bf16.msra.mxu0 %v15741_v39  ;;  %7731 = vmatprep.subr.bf16.mxu1 %v15744_v61  ;;  %v15816_v39 = vld [vmem:[%s19896_s5 + $0x4cc] ss:$12 sps:$4 sm:$0xff]   ;;  %v15817_v61 = vld [vmem:[%s19896_s5 + $0x4d0] ss:$12 sps:$4 sm:$0xff]  }
 0x9b3   : > { %14600 = vmatprep.subr.bf16.mxu0 %v16211_v13 }
 0x9b5   : > { %7732 = vmatpush1.bf16.msra.mxu1 %v15742_v4  ;;  %v15814_v4 = vld [vmem:[%s19896_s5 + $0x4c8] ss:$12 sps:$4 sm:$0xff]  }
 0x9b6   : > { %14601 = vmatpush3.bf16.msra.mxu0 %v15745_v44  ;;  %7733 = vmatprep.subr.bf16.mxu1 %v15748_v43  ;;  %v15818_v44 = vld [vmem:[%s19896_s5 + $0x410] ss:$12 sps:$4 sm:$0xff]  }
 0x9b7   : > { %14602 = vmatprep.subr.bf16.mxu0 %v16211_v13  ;;  %v15821_v43 = vld [vmem:[%s19896_s5 + $0x4e4] ss:$12 sps:$4 sm:$0xff]  }
 0x9b9   : > { %7734 = vmatpush1.bf16.msra.mxu1 %v15746_v52  ;;  %v15822_v52 = vld [vmem:[%s19896_s5 + $0x4e8] ss:$12 sps:$4 sm:$0xff]  }
 0x9ba   : > { %14603 = vmatpush3.bf16.msra.mxu0 %v15749_v14  ;;  %7735 = vmatprep.subr.bf16.mxu1 %v15752_v6  ;;  %v15819_v14 = vld [vmem:[%s19896_s5 + $0x4e0] ss:$12 sps:$4 sm:$0xff]   ;;  %v15823_v6 = vld [vmem:[%s19896_s5 + $0x428] ss:$12 sps:$4 sm:$0xff]  }
 0x9bb   : > { %7890 = vmatprep.subr.bf16.mxu0 %v18420_v28 }
 0x9bd   : > { %14605 = vmatmul.mubr.msk.bf16.vlgmr.msra.gmra.mrb[100].mxu0 %vm7216_vm5, %v18599_v16  ;;  %7736 = vmatpush1.bf16.msra.mxu1 %v15750_v40  ;;  %v15826_v40 = vld [vmem:[%s19896_s5 + $0x4fc] ss:$12 sps:$4 sm:$0xff]  }
 0x9be   : > { %7891 = vmatpush1.bf16.msra.mxu0 %v18417_v41  ;;  %7737 = vmatprep.subr.bf16.mxu1 %v15755_v21  ;;  %v15827_v21 = vld [vmem:[%s19896_s5 + $0x500] ss:$12 sps:$4 sm:$0xff]  }
 0x9bf   : > { %12884 = vmatprep.subr.msk.bf16.mxu0 %vm459_vm1, %v18428_v17  ;;  %7922 = vmatprep.mubr.bf16.mxu0 %v16210_v1 }
 0x9c1   : > { %7738 = vmatpush1.bf16.msra.mxu1 %v15753_v45  ;;  %v15824_v45 = vld [vmem:[%s19896_s5 + $0x4f8] ss:$12 sps:$4 sm:$0xff]  }
 0x9c2   : > { %7893 = vmatpush1.bf16.msra.mxu0 %v18431_v20  ;;  %7739 = vmatprep.subr.bf16.mxu1 %v15758_v18  ;;  %v15828_v18 = vld [vmem:[%s19896_s5 + $0x440] ss:$12 sps:$4 sm:$0xff]  }
 0x9c3   : > { %14608 = vmatprep.subr.bf16.mxu0 %v16211_v13 }
 0x9c5   : > { %12885 = vmatmul.mubr.msk.bf16.vlgmr.msra.gmra.mrb[104].mxu0 %vm6537_vm3, %v15759_v24  ;;  %7740 = vmatpush1.bf16.msra.mxu1 %v15756_v3  ;;  %v15829_v3 = vld [vmem:[%s19896_s5 + $0x510] ss:$12 sps:$4 sm:$0xff]  }
 0x9c6   : > { %14609 = vmatpush3.bf16.msra.mxu0 %v18426_v57  ;;  %7741 = vmatprep.subr.bf16.mxu1 %v15762_v38  ;;  %v15832_v38 = vld [vmem:[%s19896_s5 + $0x518] ss:$12 sps:$4 sm:$0xff]  }
 0x9c7   : > { %14610 = vmatprep.subr.bf16.mxu0 %v16211_v13  ;;  %14612 = vmatprep.mubr.msk.bf16.mxu0 %vm16212_vm4, %v16211_v13 }
 0x9c9   : > { %7742 = vmatpush1.bf16.msra.mxu1 %v15760_v23  ;;  %v15833_v23 = vld [vmem:[%s19896_s5 + $0x458] ss:$12 sps:$4 sm:$0xff]  }
 0x9ca   : > { %14611 = vmatpush3.bf16.msra.mxu0 %v18446_v22  ;;  %7754 = vmatprep.subr.bf16.mxu1 %v15765_v47  ;;  %v15836_v47 = vld [vmem:[%s19896_s5 + $0x52c] ss:$12 sps:$4 sm:$0xff]  }
 0x9cb   : > { %14046 = vmatprep.subr.bf16.mxu0 %v15802_v34 }
 0x9cc   : > { %7744 = vmatmul.mubr.bf16.vlgmr.msra.gmra.mrb[188].mxu1 %v18597_v62  ;;  %v15774_v62 = vld [vmem:[%s19896_s5 + $0x1cc] ss:$12 sps:$4 sm:$0xff]  }
 0x9cd   : > { %7755 = vmatpush1.bf16.msra.mxu1 %v15763_v58  ;;  %14613 = vmatmul.mubr.msk.bf16.vlgmr.msra.gmra.mrb[108].mxu0 %vm6537_vm3, %v15759_v24  ;;  %v15831_v24 = vld [vmem:[%s19896_s5 + $0x514] ss:$12 sps:$4 sm:$0xff]   ;;  %v15837_v58 = vld [vmem:[%s19896_s5 + $0x530] ss:$12 sps:$4 sm:$0xff]  }
 0x9ce   : > { %7756 = vmatprep.subr.bf16.mxu1 %v15768_v27  ;;  %7786 = vmatprep.mubr.bf16.mxu1 %v16210_v1  ;;  %v15834_v27 = vld [vmem:[%s19896_s5 + $0x528] ss:$12 sps:$4 sm:$0xff]  }
 0x9cf   : > { %14047 = vmatpush3.bf16.msra.mxu0 %v15803_v37 }
 0x9d0   : > { %14048 = vmatprep.subr.bf16.mxu0 %v15807_v51 }
 0x9d1   : > { %7757 = vmatpush1.bf16.msra.mxu1 %v15766_v19  ;;  %v15838_v19 = vld [vmem:[%s19896_s5 + $0x470] ss:$12 sps:$4 sm:$0xff]  }
 0x9d2   : > { %7758 = vmatprep.subr.bf16.mxu1 %v15771_v15  ;;  %v15841_v15 = vld [vmem:[%s19896_s5 + $0x544] ss:$12 sps:$4 sm:$0xff]  }
 0x9d3   : > { %14049 = vmatpush3.bf16.msra.mxu0 %v15808_v8 }
 0x9d4   : > { %14050 = vmatprep.subr.bf16.mxu0 %v15812_v25 }
 0x9d5   : > { %7759 = vmatpush1.bf16.msra.mxu1 %v15769_v29 }
 0x9d6   : > { %7760 = vmatprep.subr.bf16.mxu1 %v15774_v62 }
 0x9d7   : > { %14051 = vmatpush3.bf16.msra.mxu0 %v15813_v53 }
 0x9d8   : > { %14052 = vmatprep.subr.bf16.mxu0 %v15817_v61  ;;  %v15839_v61 = vld [vmem:[%s19896_s5 + $0x540] ss:$12 sps:$4 sm:$0xff]  }
 0x9d9   : > { %7761 = vmatpush1.bf16.msra.mxu1 %v15772_v30 }
 0x9da   : > { %8381 = vmatprep.subr.bf16.mxu1 %v15777_v42 }
 0x9db   : > { %14053 = vmatpush3.bf16.msra.mxu0 %v15818_v44  ;;  %v15845_v44 = vld [vmem:[%s19896_s5 + $0x55c] ss:$12 sps:$4 sm:$0xff]  }
 0x9dc   : > { %12879 = vmatmul.mubr.msk.bf16.vlgmr.msra.gmra.mrb[188].mxu1 %vm7216_vm5, %v18599_v16  ;;  %v15786_v16 = vld [vmem:[%s19896_s5 + $0x40c] ss:$12 sps:$4 sm:$0xff]   ;;  %14054 = vmatprep.subr.bf16.mxu0 %v15822_v52 }
 0x9dd   : > { %8382 = vmatpush1.bf16.msra.mxu1 %v15775_v31  ;;  %v15846_v52 = vld [vmem:[%s19896_s5 + $0x560] ss:$12 sps:$4 sm:$0xff]  }
 0x9de   : > { %8383 = vmatprep.subr.bf16.mxu1 %v15780_v32 }
 0x9df   : > { %14055 = vmatpush3.bf16.msra.mxu0 %v15823_v6  ;;  %v15849_v6 = vld [vmem:[%s19896_s5 + $0x574] ss:$12 sps:$4 sm:$0xff]  }
 0x9e0   : > { %14056 = vmatprep.subr.bf16.mxu0 %v15827_v21 }
 0x9e1   : > { %8384 = vmatpush1.bf16.msra.mxu1 %v15778_v33 }
 0x9e2   : > { %8385 = vmatprep.subr.bf16.mxu1 %v15783_v49 }
 0x9e3   : > { %14057 = vmatpush3.bf16.msra.mxu0 %v15828_v18 }
 0x9e4   : > { %14058 = vmatprep.subr.bf16.mxu0 %v15832_v38  ;;  %v15853_v38 = vld [vmem:[%s19896_s5 + $0x58c] ss:$12 sps:$4 sm:$0xff]  }
 0x9e5   : > { %8386 = vmatpush1.bf16.msra.mxu1 %v15781_v26 }
 0x9e6   : > { %8387 = vmatprep.subr.bf16.mxu1 %v15786_v16 }
 0x9e7   : > { %14059 = vmatpush3.bf16.msra.mxu0 %v15833_v23  ;;  %v15851_v23 = vld [vmem:[%s19896_s5 + $0x588] ss:$12 sps:$4 sm:$0xff]  }
 0x9e8   : > { %14060 = vmatprep.subr.bf16.mxu0 %v15837_v58  ;;  %v15858_v58 = vld [vmem:[%s19896_s5 + $0x5a4] ss:$12 sps:$4 sm:$0xff]  }
 0x9e9   : > { %8388 = vmatpush1.bf16.msra.mxu1 %v15784_v35 }
 0x9ea   : > { %8389 = vmatprep.subr.bf16.mxu1 %v15789_v50 }
 0x9eb   : > { %14061 = vmatpush3.bf16.msra.mxu0 %v15838_v19  ;;  %v15861_v19 = vld [vmem:[%s19896_s5 + $0x5bc] ss:$12 sps:$4 sm:$0xff]  }
 0x9ec   : > { %14616 = vmatprep.subr.bf16.mxu0 %v16211_v13 }
 0x9ed   : > { %8390 = vmatpush1.bf16.msra.mxu1 %v15787_v56 }
 0x9ee   : > { %8391 = vmatprep.subr.bf16.mxu1 %v15792_v55 }
 0x9f1   : > { %8392 = vmatpush1.bf16.msra.mxu1 %v15790_v0 }
 0x9f2   : > { %8393 = vmatprep.subr.bf16.mxu1 %v15795_v5 }
 0x9f5   : > { %8394 = vmatpush1.bf16.msra.mxu1 %v15793_v60 }
 0x9f6   : > { %8395 = vmatprep.subr.bf16.mxu1 %v15798_v7 }
 0x9f9   : > { %8396 = vmatpush1.bf16.msra.mxu1 %v15796_v11 }
 0x9fa   : > { %8397 = vmatprep.subr.bf16.mxu1 %v15801_v46 }
 0x9fd   : > { %8398 = vmatpush1.bf16.msra.mxu1 %v15799_v54 }
 0x9fe   : > { %8399 = vmatprep.subr.bf16.mxu1 %v15806_v48 }
 0xa01   : > { %8400 = vmatpush1.bf16.msra.mxu1 %v15804_v2 }
 0xa02   : > { %8401 = vmatprep.subr.bf16.mxu1 %v15811_v12 }
 0xa05   : > { %8402 = vmatpush1.bf16.msra.mxu1 %v15809_v36 }
 0xa06   : > { %8403 = vmatprep.subr.bf16.mxu1 %v15816_v39 }
 0xa09   : > { %8404 = vmatpush1.bf16.msra.mxu1 %v15814_v4  ;;  %v15842_v4 = vld [vmem:[%s19896_s5 + $0x548] ss:$12 sps:$4 sm:$0xff]  }
 0xa0a   : > { %8405 = vmatprep.subr.bf16.mxu1 %v15821_v43  ;;  %v15843_v43 = vld [vmem:[%s19896_s5 + $0x558] ss:$12 sps:$4 sm:$0xff]  }
 0xa0d   : > { %8406 = vmatpush1.bf16.msra.mxu1 %v15819_v14 }
 0xa0e   : > { %8407 = vmatprep.subr.bf16.mxu1 %v15826_v40 }
 0xa11   : > { %8408 = vmatpush1.bf16.msra.mxu1 %v15824_v45 }
 0xa12   : > { %8409 = vmatprep.subr.bf16.mxu1 %v15831_v24  ;;  %v15850_v24 = vld [vmem:[%s19896_s5 + $0x578] ss:$12 sps:$4 sm:$0xff]  }
 0xa15   : > { %8410 = vmatpush1.bf16.msra.mxu1 %v15829_v3  ;;  %v15847_v3 = vld [vmem:[%s19896_s5 + $0x570] ss:$12 sps:$4 sm:$0xff]  }
 0xa16   : > { %8411 = vmatprep.subr.bf16.mxu1 %v15836_v47  ;;  %v15854_v47 = vld [vmem:[%s19896_s5 + $0x590] ss:$12 sps:$4 sm:$0xff]  }
 0xa19   : > { %8412 = vmatpush1.bf16.msra.mxu1 %v15834_v27  ;;  %v15856_v27 = vld [vmem:[%s19896_s5 + $0x5a0] ss:$12 sps:$4 sm:$0xff]  }
 0xa1a   : > { %8424 = vmatprep.subr.bf16.mxu1 %v15841_v15  ;;  %v15864_v15 = vld [vmem:[%s19896_s5 + $0x5d4] ss:$12 sps:$4 sm:$0xff]  }
 0xa4f   : > { %v14005_v29 = vpop.f32.mrb[88].mxu0 }
 0xa50   : > { %v14006_v62 = vpop.f32.mrb[89].mxu0 }
 0xa51   : > { %v14007_v30 = vadd.f32 %v14006_v62, %v14005_v29  ;;  %v14008_v42 = vpop.f32.mrb[90].mxu0  ;;  %v15855_v29 = vld [vmem:[%s19895_s4 + $0x18] sm:$0x1f]   ;;  %v15883_v62 = vld [vmem:[%s19896_s5 + $0x668] ss:$12 sps:$4 sm:$0xff]  }
 0xa52   : > { %v14009_v31 = vpop.f32.mrb[91].mxu0 }
 0xa53   : > { %v14010_v32 = vadd.f32 %v14009_v31, %v14008_v42  ;;  %v15868_v42 = vld [vmem:[%s19896_s5 + $0x600] ss:$12 sps:$4 sm:$0xff]   ;;  %v15873_v31 = vld [vmem:[%s19896_s5 + $0x61c] ss:$12 sps:$4 sm:$0xff]  }
 0xa5f   : > { %v7381_v33 = vpop.f32.mrb[92].mxu0 }
 0xa60   : > { %v7382_v49 = vadd.f32 %v14007_v30, %v7381_v33  ;;  %v14594_v26 = vpop.f32.mrb[93].mxu0  ;;  %v15870_v30 = vld [vmem:[%s19896_s5 + $0x604] ss:$12 sps:$4 sm:$0xff]  }
 0xa61   : > { %v7384_v16 = vpop.f32.mrb[94].mxu0  ;;  %v15874_v33 = vld [vmem:[%s19896_s5 + $0x630] ss:$12 sps:$4 sm:$0xff]   ;;  %v15877_v26 = vld [vmem:[%s19896_s5 + $0x648] ss:$12 sps:$4 sm:$0xff]  }
 0xa62   : > { %v7385_v34 = vadd.f32 %v14010_v32, %v7384_v16  ;;  %v14595_v35 = vpop.f32.mrb[95].mxu0  ;;  %v15876_v32 = vld [vmem:[%s19896_s5 + $0x634] ss:$12 sps:$4 sm:$0xff]   ;;  %v15882_v16 = vld [vmem:[%s19896_s5 + $0x664] ss:$12 sps:$4 sm:$0xff]  }
 0xa63   : > { %v15887_v35 = vld [vmem:[%s19896_s5 + $0x67c] ss:$12 sps:$4 sm:$0xff]  }
 0xa80   : > { %v14032_v37 = vpop.f32.mrb[96].mxu0 }
 0xa81   : > { %v14033_v50 = vpop.f32.mrb[97].mxu0 }
 0xa82   : > { %v14034_v56 = vadd.f32 %v14033_v50, %v14032_v37  ;;  %v14035_v55 = vpop.f32.mrb[98].mxu0  ;;  %v15888_v37 = vld [vmem:[%s19896_s5 + $0x680] ss:$12 sps:$4 sm:$0xff]   ;;  %v15885_v50 = vld [vmem:[%s19896_s5 + $0x678] ss:$12 sps:$4 sm:$0xff]  }
 0xa83   : > { %v14036_v0 = vpop.f32.mrb[99].mxu0 }
 0xa84   : > { %v14037_v5 = vadd.f32 %v14036_v0, %v14035_v55  ;;  %v7832_v60 = vadd.f32 %v14034_v56, %v7382_v49  ;;  %v15879_v49 = vld [vmem:[%s19896_s5 + $0x64c] ss:$12 sps:$4 sm:$0xff]   ;;  %v15890_v55 = vld [vmem:[%s19896_s5 + $0x690] ss:$12 sps:$4 sm:$0xff]   ;;  %v15892_v0 = vld [vmem:[%s19896_s5 + $0x694] ss:$12 sps:$4 sm:$0xff]  }
 0xa85   : > { %v15889_v56 = vld [vmem:[%s19896_s5 + $0x5c0] ss:$12 sps:$4 sm:$0xff]  }
 0xa86   : > { %v7835_v7 = vadd.f32 %v14037_v5, %v7385_v34  ;;  %v15880_v34 = vld [vmem:[%s19896_s5 + $0x660] ss:$12 sps:$4 sm:$0xff]   ;;  %v15893_v5 = vld [vmem:[%s19896_s5 + $0x698] ss:$12 sps:$4 sm:$0xff]  }
 0xa90   : > { %v7872_v11 = vpop.f32.mrb[100].mxu0 }
 0xa91   : > { %v19000_v46 = vadd.f32 %v7872_v11, %v7832_v60  ;;  %v14606_v54 = vpop.f32.mrb[101].mxu0  ;;  %v15894_v60 = vld [vmem:[%s19896_s5 + $0x5d8] ss:$12 sps:$4 sm:$0xff]   ;;  %v15898_v11 = vld [vmem:[%s19896_s5 + $0x6b0] ss:$12 sps:$4 sm:$0xff]  }
 0xa92   : > { %v7875_v48 = vpop.f32.mrb[102].mxu0  ;;  %v15895_v54 = vld [vmem:[%s19896_s5 + $0x6a8] ss:$12 sps:$4 sm:$0xff]  }
 0xa93   : > { %v19002_v51 = vadd.f32 %v7875_v48, %v7835_v7  ;;  %v14607_v2 = vpop.f32.mrb[103].mxu0  ;;  %v15897_v7 = vld [vmem:[%s19896_s5 + $0x6ac] ss:$12 sps:$4 sm:$0xff]   ;;  %v15899_v48 = vld [vmem:[%s19896_s5 + $0x5f0] ss:$12 sps:$4 sm:$0xff]  }
 0xa94   : > { %v15902_v2 = vld [vmem:[%s19896_s5 + $0x6c4] ss:$12 sps:$4 sm:$0xff]  }
 0xa98   : > { %v7924_v8 = vpop.f32.mrb[104].mxu0 }
 0xa99   : > { %v7926_v36 = vpop.f32.mrb[105].mxu0 }
 0xa9a   : > { %v7928_v12 = vpop.f32.mrb[106].mxu0 }
 0xa9b   : > { %v7974_v25 = vpack.c.bf16 %v7928_v12, %v7924_v8  ;;  %v7930_v53 = vpop.f32.mrb[107].mxu0  ;;  %v15903_v8 = vld [vmem:[%s19896_s5 + $0x6c8] ss:$12 sps:$4 sm:$0xff]  }
 0xa9c   : > { %v7975_v39 = vpack.c.bf16 %v7930_v53, %v7926_v36  ;;  %v15900_v36 = vld [vmem:[%s19896_s5 + $0x6c0] ss:$12 sps:$4 sm:$0xff]   ;;  %v15904_v12 = vld [vmem:[%s19896_s5 + $0x608] ss:$12 sps:$4 sm:$0xff]  }
 0xa9d   : > { %v15908_v53 = vld [vmem:[%s19896_s5 + $0x6e0] ss:$12 sps:$4 sm:$0xff]  }
 0xa9e   : > { %8413 = vmatprep.mubr.bf16.mxu1 %v7975_v39  ;;  %8499 = vmatprep.mubr.bf16.mxu0 %v7975_v39  ;;  %v15905_v39 = vld [vmem:[%s19896_s5 + $0x6d8] ss:$12 sps:$4 sm:$0xff]  }
 0xa9f   : > { %8414 = vmatmul.mubr.bf16.vlgmr.msra.gmra.mrb[188].mxu1 %v7974_v25  ;;  %8500 = vmatmul.mubr.bf16.vlgmr.msra.gmra.mrb[112].mxu0 %v7974_v25  ;;  %v15907_v25 = vld [vmem:[%s19896_s5 + $0x6dc] ss:$12 sps:$4 sm:$0xff]  }
 0xaa0   : > { %8425 = vmatpush1.bf16.msra.mxu1 %v15839_v61  ;;  %14617 = vmatpush3.bf16.msra.mxu0 %v15842_v4  ;;  %v7967_v14 = vpop.f32.mrb[108].mxu0  ;;  %v15909_v61 = vld [vmem:[%s19896_s5 + $0x620] ss:$12 sps:$4 sm:$0xff]  }
 0xaa1   : > { %8426 = vmatprep.subr.bf16.mxu1 %v15845_v44  ;;  %14618 = vmatprep.subr.bf16.mxu0 %v16211_v13  ;;  %v14614_v40 = vpop.f32.mrb[109].mxu0  ;;  %v15912_v4 = vld [vmem:[%s19896_s5 + $0x6f4] ss:$12 sps:$4 sm:$0xff]   ;;  %v15913_v44 = vld [vmem:[%s19896_s5 + $0x6f8] ss:$12 sps:$4 sm:$0xff]  }
 0xaa2   : > { %v7970_v21 = vpop.f32.mrb[110].mxu0  ;;  %8456 = vmatprep.mubr.bf16.mxu1 %v16210_v1  ;;  %14624 = vmatprep.mubr.msk.bf16.mxu0 %vm16212_vm4, %v16211_v13  ;;  %v15915_v40 = vld [vmem:[%s19896_s5 + $0x708] ss:$12 sps:$4 sm:$0xff]  }
 0xaa3   : > { %v7976_v45 = vpack.c.bf16 %v7970_v21, %v7967_v14  ;;  %v14615_v18 = vpop.f32.mrb[111].mxu0  ;;  %v15917_v14 = vld [vmem:[%s19896_s5 + $0x70c] ss:$12 sps:$4 sm:$0xff]   ;;  %v15919_v21 = vld [vmem:[%s19896_s5 + $0x650] ss:$12 sps:$4 sm:$0xff]  }
 0xaa4   : > { %8427 = vmatpush1.bf16.msra.mxu1 %v15843_v43  ;;  %14619 = vmatpush3.bf16.msra.mxu0 %v15846_v52  ;;  %v15910_v43 = vld [vmem:[%s19896_s5 + $0x6f0] ss:$12 sps:$4 sm:$0xff]   ;;  %v15914_v52 = vld [vmem:[%s19896_s5 + $0x638] ss:$12 sps:$4 sm:$0xff]  }
 0xaa5   : > { %8428 = vmatprep.subr.bf16.mxu1 %v15849_v6  ;;  %14620 = vmatprep.subr.bf16.mxu0 %v16211_v13  ;;  %v15918_v6 = vld [vmem:[%s19896_s5 + $0x710] ss:$12 sps:$4 sm:$0xff]  }
 0xaa8   : > { %8429 = vmatpush1.bf16.msra.mxu1 %v15847_v3  ;;  %14621 = vmatpush3.bf16.msra.mxu0 %v15850_v24 }
 0xaa9   : > { %8430 = vmatprep.subr.bf16.mxu1 %v15853_v38  ;;  %14622 = vmatprep.subr.bf16.mxu0 %v16211_v13 }
 0xaac   : > { %8431 = vmatpush1.bf16.msra.mxu1 %v15851_v23  ;;  %14623 = vmatpush3.bf16.msra.mxu0 %v15854_v47 }
 0xaad   : > { %8566 = vmatprep.subr.bf16.mxu0 %v18420_v28  ;;  %9057 = vmatprep.subr.bf16.mxu1 %v15858_v58  ;;  %v15859_v28 = vld [vmem:[%s19896_s5 + $0x5b8] ss:$12 sps:$4 sm:$0xff]  }
 0xaaf   : > { %13027 = vmatmul.mubr.msk.bf16.vlgmr.msra.gmra.mrb[188].mxu1 %vm7216_vm5, %v7976_v45  ;;  %14625 = vmatmul.mubr.msk.bf16.vlgmr.msra.gmra.mrb[116].mxu0 %vm7216_vm5, %v7976_v45  ;;  %v15922_v45 = vld [vmem:[%s19896_s5 + $0x724] ss:$12 sps:$4 sm:$0xff]  }
 0xab0   : > { %8567 = vmatpush1.bf16.msra.mxu0 %v18417_v41  ;;  %8598 = vmatprep.mubr.bf16.mxu0 %v16210_v1  ;;  %v15862_v41 = vld [vmem:[%s19896_s5 + $0x5d0] ss:$12 sps:$4 sm:$0xff]  }
 0xab1   : > { %13032 = vmatprep.subr.msk.bf16.mxu0 %vm459_vm1, %v18428_v17  ;;  %9058 = vmatpush1.bf16.msra.mxu1 %v15856_v27  ;;  %v15867_v17 = vld [vmem:[%s19896_s5 + $0x5ec] ss:$12 sps:$4 sm:$0xff]  }
 0xab2   : > { %9059 = vmatprep.subr.bf16.mxu1 %v15861_v19 }
 0xab4   : > { %8569 = vmatpush1.bf16.msra.mxu0 %v18431_v20  ;;  %v15865_v20 = vld [vmem:[%s19896_s5 + $0x5e8] ss:$12 sps:$4 sm:$0xff]  }
 0xab5   : > { %14628 = vmatprep.subr.bf16.mxu0 %v16211_v13  ;;  %9060 = vmatpush1.bf16.msra.mxu1 %v15859_v28 }
 0xab6   : > { %9061 = vmatprep.subr.bf16.mxu1 %v15864_v15 }
 0xab7   : > { %13033 = vmatmul.mubr.msk.bf16.vlgmr.msra.gmra.mrb[120].mxu0 %vm6537_vm3, %v15855_v29 }
 0xab8   : > { %14629 = vmatpush3.bf16.msra.mxu0 %v18426_v57  ;;  %14632 = vmatprep.mubr.msk.bf16.mxu0 %vm16212_vm4, %v16211_v13  ;;  %v15884_v57 = vld [vmem:[%s19896_s5 + $0x5a8] ss:$12 sps:$4 sm:$0xff]  }
 0xab9   : > { %14630 = vmatprep.subr.bf16.mxu0 %v16211_v13  ;;  %9062 = vmatpush1.bf16.msra.mxu1 %v15862_v41 }
 0xaba   : > { %9063 = vmatprep.subr.bf16.mxu1 %v15867_v17 }
 0xabc   : > { %14631 = vmatpush3.bf16.msra.mxu0 %v18446_v22  ;;  %v15871_v22 = vld [vmem:[%s19896_s5 + $0x618] ss:$12 sps:$4 sm:$0xff]  }
 0xabd   : > { %9064 = vmatpush1.bf16.msra.mxu1 %v15865_v20  ;;  %14076 = vmatprep.subr.bf16.mxu0 %v15883_v62 }
 0xabe   : > { %9065 = vmatprep.subr.bf16.mxu1 %v15870_v30 }
 0xabf   : > { %14633 = vmatmul.mubr.msk.bf16.vlgmr.msra.gmra.mrb[124].mxu0 %vm6537_vm3, %v15855_v29 }
 0xac0   : > { %14077 = vmatpush3.bf16.msra.mxu0 %v15884_v57 }
 0xac1   : > { %9066 = vmatpush1.bf16.msra.mxu1 %v15868_v42  ;;  %14078 = vmatprep.subr.bf16.mxu0 %v15888_v37 }
 0xac2   : > { %9067 = vmatprep.subr.bf16.mxu1 %v15873_v31 }
 0xac4   : > { %14079 = vmatpush3.bf16.msra.mxu0 %v15889_v56  ;;  %v15931_v56 = vld [vmem:[%s19896_s5 + $0x758] ss:$12 sps:$4 sm:$0xff]  }
 0xac5   : > { %9068 = vmatpush1.bf16.msra.mxu1 %v15871_v22  ;;  %14080 = vmatprep.subr.bf16.mxu0 %v15893_v5  ;;  %v15920_v22 = vld [vmem:[%s19896_s5 + $0x720] ss:$12 sps:$4 sm:$0xff]  }
 0xac6   : > { %9069 = vmatprep.subr.bf16.mxu1 %v15876_v32  ;;  %v15926_v32 = vld [vmem:[%s19896_s5 + $0x73c] ss:$12 sps:$4 sm:$0xff]   ;;  %v15936_v5 = vld [vmem:[%s19898_s7 + $0x40] sm:$0xff]  }
 0xac8   : > { %14081 = vmatpush3.bf16.msra.mxu0 %v15894_v60  ;;  %v15939_v60 = vld [vmem:[%s19898_s7 + $0x1f0] sm:$0xff]  }
 0xac9   : > { %9070 = vmatpush1.bf16.msra.mxu1 %v15874_v33  ;;  %14082 = vmatprep.subr.bf16.mxu0 %v15898_v11  ;;  %v15927_v33 = vld [vmem:[%s19896_s5 + $0x740] ss:$12 sps:$4 sm:$0xff]   ;;  %v15941_v11 = vld [vmem:[%s19898_s7 + $0x1b0] sm:$0xff]  }
 0xaca   : > { %9071 = vmatprep.subr.bf16.mxu1 %v15879_v49 }
 0xacc   : > { %14083 = vmatpush3.bf16.msra.mxu0 %v15899_v48  ;;  %v15940_v48 = vld [vmem:[%s19898_s7 + $0x8] sm:$0xff]  }
 0xacd   : > { %9072 = vmatpush1.bf16.msra.mxu1 %v15877_v26  ;;  %14084 = vmatprep.subr.bf16.mxu0 %v15903_v8  ;;  %v15930_v26 = vld [vmem:[%s19896_s5 + $0x754] ss:$12 sps:$4 sm:$0xff]   ;;  %v15943_v8 = vld [vmem:[%s19898_s7 + $0x1f8] sm:$0xff]  }
 0xace   : > { %9073 = vmatprep.subr.bf16.mxu1 %v15882_v16 }
 0xad0   : > { %14085 = vmatpush3.bf16.msra.mxu0 %v15904_v12  ;;  %v15945_v12 = vld [vmem:[%s19898_s7 + $0x1b8] sm:$0xff]  }
 0xad1   : > { %9074 = vmatpush1.bf16.msra.mxu1 %v15880_v34  ;;  %14086 = vmatprep.subr.bf16.mxu0 %v15908_v53  ;;  %v15947_v53 = vld [vmem:[%s19898_s7 + $0x200] sm:$0xff]  }
 0xad2   : > { %9075 = vmatprep.subr.bf16.mxu1 %v15887_v35 }
 0xad4   : > { %14087 = vmatpush3.bf16.msra.mxu0 %v15909_v61  ;;  %v15949_v61 = vld [vmem:[%s19898_s7 + $0x1c0] sm:$0xff]  }
 0xad5   : > { %9076 = vmatpush1.bf16.msra.mxu1 %v15885_v50  ;;  %14088 = vmatprep.subr.bf16.mxu0 %v15913_v44  ;;  %v15928_v50 = vld [vmem:[%s19896_s5 + $0x750] ss:$12 sps:$4 sm:$0xff]   ;;  %v15951_v44 = vld [vmem:[%s19898_s7 + $0x208] sm:$0xff]  }
 0xad6   : > { %9077 = vmatprep.subr.bf16.mxu1 %v15892_v0  ;;  %v15935_v0 = vld [vmem:[%s19896_s5 + $0x770] ss:$12 sps:$4 sm:$0xff]  }
 0xad8   : > { %14089 = vmatpush3.bf16.msra.mxu0 %v15914_v52  ;;  %v15953_v52 = vld [vmem:[%s19898_s7 + $0x1c8] sm:$0xff]  }
 0xad9   : > { %9078 = vmatpush1.bf16.msra.mxu1 %v15890_v55  ;;  %14090 = vmatprep.subr.bf16.mxu0 %v15918_v6  ;;  %v15932_v55 = vld [vmem:[%s19896_s5 + $0x768] ss:$12 sps:$4 sm:$0xff]  }
 0xada   : > { %9079 = vmatprep.subr.bf16.mxu1 %v15897_v7  ;;  %v15937_v7 = vld [vmem:[%s19898_s7] sm:$0xff]   ;;  %v15955_v6 = vld [vmem:[%s19898_s7 + $0x210] sm:$0xff]  }
 0xadc   : > { %14091 = vmatpush3.bf16.msra.mxu0 %v15919_v21  ;;  %v15957_v21 = vld [vmem:[%s19898_s7 + $0x1d0] sm:$0xff]  }
 0xadd   : > { %9080 = vmatpush1.bf16.msra.mxu1 %v15895_v54  ;;  %14636 = vmatprep.subr.bf16.mxu0 %v16211_v13  ;;  %v15938_v54 = vld [vmem:[%s19898_s7 + $0x48] sm:$0xff]  }
 0xade   : > { %9081 = vmatprep.subr.bf16.mxu1 %v15902_v2  ;;  %v15942_v2 = vld [vmem:[%s19898_s7 + $0x50] sm:$0xff]  }
 0xae1   : > { %9082 = vmatpush1.bf16.msra.mxu1 %v15900_v36  ;;  %v15944_v36 = vld [vmem:[%s19898_s7 + $0x10] sm:$0xff]  }
 0xae2   : > { %9083 = vmatprep.subr.bf16.mxu1 %v15907_v25  ;;  %v15946_v25 = vld [vmem:[%s19898_s7 + $0x58] sm:$0xff]  }
 0xae5   : > { %9084 = vmatpush1.bf16.msra.mxu1 %v15905_v39  ;;  %v15948_v39 = vld [vmem:[%s19898_s7 + $0x18] sm:$0xff]  }
 0xae6   : > { %9085 = vmatprep.subr.bf16.mxu1 %v15912_v4  ;;  %v15950_v4 = vld [vmem:[%s19898_s7 + $0x60] sm:$0xff]  }
 0xae9   : > { %9086 = vmatpush1.bf16.msra.mxu1 %v15910_v43  ;;  %v15952_v43 = vld [vmem:[%s19898_s7 + $0x20] sm:$0xff]  }
 0xaea   : > { %9087 = vmatprep.subr.bf16.mxu1 %v15917_v14  ;;  %v15954_v14 = vld [vmem:[%s19898_s7 + $0x68] sm:$0xff]  }
 0xaed   : > { %9088 = vmatpush1.bf16.msra.mxu1 %v15915_v40  ;;  %v15956_v40 = vld [vmem:[%s19898_s7 + $0x28] sm:$0xff]  }
 0xaee   : > { %9100 = vmatprep.subr.bf16.mxu1 %v15922_v45  ;;  %v15958_v45 = vld [vmem:[%s19898_s7 + $0x70] sm:$0xff]  }
 0xb72   : > { %v14062_v18 = vpop.f32.mrb[112].mxu0 }
 0xb73   : > { %v14063_v3 = vpop.f32.mrb[113].mxu0 }
 0xb74   : > { %v14064_v24 = vadd.f32 %v14063_v3, %v14062_v18  ;;  %v14065_v38 = vpop.f32.mrb[114].mxu0  ;;  %v15959_v18 = vld [vmem:[%s19898_s7 + $0x218] sm:$0xff]   ;;  %v15960_v3 = vld [vmem:[%s19898_s7 + $0x30] sm:$0xff]  }
 0xb75   : > { %v14066_v23 = vpop.f32.mrb[115].mxu0 }
 0xb76   : > { %v14067_v47 = vadd.f32 %v14066_v23, %v14065_v38  ;;  %v15962_v38 = vld [vmem:[%s19898_s7 + $0x78] sm:$0xff]   ;;  %v15963_v23 = vld [vmem:[%s19898_s7 + $0x220] sm:$0xff]  }
 0xb82   : > { %v8542_v58 = vpop.f32.mrb[116].mxu0 }
 0xb83   : > { %v8543_v27 = vadd.f32 %v14064_v24, %v8542_v58  ;;  %v14626_v19 = vpop.f32.mrb[117].mxu0  ;;  %v15961_v24 = vld [vmem:[%s19898_s7 + $0x1d8] sm:$0xff]   ;;  %v15965_v58 = vld [vmem:[%s19898_s7 + $0x1e0] sm:$0xff]  }
 0xb84   : > { %v8545_v28 = vpop.f32.mrb[118].mxu0  ;;  %v15968_v19 = vld [vmem:[%s19898_s7 + $0x1e8] sm:$0xff]  }
 0xb85   : > { %v19211_v15 = vadd.f32 %v8543_v27, %v19000_v46  ;;  %v8546_v29 = vadd.f32 %v14067_v47, %v8545_v28  ;;  %v14627_v41 = vpop.f32.mrb[119].mxu0  ;;  %v15923_v46 = vld [vmem:[%s19896_s5 + $0x728] ss:$12 sps:$4 sm:$0xff]   ;;  %v15964_v47 = vld [vmem:[%s19898_s7 + $0x38] sm:$0xff]   ;;  %v15969_v28 = vld [vmem:[%s19898_s7 + $0x280] sm:$0xff]  }
 0xb86   : > { %v15966_v27 = vld [vmem:[%s19898_s7 + $0x228] sm:$0xff]  }
 0xb87   : > { %v19214_v17 = vadd.f32 %v8546_v29, %v19002_v51  ;;  %v15924_v51 = vld [vmem:[%s19896_s5 + $0x738] ss:$12 sps:$4 sm:$0xff]  }
 0xb8a   : > { %v8600_v20 = vpop.f32.mrb[120].mxu0 }
 0xb8b   : > { %v8602_v62 = vpop.f32.mrb[121].mxu0 }
 0xb8c   : > { %v8604_v30 = vpop.f32.mrb[122].mxu0 }
 0xb8d   : > { %v8650_v57 = vpack.c.bf16 %v8604_v30, %v8600_v20  ;;  %v8606_v42 = vpop.f32.mrb[123].mxu0 }
 0xb8e   : > { %v8651_v31 = vpack.c.bf16 %v8606_v42, %v8602_v62  ;;  %v9231_v42 = vld [vmem:[%s19897_s6] sm:$0x7] }
 0xb90   : > { %9089 = vmatprep.mubr.bf16.mxu1 %v8651_v31  ;;  %9175 = vmatprep.mubr.bf16.mxu0 %v8651_v31  ;;  %v9236_v31 = vrot.slane %v9231_v42, %v6493_v63 }
 0xb91   : > { %9090 = vmatmul.mubr.bf16.vlgmr.msra.gmra.mrb[188].mxu1 %v8650_v57  ;;  %9176 = vmatmul.mubr.bf16.vlgmr.msra.gmra.mrb[128].mxu0 %v8650_v57 }
 0xb92   : > { %9101 = vmatpush1.bf16.msra.mxu1 %v15920_v22  ;;  %14637 = vmatpush3.bf16.msra.mxu0 %v15923_v46  ;;  %v8643_v49 = vpop.f32.mrb[124].mxu0  ;;  %v9240_v22 = vrot.slane %v9231_v42, %v6497_v59 }
 0xb93   : > { %9102 = vmatprep.subr.bf16.mxu1 %v15926_v32  ;;  %14638 = vmatprep.subr.bf16.mxu0 %v16211_v13  ;;  %v14634_v16 = vpop.f32.mrb[125].mxu0 }
 0xb94   : > { %v8646_v34 = vpop.f32.mrb[126].mxu0  ;;  %9132 = vmatprep.mubr.bf16.mxu1 %v16210_v1  ;;  %14644 = vmatprep.mubr.msk.bf16.mxu0 %vm16212_vm4, %v16211_v13  ;;  %v15934_v1 = vld [vmem:[%s19896_s5 + $0x76c] ss:$12 sps:$4 sm:$0xff]  }
 0xb95   : > { %v8652_v35 = vpack.c.bf16 %v8646_v34, %v8643_v49  ;;  %v14635_v37 = vpop.f32.mrb[127].mxu0  ;;  %v9244_v49 = vrot.slane %v9231_v42, %v6501_v10  ;;  %v15996_v42 = vld [vmem:[%s19898_s7 + $0x100] sm:$0xff]  }
 0xb96   : > { %9103 = vmatpush1.bf16.msra.mxu1 %v15924_v51  ;;  %14639 = vmatpush3.bf16.msra.mxu0 %v15927_v33 }
 0xb97   : > { %9104 = vmatprep.subr.bf16.mxu1 %v15930_v26  ;;  %14640 = vmatprep.subr.bf16.mxu0 %v16211_v13 }
 0xb9a   : > { %9105 = vmatpush1.bf16.msra.mxu1 %v15928_v50  ;;  %14641 = vmatpush3.bf16.msra.mxu0 %v15931_v56 }
 0xb9b   : > { %9106 = vmatprep.subr.bf16.mxu1 %v15934_v1  ;;  %14642 = vmatprep.subr.bf16.mxu0 %v16211_v13 }
 0xb9e   : > { %9107 = vmatpush1.bf16.msra.mxu1 %v15932_v55  ;;  %14643 = vmatpush3.bf16.msra.mxu0 %v15935_v0 }
 0xb9f   : > { %14103 = vmatprep.subr.bf16.mxu0 %v15936_v5  ;;  %14178 = vmatprep.subr.bf16.mxu1 %v15939_v60 }
 0xba1   : > { %13175 = vmatmul.mubr.msk.bf16.vlgmr.msra.gmra.mrb[188].mxu1 %vm7216_vm5, %v8652_v35  ;;  %14645 = vmatmul.mubr.msk.bf16.vlgmr.msra.gmra.mrb[132].mxu0 %vm7216_vm5, %v8652_v35 }
 0xba2   : > { %14104 = vmatpush3.bf16.msra.mxu0 %v15937_v7  ;;  %14179 = vmatpush3.bf16.msra.mxu1 %v15941_v11 }
 0xba3   : > { %14105 = vmatprep.subr.bf16.mxu0 %v15938_v54  ;;  %14180 = vmatprep.subr.bf16.mxu1 %v15943_v8 }
 0xba6   : > { %14106 = vmatpush3.bf16.msra.mxu0 %v15940_v48  ;;  %14181 = vmatpush3.bf16.msra.mxu1 %v15945_v12 }
 0xba7   : > { %14107 = vmatprep.subr.bf16.mxu0 %v15942_v2  ;;  %14182 = vmatprep.subr.bf16.mxu1 %v15947_v53  ;;  %v15970_v53 = vld [vmem:[%s19898_s7 + $0x88] sm:$0xff]  }
 0xbaa   : > { %14108 = vmatpush3.bf16.msra.mxu0 %v15944_v36  ;;  %14183 = vmatpush3.bf16.msra.mxu1 %v15949_v61 }
 0xbab   : > { %14109 = vmatprep.subr.bf16.mxu0 %v15946_v25  ;;  %14184 = vmatprep.subr.bf16.mxu1 %v15951_v44  ;;  %v15973_v44 = vld [vmem:[%s19898_s7 + $0x288] sm:$0xff]  }
 0xbae   : > { %14110 = vmatpush3.bf16.msra.mxu0 %v15948_v39  ;;  %14185 = vmatpush3.bf16.msra.mxu1 %v15953_v52  ;;  %v15971_v39 = vld [vmem:[%s19898_s7 + $0x240] sm:$0xff]   ;;  %v15974_v52 = vld [vmem:[%s19898_s7 + $0x90] sm:$0xff]  }
 0xbaf   : > { %14111 = vmatprep.subr.bf16.mxu0 %v15950_v4  ;;  %14186 = vmatprep.subr.bf16.mxu1 %v15955_v6  ;;  %v15972_v4 = vld [vmem:[%s19898_s7 + $0xd0] sm:$0xff]   ;;  %v15976_v6 = vld [vmem:[%s19898_s7 + $0xd8] sm:$0xff]  }
 0xbb2   : > { %14112 = vmatpush3.bf16.msra.mxu0 %v15952_v43  ;;  %14187 = vmatpush3.bf16.msra.mxu1 %v15957_v21  ;;  %v15978_v21 = vld [vmem:[%s19898_s7 + $0x98] sm:$0xff]  }
 0xbb3   : > { %14113 = vmatprep.subr.bf16.mxu0 %v15954_v14  ;;  %14188 = vmatprep.subr.bf16.mxu1 %v15959_v18  ;;  %v15975_v14 = vld [vmem:[%s19898_s7 + $0x248] sm:$0xff]   ;;  %v15980_v18 = vld [vmem:[%s19898_s7 + $0xe0] sm:$0xff]  }
 0xbb6   : > { %14114 = vmatpush3.bf16.msra.mxu0 %v15956_v40  ;;  %14189 = vmatpush3.bf16.msra.mxu1 %v15961_v24  ;;  %v15977_v40 = vld [vmem:[%s19898_s7 + $0x290] sm:$0xff]   ;;  %v15982_v24 = vld [vmem:[%s19898_s7 + $0xa0] sm:$0xff]  }
 0xbb7   : > { %14115 = vmatprep.subr.bf16.mxu0 %v15958_v45  ;;  %14190 = vmatprep.subr.bf16.mxu1 %v15963_v23  ;;  %v15979_v45 = vld [vmem:[%s19898_s7 + $0x250] sm:$0xff]   ;;  %v15984_v23 = vld [vmem:[%s19898_s7 + $0xe8] sm:$0xff]  }
 0xbba   : > { %14116 = vmatpush3.bf16.msra.mxu0 %v15960_v3  ;;  %14191 = vmatpush3.bf16.msra.mxu1 %v15965_v58  ;;  %v15981_v3 = vld [vmem:[%s19898_s7 + $0x298] sm:$0xff]   ;;  %v15986_v58 = vld [vmem:[%s19898_s7 + $0xa8] sm:$0xff]  }
 0xbbb   : > { %14117 = vmatprep.subr.bf16.mxu0 %v15962_v38  ;;  %14192 = vmatprep.subr.bf16.mxu1 %v15966_v27  ;;  %v15983_v38 = vld [vmem:[%s19898_s7 + $0x258] sm:$0xff]   ;;  %v15987_v27 = vld [vmem:[%s19898_s7 + $0x260] sm:$0xff]  }
 0xbbe   : > { %14118 = vmatpush3.bf16.msra.mxu0 %v15964_v47  ;;  %14193 = vmatpush3.bf16.msra.mxu1 %v15968_v19  ;;  %v15985_v47 = vld [vmem:[%s19898_s7 + $0x2a0] sm:$0xff]   ;;  %v15988_v19 = vld [vmem:[%s19898_s7 + $0xf0] sm:$0xff]  }
 0xbbf   : > { %14648 = vmatprep.subr.bf16.mxu0 %v16211_v13  ;;  %14203 = vmatprep.subr.bf16.mxu1 %v15969_v28  ;;  %v15989_v28 = vld [vmem:[%s19898_s7 + $0x2a8] sm:$0xff]  }
 0xc64   : > { %v14092_v29 = vpop.f32.mrb[128].mxu0 }
 0xc65   : > { %v14093_v41 = vpop.f32.mrb[129].mxu0 }
 0xc66   : > { %v14094_v20 = vadd.f32 %v14093_v41, %v14092_v29  ;;  %v14095_v62 = vpop.f32.mrb[130].mxu0  ;;  %v15990_v29 = vld [vmem:[%s19898_s7 + $0xb0] sm:$0xff]   ;;  %v15991_v41 = vld [vmem:[%s19898_s7 + $0x268] sm:$0xff]  }
 0xc67   : > { %v14096_v30 = vpop.f32.mrb[131].mxu0 }
 0xc68   : > { %v14097_v57 = vadd.f32 %v14096_v30, %v14095_v62  ;;  %v15993_v62 = vld [vmem:[%s19898_s7 + $0x2b0] sm:$0xff]   ;;  %v15994_v30 = vld [vmem:[%s19898_s7 + $0xb8] sm:$0xff]  }
 0xc74   : > { %v9134_v46 = vpop.f32.mrb[188].mxu1  ;;  %v9218_v32 = vpop.f32.mrb[132].mxu0 }
 0xc75   : > { %v9248_v51 = vadd.f32 %v9236_v31, %v9134_v46  ;;  %v9219_v33 = vadd.f32 %v14094_v20, %v9218_v32  ;;  %v9136_v26 = vpop.f32.mrb[189].mxu1  ;;  %v14646_v16 = vpop.f32.mrb[133].mxu0  ;;  %v15992_v20 = vld [vmem:[%s19898_s7 + $0xf8] sm:$0xff]   ;;  %v16000_v32 = vld [vmem:[%s19898_s7 + $0x108] sm:$0xff]  }
 0xc76   : > { %v9249_v34 = vadd.f32 %v9240_v22, %v9136_v26  ;;  %v9138_v35 = vpop.f32.mrb[190].mxu1  ;;  %v9221_v37 = vpop.f32.mrb[134].mxu0  ;;  %v15999_v46 = vld [vmem:[%s19898_s7 + $0x278] sm:$0xff]   ;;  %v16004_v16 = vld [vmem:[%s19898_s7 + $0x3a8] sm:$0xff]  }
 0xc77   : > { %v9227_v50 = vadd.f32 %v9219_v33, %v19211_v15  ;;  %v9251_v56 = vadd.f32 %v9236_v31, %v9138_v35  ;;  %v9222_v1 = vadd.f32 %v14097_v57, %v9221_v37  ;;  %v9140_v63 = vpop.f32.mrb[191].mxu1  ;;  %v14647_v55 = vpop.f32.mrb[135].mxu0  ;;  %v9254_v59 = vmax.f32 %v9248_v51, 0.0  ;;  %v15967_v15 = vld [vmem:[%s19898_s7 + $0x80] sm:$0xff]   ;;  %v15995_v57 = vld [vmem:[%s19898_s7 + $0x270] sm:$0xff]   ;;  %v15997_v31 = vld [vmem:[%s19898_s7 + $0x2b8] sm:$0xff]  }
 0xc78   : > { %v9252_v0 = vadd.f32 %v9240_v22, %v9140_v63  ;;  %v9255_v11 = vmax.f32 %v9249_v34, 0.0  ;;  %v15998_v22 = vld [vmem:[%s19898_s7 + $0xc0] sm:$0xff]   ;;  %v16002_v33 = vld [vmem:[%s19898_s7 + $0xc8] sm:$0xff]   ;;  %v16005_v35 = vld [vmem:[%s19898_s7 + $0x110] sm:$0xff]  }
 0xc79   : > { %v9250_v5 = vadd.f32 %v9244_v49, %v9227_v50  ;;  %v9257_v60 = vmax.f32 %v9251_v56, 0.0  ;;  %v9230_v7 = vadd.f32 %v9222_v1, %v19214_v17  ;;  %v16001_v51 = vld [vmem:[%s19898_s7 + $0x3a0] sm:$0xff]   ;;  %v16006_v37 = vld [vmem:[%s19898_s7 + $0x368] sm:$0xff]   ;;  %v16007_v50 = vld [vmem:[%s19898_s7 + $0x3b0] sm:$0xff]  }
 0xc7a   : > { %v9258_v9 = vmax.f32 %v9252_v0, 0.0  ;;  %v16008_v56 = vld [vmem:[%s19898_s7 + $0x118] sm:$0xff]   ;;  %v16009_v1 = vld [vmem:[%s19898_s7 + $0x370] sm:$0xff]   ;;  %v16010_v63 = vld [vmem:[%s19898_s7 + $0x160] sm:$0xff]  }
 0xc7b   : > { %v19368_v10 = vpack.c.bf16 %v9257_v60, %v9254_v59  ;;  %v9253_v54 = vadd.f32 %v9244_v49, %v9230_v7  ;;  %v9256_v2 = vmax.f32 %v9250_v5, 0.0  ;;  %v16003_v49 = vld [vmem:[%s19898_s7 + $0x360] sm:$0xff]   ;;  %v16011_v55 = vld [vmem:[%s19898_s7 + $0x3b8] sm:$0xff]   ;;  %v16014_v60 = vld [vmem:[%s19898_s7 + $0x168] sm:$0xff]  }
 0xc7c   : > { %v19370_v48 = vpack.c.bf16 %v9258_v9, %v9255_v11  ;;  %v16012_v0 = vld [vmem:[%s19898_s7 + $0x120] sm:$0xff]   ;;  %v16013_v5 = vld [vmem:[%s19898_s7 + $0x378] sm:$0xff]   ;;  %v16016_v9 = vld [vmem:[%s19898_s7 + $0x128] sm:$0xff]  }
 0xc7d   : > { %v9259_v8 = vmax.f32 %v9253_v54, 0.0  ;;  %v19376_v36 = vshrl.u32 %v19368_v10, 16  ;;  %v10240_v26 = vrot.slane %v19368_v10, 2  ;;  %v16015_v11 = vld [vmem:[%s19898_s7 + $0x3c0] sm:$0xff]  }
 0xc7e   : > { %9444 = vmatprep.mubr.bf16.mxu0 %v19370_v48  ;;  %v19380_v17 = vshrl.u32 %v19370_v48, 16  ;;  %v10241_v43 = vrot.slane %v19370_v48, 2  ;;  %v10709_v34 = vrot.slane %v19370_v48, 3  ;;  %v9773_v7 = vrot.slane %v19370_v48, 1  ;;  %v16017_v54 = vld [vmem:[%s19898_s7 + $0x380] sm:$0xff]  }
 0xc7f   : > { %v19382_v12 = vpack.c.bf16 %v9259_v8, %v9256_v2  ;;  %9445 = vmatmul.mubr.bf16.vlgmr.msra.gmra.mrb[136].mxu0 %v19368_v10  ;;  %v10006_v61 = vrot.slane %v19376_v36, 1  ;;  %v16019_v2 = vld [vmem:[%s19898_s7 + $0x3c8] sm:$0xff]   ;;  %v16020_v8 = vld [vmem:[%s19898_s7 + $0x130] sm:$0xff]  }
 0xc80   : > { %14649 = vmatpush3.bf16.msra.mxu0 %v15967_v15  ;;  %v10007_v25 = vrot.slane %v19380_v17, 1  ;;  %14652 = vmatprep.mubr.msk.bf16.mxu0 %vm16212_vm4, %v16211_v13  ;;  %v16018_v15 = vld [vmem:[%s19898_s7 + $0x170] sm:$0xff]  }
 0xc81   : > { %14650 = vmatprep.subr.bf16.mxu0 %v16211_v13  ;;  %v19531_v59 = vshrl.u32 %v19382_v12, 16 }
 0xc82   : > { %10154 = vmatprep.mubr.bf16.mxu1 %v10007_v25  ;;  %v16021_v25 = vld [vmem:[%s19898_s7 + $0x388] sm:$0xff]  }
 0xc83   : > { %10155 = vmatmul.mubr.bf16.vlgmr.msra.gmra.mrb[192].mxu1 %v10006_v61  ;;  %v16024_v61 = vld [vmem:[%s19898_s7 + $0x138] sm:$0xff]  }
 0xc84   : > { %14651 = vmatpush3.bf16.msra.mxu0 %v15970_v53  ;;  %14204 = vmatpush3.bf16.msra.mxu1 %v15971_v39  ;;  %v16022_v53 = vld [vmem:[%s19898_s7 + $0x178] sm:$0xff]   ;;  %v16023_v39 = vld [vmem:[%s19898_s7 + $0x3d0] sm:$0xff]  }
 0xc85   : > { %10388 = vmatprep.mubr.bf16.mxu1 %v10241_v43  ;;  %14128 = vmatprep.subr.bf16.mxu0 %v15972_v4  ;;  %v16025_v4 = vld [vmem:[%s19898_s7 + $0x390] sm:$0xff]   ;;  %v16027_v43 = vld [vmem:[%s19898_s7 + $0x3d8] sm:$0xff]  }
 0xc86   : > { %14205 = vmatprep.subr.bf16.mxu1 %v15973_v44  ;;  %v16026_v44 = vld [vmem:[%s19898_s7 + $0x180] sm:$0xff]  }
 0xc87   : > { %14653 = vmatmul.mubr.msk.bf16.vlgmr.msra.gmra.mrb[140].mxu0 %vm9408_vm6, %v19382_v12 }
 0xc88   : > { %14129 = vmatpush3.bf16.msra.mxu0 %v15974_v52  ;;  %14206 = vmatpush3.bf16.msra.mxu1 %v15975_v14  ;;  %v16028_v52 = vld [vmem:[%s19898_s7 + $0x140] sm:$0xff]   ;;  %v16029_v14 = vld [vmem:[%s19898_s7 + $0x398] sm:$0xff]  }
 0xc89   : > { %9683 = vmatprep.mubr.bf16.mxu0 %v19380_v17  ;;  %14130 = vmatprep.subr.bf16.mxu0 %v15976_v6  ;;  %v16030_v6 = vld [vmem:[%s19898_s7 + $0x188] sm:$0xff]  }
 0xc8a   : > { %14207 = vmatprep.subr.bf16.mxu1 %v15977_v40  ;;  %v16031_v40 = vld [vmem:[%s19898_s7 + $0x4c0] sm:$0xff]  }
 0xc8c   : > { %14131 = vmatpush3.bf16.msra.mxu0 %v15978_v21  ;;  %14208 = vmatpush3.bf16.msra.mxu1 %v15979_v45  ;;  %v16032_v21 = vld [vmem:[%s19898_s7 + $0x148] sm:$0xff]   ;;  %v16033_v45 = vld [vmem:[%s19898_s7 + $0x480] sm:$0xff]  }
 0xc8d   : > { %14132 = vmatprep.subr.bf16.mxu0 %v15980_v18  ;;  %14209 = vmatprep.subr.bf16.mxu1 %v15981_v3  ;;  %v10708_v18 = vrot.slane %v19368_v10, 3  ;;  %v16034_v3 = vld [vmem:[%s19898_s7 + $0x190] sm:$0xff]  }
 0xc90   : > { %14133 = vmatpush3.bf16.msra.mxu0 %v15982_v24  ;;  %14210 = vmatpush3.bf16.msra.mxu1 %v15983_v38  ;;  %v16035_v24 = vld [vmem:[%s19898_s7 + $0x4c8] sm:$0xff]   ;;  %v11177_v38 = vrot.slane %v19370_v48, 4  ;;  %v16039_v48 = vld [vmem:[%s19898_s7 + $0x4d0] sm:$0xff]  }
 0xc91   : > { %14134 = vmatprep.subr.bf16.mxu0 %v15984_v23  ;;  %14211 = vmatprep.subr.bf16.mxu1 %v15985_v47  ;;  %v16036_v23 = vld [vmem:[%s19898_s7 + $0x150] sm:$0xff]   ;;  %v16037_v47 = vld [vmem:[%s19898_s7 + $0x488] sm:$0xff]  }
 0xc94   : > { %14135 = vmatpush3.bf16.msra.mxu0 %v15986_v58  ;;  %14212 = vmatpush3.bf16.msra.mxu1 %v15987_v27  ;;  %v16038_v58 = vld [vmem:[%s19898_s7 + $0x198] sm:$0xff]  }
 0xc95   : > { %14136 = vmatprep.subr.bf16.mxu0 %v15988_v19  ;;  %14213 = vmatprep.subr.bf16.mxu1 %v15989_v28  ;;  %v16040_v27 = vld [vmem:[%s19898_s7 + $0x158] sm:$0xff]   ;;  %v16041_v19 = vld [vmem:[%s19898_s7 + $0x490] sm:$0xff]  }
 0xc96   : > { %v16042_v28 = vld [vmem:[%s19898_s7 + $0x4d8] sm:$0xff]  }
 0xc98   : > { %14137 = vmatpush3.bf16.msra.mxu0 %v15990_v29  ;;  %14214 = vmatpush3.bf16.msra.mxu1 %v15991_v41  ;;  %v16043_v29 = vld [vmem:[%s19898_s7 + $0x1a0] sm:$0xff]   ;;  %v9772_v41 = vrot.slane %v19368_v10, 1 }
 0xc99   : > { %14138 = vmatprep.subr.bf16.mxu0 %v15992_v20  ;;  %14215 = vmatprep.subr.bf16.mxu1 %v15993_v62  ;;  %v16044_v20 = vld [vmem:[%s19898_s7 + $0x498] sm:$0xff]   ;;  %v16045_v62 = vld [vmem:[%s19898_s7 + $0x4e0] sm:$0xff]  }
 0xc9c   : > { %14139 = vmatpush3.bf16.msra.mxu0 %v15994_v30  ;;  %14216 = vmatpush3.bf16.msra.mxu1 %v15995_v57  ;;  %v16046_v30 = vld [vmem:[%s19898_s7 + $0x1a8] sm:$0xff]   ;;  %v16047_v57 = vld [vmem:[%s19898_s7 + $0x4a0] sm:$0xff]  }
 0xc9d   : > { %14140 = vmatprep.subr.bf16.mxu0 %v15996_v42  ;;  %14217 = vmatprep.subr.bf16.mxu1 %v15997_v31  ;;  %v16048_v42 = vld [vmem:[%s19898_s7 + $0x4e8] sm:$0xff]   ;;  %v16049_v31 = vld [vmem:[%s19898_s7 + $0x230] sm:$0xff]  }
 0xca0   : > { %14141 = vmatpush3.bf16.msra.mxu0 %v15998_v22  ;;  %14218 = vmatpush3.bf16.msra.mxu1 %v15999_v46  ;;  %v9774_v22 = vrot.slane %v19382_v12, 1  ;;  %v16050_v46 = vld [vmem:[%s19898_s7 + $0x4a8] sm:$0xff]  }
 0xca1   : > { %14142 = vmatprep.subr.bf16.mxu0 %v16000_v32  ;;  %14253 = vmatprep.subr.bf16.mxu1 %v16001_v51  ;;  %v16051_v32 = vld [vmem:[%s19898_s7 + $0x4f0] sm:$0xff]   ;;  %v16053_v51 = vld [vmem:[%s19898_s7 + $0x238] sm:$0xff]  }
 0xca3   : > { %10389 = vmatmul.mubr.bf16.vlgmr.msra.gmra.mrb[196].mxu1 %v10240_v26  ;;  %v16055_v26 = vld [vmem:[%s19898_s7 + $0x4b8] sm:$0xff]  }
 0xca4   : > { %14143 = vmatpush3.bf16.msra.mxu0 %v16002_v33  ;;  %14254 = vmatpush3.bf16.msra.mxu1 %v16003_v49  ;;  %v16052_v33 = vld [vmem:[%s19898_s7 + $0x4b0] sm:$0xff]   ;;  %v16054_v49 = vld [vmem:[%s19898_s7 + $0x4f8] sm:$0xff]  }
 0xca5   : > { %10856 = vmatprep.mubr.bf16.mxu1 %v10709_v34  ;;  %14656 = vmatprep.subr.bf16.mxu0 %v16211_v13  ;;  %v10008_v34 = vrot.slane %v19531_v59, 1 }
 0xca6   : > { %14255 = vmatprep.subr.bf16.mxu1 %v16004_v16  ;;  %v16056_v16 = vld [vmem:[%s19898_s7 + $0x2c0] sm:$0xff]  }
 0xca7   : > { %9684 = vmatmul.mubr.bf16.vlgmr.msra.gmra.mrb[144].mxu0 %v19376_v36 }
 0xca8   : > { %14657 = vmatpush3.bf16.msra.mxu0 %v16005_v35  ;;  %14256 = vmatpush3.bf16.msra.mxu1 %v16006_v37  ;;  %v11176_v35 = vrot.slane %v19368_v10, 4  ;;  %v16057_v37 = vld [vmem:[%s19898_s7 + $0x2c8] sm:$0xff]   ;;  %v16059_v10 = vld [vmem:[%s19898_s7 + $0x2d0] sm:$0xff]  }
 0xca9   : > { %14658 = vmatprep.subr.bf16.mxu0 %v16211_v13  ;;  %14257 = vmatprep.subr.bf16.mxu1 %v16007_v50  ;;  %v16058_v50 = vld [vmem:[%s19898_s7 + $0x310] sm:$0xff]  }
 0xcaa   : > { %14660 = vmatprep.mubr.msk.bf16.mxu0 %vm16212_vm4, %v16211_v13 }
 0xcac   : > { %14659 = vmatpush3.bf16.msra.mxu0 %v16008_v56  ;;  %14258 = vmatpush3.bf16.msra.mxu1 %v16009_v1  ;;  %v10242_v56 = vrot.slane %v19382_v12, 2  ;;  %v16060_v1 = vld [vmem:[%s19898_s7 + $0x318] sm:$0xff]  }
 0xcad   : > { %14153 = vmatprep.subr.bf16.mxu0 %v16010_v63  ;;  %14259 = vmatprep.subr.bf16.mxu1 %v16011_v55  ;;  %v10475_v63 = vrot.slane %v19380_v17, 2  ;;  %v16061_v55 = vld [vmem:[%s19898_s7 + $0x2d8] sm:$0xff]  }
 0xcaf   : > { %14661 = vmatmul.mubr.msk.bf16.vlgmr.msra.gmra.mrb[140].mxu0 %vm9408_vm6, %v19531_v59 }
 0xcb0   : > { %14154 = vmatpush3.bf16.msra.mxu0 %v16012_v0  ;;  %9920 = vmatprep.mubr.bf16.mxu0 %v9773_v7  ;;  %v16062_v0 = vld [vmem:[%s19898_s7 + $0x320] sm:$0xff]   ;;  %v16065_v7 = vld [vmem:[%s19898_s7 + $0x2e8] sm:$0xff]  }
 0xcb1   : > { %14260 = vmatpush3.bf16.msra.mxu1 %v16013_v5  ;;  %14155 = vmatprep.subr.bf16.mxu0 %v16014_v60  ;;  %v16063_v5 = vld [vmem:[%s19898_s7 + $0x2e0] sm:$0xff]   ;;  %v16064_v60 = vld [vmem:[%s19898_s7 + $0x328] sm:$0xff]  }
 0xcb2   : > { %14261 = vmatprep.subr.bf16.mxu1 %v16015_v11  ;;  %v16066_v11 = vld [vmem:[%s19898_s7 + $0x330] sm:$0xff]  }
 0xcb4   : > { %14156 = vmatpush3.bf16.msra.mxu0 %v16016_v9  ;;  %v16067_v9 = vld [vmem:[%s19898_s7 + $0x2f0] sm:$0xff]  }
 0xcb5   : > { %14262 = vmatpush3.bf16.msra.mxu1 %v16017_v54  ;;  %14157 = vmatprep.subr.bf16.mxu0 %v16018_v15  ;;  %v16068_v54 = vld [vmem:[%s19898_s7 + $0x338] sm:$0xff]  }
 0xcb6   : > { %14263 = vmatprep.subr.bf16.mxu1 %v16019_v2  ;;  %v16069_v15 = vld [vmem:[%s19898_s7 + $0x2f8] sm:$0xff]   ;;  %v16070_v2 = vld [vmem:[%s19898_s7 + $0x340] sm:$0xff]  }
 0xcb8   : > { %14158 = vmatpush3.bf16.msra.mxu0 %v16020_v8  ;;  %v16071_v8 = vld [vmem:[%s19898_s7 + $0x300] sm:$0xff]  }
 0xcb9   : > { %14264 = vmatpush3.bf16.msra.mxu1 %v16021_v25  ;;  %14159 = vmatprep.subr.bf16.mxu0 %v16022_v53  ;;  %v16072_v25 = vld [vmem:[%s19898_s7 + $0x348] sm:$0xff]  }
 0xcba   : > { %14265 = vmatprep.subr.bf16.mxu1 %v16023_v39  ;;  %v16073_v53 = vld [vmem:[%s19898_s7 + $0x308] sm:$0xff]   ;;  %v16074_v39 = vld [vmem:[%s19898_s7 + $0x350] sm:$0xff]  }
 0xcbc   : > { %14160 = vmatpush3.bf16.msra.mxu0 %v16024_v61  ;;  %v10474_v61 = vrot.slane %v19376_v36, 2 }
 0xcbd   : > { %14266 = vmatpush3.bf16.msra.mxu1 %v16025_v4  ;;  %14161 = vmatprep.subr.bf16.mxu0 %v16026_v44  ;;  %v16075_v4 = vld [vmem:[%s19898_s7 + $0x358] sm:$0xff]   ;;  %v16076_v44 = vld [vmem:[%s19898_s7 + $0x3e0] sm:$0xff]  }
 0xcbe   : > { %14267 = vmatprep.subr.bf16.mxu1 %v16027_v43  ;;  %v10476_v43 = vrot.slane %v19531_v59, 2 }
 0xcc0   : > { %14162 = vmatpush3.bf16.msra.mxu0 %v16028_v52  ;;  %v16077_v52 = vld [vmem:[%s19898_s7 + $0x3e8] sm:$0xff]  }
 0xcc1   : > { %14268 = vmatpush3.bf16.msra.mxu1 %v16029_v14  ;;  %14163 = vmatprep.subr.bf16.mxu0 %v16030_v6  ;;  %v16078_v14 = vld [vmem:[%s19898_s7 + $0x430] sm:$0xff]  }
 0xcc2   : > { %14303 = vmatprep.subr.bf16.mxu1 %v16031_v40  ;;  %v16079_v6 = vld [vmem:[%s19898_s7 + $0x3f0] sm:$0xff]   ;;  %v10710_v40 = vrot.slane %v19382_v12, 3 }
 0xcc4   : > { %10857 = vmatmul.mubr.bf16.vlgmr.msra.gmra.mrb[200].mxu1 %v10708_v18  ;;  %14164 = vmatpush3.bf16.msra.mxu0 %v16032_v21  ;;  %v16080_v21 = vld [vmem:[%s19898_s7 + $0x438] sm:$0xff]  }
 0xcc5   : > { %14304 = vmatpush3.bf16.msra.mxu1 %v16033_v45  ;;  %11324 = vmatprep.mubr.bf16.mxu1 %v11177_v38  ;;  %v10943_v45 = vrot.slane %v19380_v17, 3  ;;  %v16081_v18 = vld [vmem:[%s19898_s7 + $0x3f8] sm:$0xff]   ;;  %v16084_v17 = vld [vmem:[%s19898_s7 + $0x448] sm:$0xff]  }
 0xcc6   : > { %14165 = vmatprep.subr.bf16.mxu0 %v16034_v3  ;;  %14305 = vmatprep.subr.bf16.mxu1 %v16035_v24  ;;  %v16082_v3 = vld [vmem:[%s19898_s7 + $0x440] sm:$0xff]   ;;  %v16085_v38 = vld [vmem:[%s19898_s7 + $0x408] sm:$0xff]  }
 0xcc7   : > { %v16083_v24 = vld [vmem:[%s19898_s7 + $0x400] sm:$0xff]  }
 0xcc8   : > { %14166 = vmatpush3.bf16.msra.mxu0 %v16036_v23  ;;  %v16086_v23 = vld [vmem:[%s19898_s7 + $0x450] sm:$0xff]  }
 0xcc9   : > { %14306 = vmatpush3.bf16.msra.mxu1 %v16037_v47  ;;  %14167 = vmatprep.subr.bf16.mxu0 %v16038_v58  ;;  %v16087_v47 = vld [vmem:[%s19898_s7 + $0x410] sm:$0xff]   ;;  %v16088_v58 = vld [vmem:[%s19898_s7 + $0x458] sm:$0xff]  }
 0xcca   : > { %14307 = vmatprep.subr.bf16.mxu1 %v16039_v48  ;;  %v16089_v48 = vld [vmem:[%s19898_s7 + $0x418] sm:$0xff]  }
 0xccc   : > { %14168 = vmatpush3.bf16.msra.mxu0 %v16040_v27  ;;  %v16090_v27 = vld [vmem:[%s19898_s7 + $0x460] sm:$0xff]  }
 0xccd   : > { %14308 = vmatpush3.bf16.msra.mxu1 %v16041_v19  ;;  %14664 = vmatprep.subr.bf16.mxu0 %v16211_v13  ;;  %v16091_v19 = vld [vmem:[%s19898_s7 + $0x420] sm:$0xff]  }
 0xcce   : > { %14309 = vmatprep.subr.bf16.mxu1 %v16042_v28  ;;  %v16092_v28 = vld [vmem:[%s19898_s7 + $0x468] sm:$0xff]  }
 0xccf   : > { %9921 = vmatmul.mubr.bf16.vlgmr.msra.gmra.mrb[148].mxu0 %v9772_v41  ;;  %v16094_v41 = vld [vmem:[%s19898_s7 + $0x470] sm:$0xff]  }
 0xcd0   : > { %14665 = vmatpush3.bf16.msra.mxu0 %v16043_v29  ;;  %14668 = vmatprep.mubr.msk.bf16.mxu0 %vm16212_vm4, %v16211_v13  ;;  %v16093_v29 = vld [vmem:[%s19898_s7 + $0x428] sm:$0xff]  }
 0xcd1   : > { %14310 = vmatpush3.bf16.msra.mxu1 %v16044_v20  ;;  %14666 = vmatprep.subr.bf16.mxu0 %v16211_v13  ;;  %v10942_v20 = vrot.slane %v19376_v36, 3  ;;  %v10944_v36 = vrot.slane %v19531_v59, 3  ;;  %v11178_v59 = vrot.slane %v19382_v12, 4 }
 0xcd2   : > { %14311 = vmatprep.subr.bf16.mxu1 %v16045_v62  ;;  %v16095_v62 = vld [vmem:[%s19898_s7 + $0x478] sm:$0xff]  }
 0xcd4   : > { %14667 = vmatpush3.bf16.msra.mxu0 %v16046_v30  ;;  %v16096_v30 = vld [vmem:[%s19898_s7 + $0x500] sm:$0xff]  }
 0xcd5   : > { %14312 = vmatpush3.bf16.msra.mxu1 %v16047_v57  ;;  %14672 = vmatprep.subr.bf16.mxu0 %v16211_v13  ;;  %v16097_v57 = vld [vmem:[%s19898_s7 + $0x508] sm:$0xff]  }
 0xcd6   : > { %14313 = vmatprep.subr.bf16.mxu1 %v16048_v42 }
 0xcd7   : > { %14669 = vmatmul.mubr.msk.bf16.vlgmr.msra.gmra.mrb[140].mxu0 %vm9408_vm6, %v9774_v22 }
 0xcd8   : > { %14673 = vmatpush3.bf16.msra.mxu0 %v16049_v31  ;;  %14676 = vmatprep.mubr.msk.bf16.mxu0 %vm16212_vm4, %v16211_v13 }
 0xcd9   : > { %14314 = vmatpush3.bf16.msra.mxu1 %v16050_v46  ;;  %14674 = vmatprep.subr.bf16.mxu0 %v16211_v13 }
 0xcda   : > { %14315 = vmatprep.subr.bf16.mxu1 %v16051_v32 }
 0xcdc   : > { %14675 = vmatpush3.bf16.msra.mxu0 %v16053_v51 }
 0xcdd   : > { %14316 = vmatpush3.bf16.msra.mxu1 %v16052_v33  ;;  %14680 = vmatprep.subr.bf16.mxu0 %v16211_v13 }
 0xcde   : > { %14317 = vmatprep.subr.bf16.mxu1 %v16054_v49 }
 0xce1   : > { %14318 = vmatpush3.bf16.msra.mxu1 %v16055_v26 }
 0xce3   : > { %14677 = vmatmul.mubr.msk.bf16.vlgmr.msra.gmra.mrb[140].mxu0 %vm9408_vm6, %v10008_v34 }
 0xce4   : > { %11325 = vmatmul.mubr.bf16.vlgmr.msra.gmra.mrb[204].mxu1 %v11176_v35  ;;  %14681 = vmatpush3.bf16.msra.mxu0 %v16056_v16 }
 0xce5   : > { %14682 = vmatprep.subr.bf16.mxu0 %v16211_v13  ;;  %14684 = vmatprep.mubr.msk.bf16.mxu0 %vm16212_vm4, %v16211_v13 }
 0xce8   : > { %14683 = vmatpush3.bf16.msra.mxu0 %v16057_v37 }
 0xce9   : > { %14228 = vmatprep.subr.bf16.mxu0 %v16058_v50 }
 0xcef   : > { %14685 = vmatmul.mubr.msk.bf16.vlgmr.msra.gmra.mrb[140].mxu0 %vm9408_vm6, %v10242_v56 }
 0xcf0   : > { %14229 = vmatpush3.bf16.msra.mxu0 %v16059_v10  ;;  %10622 = vmatprep.mubr.bf16.mxu0 %v10475_v63 }
 0xcf1   : > { %14230 = vmatprep.subr.bf16.mxu0 %v16060_v1 }
 0xcf4   : > { %14231 = vmatpush3.bf16.msra.mxu0 %v16061_v55 }
 0xcf5   : > { %14232 = vmatprep.subr.bf16.mxu0 %v16062_v0 }
 0xcf8   : > { %14233 = vmatpush3.bf16.msra.mxu0 %v16063_v5 }
 0xcf9   : > { %14234 = vmatprep.subr.bf16.mxu0 %v16064_v60 }
 0xcfc   : > { %14235 = vmatpush3.bf16.msra.mxu0 %v16065_v7 }
 0xcfd   : > { %14236 = vmatprep.subr.bf16.mxu0 %v16066_v11 }
 0xd00   : > { %14237 = vmatpush3.bf16.msra.mxu0 %v16067_v9 }
 0xd01   : > { %14238 = vmatprep.subr.bf16.mxu0 %v16068_v54 }
 0xd04   : > { %14239 = vmatpush3.bf16.msra.mxu0 %v16069_v15 }
 0xd05   : > { %14240 = vmatprep.subr.bf16.mxu0 %v16070_v2 }
 0xd08   : > { %14241 = vmatpush3.bf16.msra.mxu0 %v16071_v8 }
 0xd09   : > { %14242 = vmatprep.subr.bf16.mxu0 %v16072_v25 }
 0xd0c   : > { %14243 = vmatpush3.bf16.msra.mxu0 %v16073_v53 }
 0xd0d   : > { %14688 = vmatprep.subr.bf16.mxu0 %v16211_v13 }
 0xd0f   : > { %10623 = vmatmul.mubr.bf16.vlgmr.msra.gmra.mrb[152].mxu0 %v10474_v61 }
 0xd10   : > { %14689 = vmatpush3.bf16.msra.mxu0 %v16074_v39  ;;  %14692 = vmatprep.mubr.msk.bf16.mxu0 %vm16212_vm4, %v16211_v13 }
 0xd11   : > { %14690 = vmatprep.subr.bf16.mxu0 %v16211_v13 }
 0xd14   : > { %14691 = vmatpush3.bf16.msra.mxu0 %v16075_v4 }
 0xd15   : > { %14696 = vmatprep.subr.bf16.mxu0 %v16211_v13 }
 0xd17   : > { %14693 = vmatmul.mubr.msk.bf16.vlgmr.msra.gmra.mrb[140].mxu0 %vm9408_vm6, %v10476_v43 }
 0xd18   : > { %14697 = vmatpush3.bf16.msra.mxu0 %v16076_v44  ;;  %14700 = vmatprep.mubr.msk.bf16.mxu0 %vm16212_vm4, %v16211_v13 }
 0xd19   : > { %14698 = vmatprep.subr.bf16.mxu0 %v16211_v13 }
 0xd1c   : > { %14699 = vmatpush3.bf16.msra.mxu0 %v16077_v52 }
 0xd1d   : > { %14278 = vmatprep.subr.bf16.mxu0 %v16078_v14 }
 0xd23   : > { %14701 = vmatmul.mubr.msk.bf16.vlgmr.msra.gmra.mrb[140].mxu0 %vm9408_vm6, %v10710_v40 }
 0xd24   : > { %14279 = vmatpush3.bf16.msra.mxu0 %v16079_v6  ;;  %11090 = vmatprep.mubr.bf16.mxu0 %v10943_v45 }
 0xd25   : > { %14280 = vmatprep.subr.bf16.mxu0 %v16080_v21 }
 0xd28   : > { %14281 = vmatpush3.bf16.msra.mxu0 %v16081_v18 }
 0xd29   : > { %14282 = vmatprep.subr.bf16.mxu0 %v16082_v3 }
 0xd2c   : > { %14283 = vmatpush3.bf16.msra.mxu0 %v16083_v24 }
 0xd2d   : > { %14284 = vmatprep.subr.bf16.mxu0 %v16084_v17 }
 0xd30   : > { %14285 = vmatpush3.bf16.msra.mxu0 %v16085_v38 }
 0xd31   : > { %14286 = vmatprep.subr.bf16.mxu0 %v16086_v23 }
 0xd34   : > { %14287 = vmatpush3.bf16.msra.mxu0 %v16087_v47 }
 0xd35   : > { %14288 = vmatprep.subr.bf16.mxu0 %v16088_v58 }
 0xd38   : > { %14289 = vmatpush3.bf16.msra.mxu0 %v16089_v48 }
 0xd39   : > { %14290 = vmatprep.subr.bf16.mxu0 %v16090_v27 }
 0xd3c   : > { %14291 = vmatpush3.bf16.msra.mxu0 %v16091_v19 }
 0xd3d   : > { %14292 = vmatprep.subr.bf16.mxu0 %v16092_v28 }
 0xd40   : > { %14293 = vmatpush3.bf16.msra.mxu0 %v16093_v29 }
 0xd41   : > { %14704 = vmatprep.subr.bf16.mxu0 %v16211_v13 }
 0xd43   : > { %11091 = vmatmul.mubr.bf16.vlgmr.msra.gmra.mrb[156].mxu0 %v10942_v20 }
 0xd44   : > { %14705 = vmatpush3.bf16.msra.mxu0 %v16094_v41  ;;  %14708 = vmatprep.mubr.msk.bf16.mxu0 %vm16212_vm4, %v16211_v13 }
 0xd45   : > { %14706 = vmatprep.subr.bf16.mxu0 %v16211_v13 }
 0xd48   : > { %14707 = vmatpush3.bf16.msra.mxu0 %v16095_v62 }
 0xd49   : > { %14712 = vmatprep.subr.bf16.mxu0 %v16211_v13 }
 0xd4b   : > { %14709 = vmatmul.mubr.msk.bf16.vlgmr.msra.gmra.mrb[140].mxu0 %vm9408_vm6, %v10944_v36 }
 0xd4c   : > { %14713 = vmatpush3.bf16.msra.mxu0 %v16096_v30  ;;  %14716 = vmatprep.mubr.msk.bf16.mxu0 %vm16212_vm4, %v16211_v13 }
 0xd4d   : > { %14714 = vmatprep.subr.bf16.mxu0 %v16211_v13  ;;  %v9263_v13 = vld [vmem:[%s19899_s8] sm:$0x1] }
 0xd50   : > { %14715 = vmatpush3.bf16.msra.mxu0 %v16097_v57 }
 0xd52   : > { %v14119_v42 = vpop.f32.mrb[136].mxu0 }
 0xd53   : > { %v14120_v31 = vpop.f32.mrb[137].mxu0 }
 0xd54   : > { %v14121_v22 = vadd.f32 %v14120_v31, %v14119_v42  ;;  %v14122_v46 = vpop.f32.mrb[138].mxu0 }
 0xd55   : > { %v14123_v32 = vpop.f32.mrb[139].mxu0 }
 0xd56   : > { %v14194_v51 = vpop.f32.mrb[192].mxu1  ;;  %v14720_v12 = vadd.f32 %v14121_v22, %v9263_v13 }
 0xd57   : > { %14717 = vmatmul.mubr.msk.bf16.vlgmr.msra.gmra.mrb[140].mxu0 %vm9408_vm6, %v11178_v59  ;;  %v14195_v33 = vpop.f32.mrb[193].mxu1 }
 0xd58   : > { %v14196_v49 = vadd.f32 %v14195_v33, %v14194_v51  ;;  %v14197_v26 = vpop.f32.mrb[194].mxu1 }
 0xd59   : > { %v14198_v16 = vpop.f32.mrb[195].mxu1 }
 0xd76   : > { %v14219_v34 = vpop.f32.mrb[196].mxu1 }
 0xd77   : > { %v14220_v35 = vpop.f32.mrb[197].mxu1 }
 0xd78   : > { %v14221_v37 = vadd.f32 %v14220_v35, %v14219_v34  ;;  %v14222_v50 = vpop.f32.mrb[198].mxu1 }
 0xd79   : > { %v14223_v10 = vpop.f32.mrb[199].mxu1 }
 0xd7a   : > { %v14144_v56 = vpop.f32.mrb[144].mxu0 }
 0xd7b   : > { %v14145_v1 = vpop.f32.mrb[145].mxu0 }
 0xd7c   : > { %v14146_v63 = vadd.f32 %v14145_v1, %v14144_v56  ;;  %v14147_v55 = vpop.f32.mrb[146].mxu0 }
 0xd7d   : > { %v14148_v0 = vpop.f32.mrb[147].mxu0 }
 0xd7e   : > { %v14721_v5 = vadd.f32 %v14720_v12, %v14146_v63 }
 0xd97   : > { %v14269_v60 = vpop.f32.mrb[200].mxu1 }
 0xd98   : > { %v14270_v7 = vpop.f32.mrb[201].mxu1 }
 0xd99   : > { %v14271_v11 = vadd.f32 %v14270_v7, %v14269_v60  ;;  %v14272_v9 = vpop.f32.mrb[202].mxu1 }
 0xd9a   : > { %v14273_v54 = vpop.f32.mrb[203].mxu1 }
 0xda2   : > { %v14169_v15 = vpop.f32.mrb[148].mxu0 }
 0xda3   : > { %v14170_v2 = vpop.f32.mrb[149].mxu0 }
 0xda4   : > { %v14171_v8 = vadd.f32 %v14170_v2, %v14169_v15  ;;  %v14172_v25 = vpop.f32.mrb[150].mxu0 }
 0xda5   : > { %v14173_v53 = vpop.f32.mrb[151].mxu0 }
 0xda6   : > { %v14722_v39 = vadd.f32 %v14721_v5, %v14171_v8 }
 0xda8   : > { %v14723_v61 = vadd.f32 %v14722_v39, %v14196_v49 }
 0xdaa   : > { %v14724_v4 = vadd.f32 %v14723_v61, %v14221_v37 }
 0xdb7   : > { %v14319_v44 = vpop.f32.mrb[204].mxu1 }
 0xdb8   : > { %v14320_v43 = vpop.f32.mrb[205].mxu1 }
 0xdb9   : > { %v14321_v52 = vadd.f32 %v14320_v43, %v14319_v44  ;;  %v14322_v14 = vpop.f32.mrb[206].mxu1 }
 0xdba   : > { %v14323_v6 = vpop.f32.mrb[207].mxu1 }
 0xde2   : > { %v14244_v40 = vpop.f32.mrb[152].mxu0 }
 0xde3   : > { %v14245_v21 = vpop.f32.mrb[153].mxu0 }
 0xde4   : > { %v14246_v45 = vadd.f32 %v14245_v21, %v14244_v40  ;;  %v14247_v18 = vpop.f32.mrb[154].mxu0 }
 0xde5   : > { %v14248_v3 = vpop.f32.mrb[155].mxu0 }
 0xde6   : > { %v14725_v24 = vadd.f32 %v14724_v4, %v14246_v45 }
 0xde8   : > { %v14726_v17 = vadd.f32 %v14725_v24, %v14271_v11 }
 0xe16   : > { %v14294_v38 = vpop.f32.mrb[156].mxu0 }
 0xe17   : > { %v14295_v23 = vpop.f32.mrb[157].mxu0 }
 0xe18   : > { %v14296_v47 = vadd.f32 %v14295_v23, %v14294_v38  ;;  %v14297_v58 = vpop.f32.mrb[158].mxu0 }
 0xe19   : > { %v14298_v48 = vpop.f32.mrb[159].mxu0 }
 0xe1a   : > { %v14727_v27 = vadd.f32 %v14726_v17, %v14296_v47 }
 0xe1c   : > { %v14728_v19 = vadd.f32 %v14727_v27, %v14321_v52 }
 0xe2a   : > { %v11366_v28 = vpop.f32.mrb[140].mxu0 }
 0xe2b   : > { %v14729_v29 = vadd.f32 %v14728_v19, %v11366_v28  ;;  %v14718_v41 = vpop.f32.mrb[141].mxu0 }
 0xe2c   : > { %v11369_v20 = vpop.f32.mrb[142].mxu0 }
 0xe2d   : > { %v14719_v62 = vpop.f32.mrb[143].mxu0  ;;  %11374 = vst.msk [vmem:[%s324_s0] sm:$0x1] %vm11373_vm7, %v14729_v29 }
 0xe2e   : > { %16159 = shalt.err (!%p16156_p3)
}
 0xe2f   : > { %s16160_s14 = scalar_lea.hbm %s19849_s24, 16  ;;  %s16164_s17 = scalar_lea.hbm %s19900_s9, 32 }
 0xe30   : > { %p16161_p4 = scmp.ne.s32.totalorder %s19849_s24, %s16160_s14  ;;  %p16165_p9 = scmp.lt.u32.totalorder %s19849_s24, %s19900_s9 }
 0xe31   : > { %p16166_p10 = scmp.lt.u32.totalorder %s16164_s17, %s16160_s14  ;;  %p16168_p12 = scmp.lt.u32.totalorder %s16160_s14, %s19849_s24 }
 0xe32   : > { %p16162_p7 = pnand %p16161_p4, %p16302_p5 }
 0xe33   : > { %p16167_p11 = por %p16166_p10, %p16165_p9 }
 0xe34   : > { %p16163_p8 = pneg %p16162_p7 }
 0xe35   : > { %p16169_p13 = por %p16168_p12, %p16167_p11 }
 0xe37   : > { %p16170_p0 = pnand %p16169_p13, %p16163_p8 }
 0xe39   : > { %16173 = shalt.err (!%p16170_p0)
}
 0xe3a   : > { %14859 = dma.vmem_to_hbm [thread:$0]  (%p16302_p5), %s19851_s21, 16, %s19849_s24, %s11376_s13  }
 0xe3b PF: > { %p14865_p1 = scmp.ge.s32.totalorder %s16208_s12, 2  ;;  %s11400_s23 = sand.u32 1, %s16196_s30  }
 0xe3c   : > { %s11401_s25 = scalar_lea.sflag [#allocation3], %s11400_s23 }
 0xe3d   : > { %p14862_p2 = pnand %p14865_p1, %p16306_p6 }
 0xe3f   : > { %16191 = dma.done.wait (!%p14862_p2), %s11401_s25, 16  }
 0xe40   : > { %16193 = vsyncadd (!%p14862_p2), %s11401_s25, 4294967280  ;;  %p19_p3 = scmp.ge.s32.totalorder %s16289_s15, 4   ;;  %s19905_s30 = smov %s16200_s10 }
 0xe41   : > { %s19906_s10 = smov %s16204_s11  ;;  %s19907_s11 = smov %s16300_s18 }
 0xe42   : > { %s19908_s12 = smov %s16289_s15  ;;  %21 = sbr.rel (!%p19_p3) target bundleno = 5 (0x5), region = 119 }
 0xe49   :  { %11405 = vsyncpa [#allocation3], 1 }
 0xe4a   :  { %11407 = vsyncpa [#allocation3 + $0x1], 1 }

</bundles_post_ra>
